<compile_context>
chip_gen: v6e
topology: v6e:2x2x1
jax: 0.10.0
libtpu: 0.0.40
codegen_flags: <defaults>
</compile_context>

<pallas_src>
import functools

import numpy as np

import jax
import jax.numpy as jnp
from jax.experimental import pallas as pl
from jax.experimental.pallas import tpu as pltpu


_CIN = 3          # conv1 input channels
_CIN_PAD = 8      # conv1 input channels padded to a full sublane group
_C1, _C2, _C3 = 32, 64, 3
_K1, _K2, _K3 = 3, 2, 4


def _g_c2n_kernel(x_ref, w1_ref, b1_ref, w2_ref, b2_ref, w3_ref, b3_ref,
                  m1_ref, m2_ref, o_ref, xf1, xf2, xf3, *, H, W):
    """Fused conv1(3x3,p1)+ReLU -> conv2(2x2,p1)+ReLU -> conv3(4x4,p1).

    Layout: channels on sublanes, flattened zero-padded spatial on lanes with a
    shared row stride Wb = W + 3 for every padded buffer.

      x_ref : (1, 3, H*W)       lane-dense input block (one batch element)
      w*_ref: (Cout, K*K*Cin)   im2col-ordered weights ((kh,kw) outer, cin inner)
      b*_ref: (Cout, 1)
      m*_ref: (1, out_w)        {0,1} masks killing the flattened-conv junk cols
      o_ref : (1, 3, H*Wb)      lane-dense output (wrapper crops cols W..Wb-1)
      xf1/2/3: VMEM padded activation buffers (channels x flattened padded spatial)
    """
    Wb = W + 3

    # ---- stage the zero-padded input.  Rows 3..7 of xf1 stay zero and their
    #      weight columns are zero, so they never contribute.
    xf1[...] = jnp.zeros_like(xf1)
    x = x_ref[0]                                      # (3, H*W)
    for r in range(H):                                # re-stride rows: W -> Wb
        dst = (r + 1) * Wb + 1
        xf1[0:_CIN, dst:dst + W] = x[:, r * W:(r + 1) * W]

    def conv(src_ref, k, w_ref, b_ref, out_w):
        # im2col over the flattened padded image -> a single MXU matmul.
        pieces = [src_ref[:, kh * Wb + kw:kh * Wb + kw + out_w]
                  for kh in range(k) for kw in range(k)]
        patches = jnp.concatenate(pieces, axis=0)      # (k*k*cin, out_w)
        return jnp.dot(w_ref[...], patches,
                       preferred_element_type=jnp.float32) + b_ref[...]

    def stage(dst_ref, act):
        # One contiguous copy into the next padded buffer: every buffer shares
        # the row stride Wb, so valid pixels land on the interior and the
        # (masked-to-zero) junk columns land exactly on padding columns.
        off = Wb + 1
        rows, lanes = dst_ref.shape
        width = act.shape[1]
        dst_ref[:, 0:off] = jnp.zeros((rows, off), jnp.float32)
        dst_ref[:, off:off + width] = act
        tail = lanes - off - width
        if tail > 0:
            dst_ref[:, off + width:] = jnp.zeros((rows, tail), jnp.float32)

    # ---- conv1: 3x3 p1, 3 -> 32, ReLU       (valid output H x W)
    o1w = (H - 1) * Wb + W
    a1 = jnp.maximum(conv(xf1, _K1, w1_ref, b1_ref, o1w), 0.0) * m1_ref[...]
    stage(xf2, a1)

    # ---- conv2: 2x2 p1, 32 -> 64, ReLU      (valid output (H+1) x (W+1))
    o2w = H * Wb + (W + 1)
    a2 = jnp.maximum(conv(xf2, _K2, w2_ref, b2_ref, o2w), 0.0) * m2_ref[...]
    stage(xf3, a2)

    # ---- conv3: 4x4 p1, 64 -> 3, no activation.  Emit the full lane-dense
    #      (3, H*Wb) slab in one store; the wrapper crops the junk columns.
    o_ref[0] = conv(xf3, _K3, w3_ref, b3_ref, H * Wb).astype(o_ref.dtype)


def _prep_weight(w_oihw, cin_pad=None):
    """OIHW -> (Cout, KH*KW*Cin[_pad]) with (kh, kw) outer / cin inner ordering."""
    cout, cin, kh, kw = w_oihw.shape
    wgt = jnp.transpose(w_oihw, (0, 2, 3, 1))         # (Cout, KH, KW, Cin)
    if cin_pad is not None and cin_pad > cin:
        wgt = jnp.pad(wgt, ((0, 0), (0, 0), (0, 0), (0, cin_pad - cin)))
        cin = cin_pad
    return wgt.reshape(cout, kh * kw * cin)


def g_c2n_forward(params, x_nchw):
    """Equivalent of G_C2N.forward; input/output are NCHW like the PyTorch module."""
    n, cin, h, w = x_nchw.shape
    assert cin == _CIN
    wb = w + 3                                        # shared padded row stride

    w1, b1 = params["conv1"]
    w2, b2 = params["conv2"]
    w3, b3 = params["conv3"]
    w1m = _prep_weight(w1, cin_pad=_CIN_PAD)          # (32, 72)
    w2m = _prep_weight(w2)                            # (64, 128)
    w3m = _prep_weight(w3)                            # (3, 1024)
    b1c, b2c, b3c = b1.reshape(-1, 1), b2.reshape(-1, 1), b3.reshape(-1, 1)

    # widths of the flattened conv outputs + validity masks (junk columns -> 0)
    o1w = (h - 1) * wb + w
    o2w = h * wb + (w + 1)
    o3w = h * wb
    m1 = jnp.asarray(((np.arange(o1w) % wb) < w).astype(np.float32))[None, :]
    m2 = jnp.asarray(((np.arange(o2w) % wb) < (w + 1)).astype(np.float32))[None, :]

    x_flat = x_nchw.reshape(n, _CIN, h * w)

    flops = 2 * n * (h * w * _K1 * _K1 * _CIN * _C1
                     + (h + 1) * (w + 1) * _K2 * _K2 * _C1 * _C2
                     + h * w * _K3 * _K3 * _C2 * _C3)
    bytes_accessed = 4 * (x_flat.size + n * _C3 * o3w + w1m.size + w2m.size
                          + w3m.size + b1c.size + b2c.size + b3c.size
                          + m1.size + m2.size)

    kernel = functools.partial(_g_c2n_kernel, H=h, W=w)
    out = pl.pallas_call(
        kernel,
        out_shape=jax.ShapeDtypeStruct((n, _C3, o3w), jnp.float32),
        grid=(n,),  # one batch element per step; "parallel" -> both TCs on v7x
        in_specs=[
            pl.BlockSpec((1, _CIN, h * w), lambda i: (i, 0, 0)),
            pl.BlockSpec(w1m.shape, lambda i: (0, 0)),
            pl.BlockSpec(b1c.shape, lambda i: (0, 0)),
            pl.BlockSpec(w2m.shape, lambda i: (0, 0)),
            pl.BlockSpec(b2c.shape, lambda i: (0, 0)),
            pl.BlockSpec(w3m.shape, lambda i: (0, 0)),
            pl.BlockSpec(b3c.shape, lambda i: (0, 0)),
            pl.BlockSpec(m1.shape, lambda i: (0, 0)),
            pl.BlockSpec(m2.shape, lambda i: (0, 0)),
        ],
        out_specs=pl.BlockSpec((1, _C3, o3w), lambda i: (i, 0, 0)),
        scratch_shapes=[
            pltpu.VMEM((_CIN_PAD, (h + 2) * wb), jnp.float32),            # padded input
            pltpu.VMEM((_C1, (h + 2) * wb), jnp.float32),                 # padded conv1 out
            pltpu.VMEM((_C2, (h + 3) * wb + (_K3 - 1)), jnp.float32),     # padded conv2 out (+slack)
        ],
        compiler_params=pltpu.CompilerParams(dimension_semantics=("parallel",)),
        cost_estimate=pl.CostEstimate(flops=flops, transcendentals=0,
                                      bytes_accessed=bytes_accessed),
    )(x_flat, w1m, b1c, w2m, b2c, w3m, b3c, m1, m2)

    # crop the per-row junk columns; result is already NCHW
    return out.reshape(n, _C3, h, wb)[:, :, :, :w]


def init_params(key):
    """Deterministic init matching PyTorch Conv2d defaults (U(+-1/sqrt(fan_in)))."""
    def conv_init(k, cout, cin, ksz):
        wk, bk = jax.random.split(k)
        bound = 1.0 / float(np.sqrt(cin * ksz * ksz))
        wgt = jax.random.uniform(wk, (cout, cin, ksz, ksz), jnp.float32, -bound, bound)
        b = jax.random.uniform(bk, (cout,), jnp.float32, -bound, bound)
        return wgt, b

    k1, k2, k3 = jax.random.split(key, 3)
    return {"conv1": conv_init(k1, _C1, _CIN, _K1),
            "conv2": conv_init(k2, _C2, _C1, _K2),
            "conv3": conv_init(k3, _C3, _C2, _K3)}


def _reference_forward(params, x):
    """Pure-JAX reference (XLA convs) for correctness checking."""
    def conv(x, w, b):
        y = jax.lax.conv_general_dilated(
            x, w, window_strides=(1, 1), padding=[(1, 1), (1, 1)],
            dimension_numbers=("NCHW", "OIHW", "NCHW"))
        return y + b[None, :, None, None]

    w1, b1 = params["conv1"]
    w2, b2 = params["conv2"]
    w3, b3 = params["conv3"]
    x = jax.nn.relu(conv(x, w1, b1))
    x = jax.nn.relu(conv(x, w2, b2))
    return conv(x, w3, b3)


if __name__ == "__main__":
    key = jax.random.PRNGKey(0)
    pkey, xkey = jax.random.split(key)

    params = init_params(pkey)
    x = jax.random.normal(xkey, (2, _CIN, 16, 16), jnp.float32)   # NCHW

    out = jax.jit(g_c2n_forward)(params, x)
    jax.block_until_ready(out)
    assert out.shape == (2, 3, 16, 16), out.shape
    assert out.dtype == jnp.float32

    ref = _reference_forward(params, x)
    np.testing.assert_allclose(np.asarray(out), np.asarray(ref), rtol=1e-2, atol=1e-2)

    print("KERNEL_OK")
</pallas_src>

<mosaic_0001>
module attributes {stable_mosaic.version = 11 : i64} {
  func.func @_g_c2n_kernel(%arg0: i32, %arg1: memref<1x3x256xf32, #tpu.memory_space<vmem>>, %arg2: memref<32x72xf32, #tpu.memory_space<vmem>>, %arg3: memref<32x1xf32, #tpu.memory_space<vmem>>, %arg4: memref<64x128xf32, #tpu.memory_space<vmem>>, %arg5: memref<64x1xf32, #tpu.memory_space<vmem>>, %arg6: memref<3x1024xf32, #tpu.memory_space<vmem>>, %arg7: memref<3x1xf32, #tpu.memory_space<vmem>>, %arg8: memref<1x301xf32, #tpu.memory_space<vmem>>, %arg9: memref<1x321xf32, #tpu.memory_space<vmem>>, %arg10: memref<1x3x304xf32, #tpu.memory_space<vmem>>, %arg11: memref<8x342xf32, #tpu.memory_space<vmem>>, %arg12: memref<32x342xf32, #tpu.memory_space<vmem>>, %arg13: memref<64x364xf32, #tpu.memory_space<vmem>>) attributes {dimension_semantics = [#tpu.dimension_semantics<parallel>], iteration_bounds = array<i64: 2>, scalar_prefetch = 0 : i64, scratch_operands = 3 : i64, tpu.core_type = #tpu.core_type<tc>, window_params = [{transform_indices = @transform_0, window_bounds = array<i64: 1, 3, 256>}, {pipeline_mode = #tpu.pipeline_mode<synchronous>, transform_indices = @transform_1, window_bounds = array<i64: 32, 72>}, {pipeline_mode = #tpu.pipeline_mode<synchronous>, transform_indices = @transform_2, window_bounds = array<i64: 32, 1>}, {pipeline_mode = #tpu.pipeline_mode<synchronous>, transform_indices = @transform_3, window_bounds = array<i64: 64, 128>}, {pipeline_mode = #tpu.pipeline_mode<synchronous>, transform_indices = @transform_4, window_bounds = array<i64: 64, 1>}, {pipeline_mode = #tpu.pipeline_mode<synchronous>, transform_indices = @transform_5, window_bounds = array<i64: 3, 1024>}, {pipeline_mode = #tpu.pipeline_mode<synchronous>, transform_indices = @transform_6, window_bounds = array<i64: 3, 1>}, {pipeline_mode = #tpu.pipeline_mode<synchronous>, transform_indices = @transform_7, window_bounds = array<i64: 1, 301>}, {pipeline_mode = #tpu.pipeline_mode<synchronous>, transform_indices = @transform_8, window_bounds = array<i64: 1, 321>}, {transform_indices = @transform_9, window_bounds = array<i64: 1, 3, 304>}]} {
    %cst = arith.constant 0.000000e+00 : f32
    %0 = vector.broadcast %cst : f32 to vector<8x342xf32>
    %c0 = arith.constant 0 : index
    %c0_0 = arith.constant 0 : index
    %1 = vector.load %arg11[%c0, %c0_0] : memref<8x342xf32, #tpu.memory_space<vmem>>, vector<8x342xf32>
    tpu.vector_store %arg11[%c0, %c0_0], %0 {strides = array<i32>} : memref<8x342xf32, #tpu.memory_space<vmem>>, vector<8x342xf32>,
    %c0_1 = arith.constant 0 : index
    %c0_2 = arith.constant 0 : index
    %c0_3 = arith.constant 0 : index
    %2 = vector.load %arg1[%c0_1, %c0_2, %c0_3] : memref<1x3x256xf32, #tpu.memory_space<vmem>>, vector<1x3x256xf32>
    %3 = vector.shape_cast %2 : vector<1x3x256xf32> to vector<3x256xf32>
    %4 = vector.extract_strided_slice %3 {offsets = [0, 0], sizes = [3, 16], strides = [1, 1]} : vector<3x256xf32> to vector<3x16xf32>
    %c0_4 = arith.constant 0 : index
    %c20 = arith.constant 20 : index
    %5 = vector.load %arg11[%c0_4, %c20] : memref<8x342xf32, #tpu.memory_space<vmem>>, vector<3x16xf32>
    tpu.vector_store %arg11[%c0_4, %c20], %4 {strides = array<i32>} : memref<8x342xf32, #tpu.memory_space<vmem>>, vector<3x16xf32>,
    %6 = vector.extract_strided_slice %3 {offsets = [0, 16], sizes = [3, 16], strides = [1, 1]} : vector<3x256xf32> to vector<3x16xf32>
    %c0_5 = arith.constant 0 : index
    %c39 = arith.constant 39 : index
    %7 = vector.load %arg11[%c0_5, %c39] : memref<8x342xf32, #tpu.memory_space<vmem>>, vector<3x16xf32>
    tpu.vector_store %arg11[%c0_5, %c39], %6 {strides = array<i32>} : memref<8x342xf32, #tpu.memory_space<vmem>>, vector<3x16xf32>,
    %8 = vector.extract_strided_slice %3 {offsets = [0, 32], sizes = [3, 16], strides = [1, 1]} : vector<3x256xf32> to vector<3x16xf32>
    %c0_6 = arith.constant 0 : index
    %c58 = arith.constant 58 : index
    %9 = vector.load %arg11[%c0_6, %c58] : memref<8x342xf32, #tpu.memory_space<vmem>>, vector<3x16xf32>
    tpu.vector_store %arg11[%c0_6, %c58], %8 {strides = array<i32>} : memref<8x342xf32, #tpu.memory_space<vmem>>, vector<3x16xf32>,
    %10 = vector.extract_strided_slice %3 {offsets = [0, 48], sizes = [3, 16], strides = [1, 1]} : vector<3x256xf32> to vector<3x16xf32>
    %c0_7 = arith.constant 0 : index
    %c77 = arith.constant 77 : index
    %11 = vector.load %arg11[%c0_7, %c77] : memref<8x342xf32, #tpu.memory_space<vmem>>, vector<3x16xf32>
    tpu.vector_store %arg11[%c0_7, %c77], %10 {strides = array<i32>} : memref<8x342xf32, #tpu.memory_space<vmem>>, vector<3x16xf32>,
    %12 = vector.extract_strided_slice %3 {offsets = [0, 64], sizes = [3, 16], strides = [1, 1]} : vector<3x256xf32> to vector<3x16xf32>
    %c0_8 = arith.constant 0 : index
    %c96 = arith.constant 96 : index
    %13 = vector.load %arg11[%c0_8, %c96] : memref<8x342xf32, #tpu.memory_space<vmem>>, vector<3x16xf32>
    tpu.vector_store %arg11[%c0_8, %c96], %12 {strides = array<i32>} : memref<8x342xf32, #tpu.memory_space<vmem>>, vector<3x16xf32>,
    %14 = vector.extract_strided_slice %3 {offsets = [0, 80], sizes = [3, 16], strides = [1, 1]} : vector<3x256xf32> to vector<3x16xf32>
    %c0_9 = arith.constant 0 : index
    %c115 = arith.constant 115 : index
    %15 = vector.load %arg11[%c0_9, %c115] : memref<8x342xf32, #tpu.memory_space<vmem>>, vector<3x16xf32>
    tpu.vector_store %arg11[%c0_9, %c115], %14 {strides = array<i32>} : memref<8x342xf32, #tpu.memory_space<vmem>>, vector<3x16xf32>,
    %16 = vector.extract_strided_slice %3 {offsets = [0, 96], sizes = [3, 16], strides = [1, 1]} : vector<3x256xf32> to vector<3x16xf32>
    %c0_10 = arith.constant 0 : index
    %c134 = arith.constant 134 : index
    %17 = vector.load %arg11[%c0_10, %c134] : memref<8x342xf32, #tpu.memory_space<vmem>>, vector<3x16xf32>
    tpu.vector_store %arg11[%c0_10, %c134], %16 {strides = array<i32>} : memref<8x342xf32, #tpu.memory_space<vmem>>, vector<3x16xf32>,
    %18 = vector.extract_strided_slice %3 {offsets = [0, 112], sizes = [3, 16], strides = [1, 1]} : vector<3x256xf32> to vector<3x16xf32>
    %c0_11 = arith.constant 0 : index
    %c153 = arith.constant 153 : index
    %19 = vector.load %arg11[%c0_11, %c153] : memref<8x342xf32, #tpu.memory_space<vmem>>, vector<3x16xf32>
    tpu.vector_store %arg11[%c0_11, %c153], %18 {strides = array<i32>} : memref<8x342xf32, #tpu.memory_space<vmem>>, vector<3x16xf32>,
    %20 = vector.extract_strided_slice %3 {offsets = [0, 128], sizes = [3, 16], strides = [1, 1]} : vector<3x256xf32> to vector<3x16xf32>
    %c0_12 = arith.constant 0 : index
    %c172 = arith.constant 172 : index
    %21 = vector.load %arg11[%c0_12, %c172] : memref<8x342xf32, #tpu.memory_space<vmem>>, vector<3x16xf32>
    tpu.vector_store %arg11[%c0_12, %c172], %20 {strides = array<i32>} : memref<8x342xf32, #tpu.memory_space<vmem>>, vector<3x16xf32>,
    %22 = vector.extract_strided_slice %3 {offsets = [0, 144], sizes = [3, 16], strides = [1, 1]} : vector<3x256xf32> to vector<3x16xf32>
    %c0_13 = arith.constant 0 : index
    %c191 = arith.constant 191 : index
    %23 = vector.load %arg11[%c0_13, %c191] : memref<8x342xf32, #tpu.memory_space<vmem>>, vector<3x16xf32>
    tpu.vector_store %arg11[%c0_13, %c191], %22 {strides = array<i32>} : memref<8x342xf32, #tpu.memory_space<vmem>>, vector<3x16xf32>,
    %24 = vector.extract_strided_slice %3 {offsets = [0, 160], sizes = [3, 16], strides = [1, 1]} : vector<3x256xf32> to vector<3x16xf32>
    %c0_14 = arith.constant 0 : index
    %c210 = arith.constant 210 : index
    %25 = vector.load %arg11[%c0_14, %c210] : memref<8x342xf32, #tpu.memory_space<vmem>>, vector<3x16xf32>
    tpu.vector_store %arg11[%c0_14, %c210], %24 {strides = array<i32>} : memref<8x342xf32, #tpu.memory_space<vmem>>, vector<3x16xf32>,
    %26 = vector.extract_strided_slice %3 {offsets = [0, 176], sizes = [3, 16], strides = [1, 1]} : vector<3x256xf32> to vector<3x16xf32>
    %c0_15 = arith.constant 0 : index
    %c229 = arith.constant 229 : index
    %27 = vector.load %arg11[%c0_15, %c229] : memref<8x342xf32, #tpu.memory_space<vmem>>, vector<3x16xf32>
    tpu.vector_store %arg11[%c0_15, %c229], %26 {strides = array<i32>} : memref<8x342xf32, #tpu.memory_space<vmem>>, vector<3x16xf32>,
    %28 = vector.extract_strided_slice %3 {offsets = [0, 192], sizes = [3, 16], strides = [1, 1]} : vector<3x256xf32> to vector<3x16xf32>
    %c0_16 = arith.constant 0 : index
    %c248 = arith.constant 248 : index
    %29 = vector.load %arg11[%c0_16, %c248] : memref<8x342xf32, #tpu.memory_space<vmem>>, vector<3x16xf32>
    tpu.vector_store %arg11[%c0_16, %c248], %28 {strides = array<i32>} : memref<8x342xf32, #tpu.memory_space<vmem>>, vector<3x16xf32>,
    %30 = vector.extract_strided_slice %3 {offsets = [0, 208], sizes = [3, 16], strides = [1, 1]} : vector<3x256xf32> to vector<3x16xf32>
    %c0_17 = arith.constant 0 : index
    %c267 = arith.constant 267 : index
    %31 = vector.load %arg11[%c0_17, %c267] : memref<8x342xf32, #tpu.memory_space<vmem>>, vector<3x16xf32>
    tpu.vector_store %arg11[%c0_17, %c267], %30 {strides = array<i32>} : memref<8x342xf32, #tpu.memory_space<vmem>>, vector<3x16xf32>,
    %32 = vector.extract_strided_slice %3 {offsets = [0, 224], sizes = [3, 16], strides = [1, 1]} : vector<3x256xf32> to vector<3x16xf32>
    %c0_18 = arith.constant 0 : index
    %c286 = arith.constant 286 : index
    %33 = vector.load %arg11[%c0_18, %c286] : memref<8x342xf32, #tpu.memory_space<vmem>>, vector<3x16xf32>
    tpu.vector_store %arg11[%c0_18, %c286], %32 {strides = array<i32>} : memref<8x342xf32, #tpu.memory_space<vmem>>, vector<3x16xf32>,
    %34 = vector.extract_strided_slice %3 {offsets = [0, 240], sizes = [3, 16], strides = [1, 1]} : vector<3x256xf32> to vector<3x16xf32>
    %c0_19 = arith.constant 0 : index
    %c305 = arith.constant 305 : index
    %35 = vector.load %arg11[%c0_19, %c305] : memref<8x342xf32, #tpu.memory_space<vmem>>, vector<3x16xf32>
    tpu.vector_store %arg11[%c0_19, %c305], %34 {strides = array<i32>} : memref<8x342xf32, #tpu.memory_space<vmem>>, vector<3x16xf32>,
    %c0_20 = arith.constant 0 : index
    %c0_21 = arith.constant 0 : index
    %36 = vector.load %arg11[%c0_20, %c0_21] : memref<8x342xf32, #tpu.memory_space<vmem>>, vector<8x301xf32>
    %c0_22 = arith.constant 0 : index
    %c1 = arith.constant 1 : index
    %37 = vector.load %arg11[%c0_22, %c1] : memref<8x342xf32, #tpu.memory_space<vmem>>, vector<8x301xf32>
    %c0_23 = arith.constant 0 : index
    %c2 = arith.constant 2 : index
    %38 = vector.load %arg11[%c0_23, %c2] : memref<8x342xf32, #tpu.memory_space<vmem>>, vector<8x301xf32>
    %c0_24 = arith.constant 0 : index
    %c19 = arith.constant 19 : index
    %39 = vector.load %arg11[%c0_24, %c19] : memref<8x342xf32, #tpu.memory_space<vmem>>, vector<8x301xf32>
    %c0_25 = arith.constant 0 : index
    %c20_26 = arith.constant 20 : index
    %40 = vector.load %arg11[%c0_25, %c20_26] : memref<8x342xf32, #tpu.memory_space<vmem>>, vector<8x301xf32>
    %c0_27 = arith.constant 0 : index
    %c21 = arith.constant 21 : index
    %41 = vector.load %arg11[%c0_27, %c21] : memref<8x342xf32, #tpu.memory_space<vmem>>, vector<8x301xf32>
    %c0_28 = arith.constant 0 : index
    %c38 = arith.constant 38 : index
    %42 = vector.load %arg11[%c0_28, %c38] : memref<8x342xf32, #tpu.memory_space<vmem>>, vector<8x301xf32>
    %c0_29 = arith.constant 0 : index
    %c39_30 = arith.constant 39 : index
    %43 = vector.load %arg11[%c0_29, %c39_30] : memref<8x342xf32, #tpu.memory_space<vmem>>, vector<8x301xf32>
    %c0_31 = arith.constant 0 : index
    %c40 = arith.constant 40 : index
    %44 = vector.load %arg11[%c0_31, %c40] : memref<8x342xf32, #tpu.memory_space<vmem>>, vector<8x301xf32>
    %45 = tpu.concatenate %36, %37, %38, %39, %40, %41, %42, %43, %44 in 0 : vector<8x301xf32>, vector<8x301xf32>, vector<8x301xf32>, vector<8x301xf32>, vector<8x301xf32>, vector<8x301xf32>, vector<8x301xf32>, vector<8x301xf32>, vector<8x301xf32> -> vector<72x301xf32>
    %c0_32 = arith.constant 0 : index
    %c0_33 = arith.constant 0 : index
    %46 = vector.load %arg2[%c0_32, %c0_33] : memref<32x72xf32, #tpu.memory_space<vmem>>, vector<32x72xf32>
    %cst_34 = arith.constant dense<0.000000e+00> : vector<32x301xf32>
    %47 = tpu.matmul %46, %45, %cst_34 {dimension_numbers = #tpu.dot_dimension_numbers<[1], [0], [0], [1], [0, 0, 1, 1], [], []>} : vector<32x72xf32>, vector<72x301xf32>, vector<32x301xf32> -> vector<32x301xf32>
    %c0_35 = arith.constant 0 : index
    %c0_36 = arith.constant 0 : index
    %48 = vector.load %arg3[%c0_35, %c0_36] : memref<32x1xf32, #tpu.memory_space<vmem>>, vector<32x1xf32>
    %49 = vector.broadcast %48 : vector<32x1xf32> to vector<32x301xf32>
    %50 = arith.addf %47, %49 : vector<32x301xf32>
    %cst_37 = arith.constant 0.000000e+00 : f32
    %51 = vector.broadcast %cst_37 : f32 to vector<32x301xf32>
    %52 = arith.maximumf %50, %51 : vector<32x301xf32>
    %c0_38 = arith.constant 0 : index
    %c0_39 = arith.constant 0 : index
    %53 = vector.load %arg8[%c0_38, %c0_39] : memref<1x301xf32, #tpu.memory_space<vmem>>, vector<1x301xf32>
    %54 = vector.broadcast %53 : vector<1x301xf32> to vector<32x301xf32>
    %55 = arith.mulf %52, %54 : vector<32x301xf32>
    %cst_40 = arith.constant 0.000000e+00 : f32
    %56 = vector.broadcast %cst_40 : f32 to vector<32x20xf32>
    %c0_41 = arith.constant 0 : index
    %c0_42 = arith.constant 0 : index
    %57 = vector.load %arg12[%c0_41, %c0_42] : memref<32x342xf32, #tpu.memory_space<vmem>>, vector<32x20xf32>
    tpu.vector_store %arg12[%c0_41, %c0_42], %56 {strides = array<i32>} : memref<32x342xf32, #tpu.memory_space<vmem>>, vector<32x20xf32>,
    %c0_43 = arith.constant 0 : index
    %c20_44 = arith.constant 20 : index
    %58 = vector.load %arg12[%c0_43, %c20_44] : memref<32x342xf32, #tpu.memory_space<vmem>>, vector<32x301xf32>
    tpu.vector_store %arg12[%c0_43, %c20_44], %55 {strides = array<i32>} : memref<32x342xf32, #tpu.memory_space<vmem>>, vector<32x301xf32>,
    %cst_45 = arith.constant 0.000000e+00 : f32
    %59 = vector.broadcast %cst_45 : f32 to vector<32x21xf32>
    %c0_46 = arith.constant 0 : index
    %c321 = arith.constant 321 : index
    %60 = vector.load %arg12[%c0_46, %c321] : memref<32x342xf32, #tpu.memory_space<vmem>>, vector<32x21xf32>
    tpu.vector_store %arg12[%c0_46, %c321], %59 {strides = array<i32>} : memref<32x342xf32, #tpu.memory_space<vmem>>, vector<32x21xf32>,
    %c0_47 = arith.constant 0 : index
    %c0_48 = arith.constant 0 : index
    %61 = vector.load %arg12[%c0_47, %c0_48] : memref<32x342xf32, #tpu.memory_space<vmem>>, vector<32x321xf32>
    %c0_49 = arith.constant 0 : index
    %c1_50 = arith.constant 1 : index
    %62 = vector.load %arg12[%c0_49, %c1_50] : memref<32x342xf32, #tpu.memory_space<vmem>>, vector<32x321xf32>
    %c0_51 = arith.constant 0 : index
    %c19_52 = arith.constant 19 : index
    %63 = vector.load %arg12[%c0_51, %c19_52] : memref<32x342xf32, #tpu.memory_space<vmem>>, vector<32x321xf32>
    %c0_53 = arith.constant 0 : index
    %c20_54 = arith.constant 20 : index
    %64 = vector.load %arg12[%c0_53, %c20_54] : memref<32x342xf32, #tpu.memory_space<vmem>>, vector<32x321xf32>
    %65 = tpu.concatenate %61, %62, %63, %64 in 0 : vector<32x321xf32>, vector<32x321xf32>, vector<32x321xf32>, vector<32x321xf32> -> vector<128x321xf32>
    %c0_55 = arith.constant 0 : index
    %c0_56 = arith.constant 0 : index
    %66 = vector.load %arg4[%c0_55, %c0_56] : memref<64x128xf32, #tpu.memory_space<vmem>>, vector<64x128xf32>
    %cst_57 = arith.constant dense<0.000000e+00> : vector<64x321xf32>
    %67 = tpu.matmul %66, %65, %cst_57 {dimension_numbers = #tpu.dot_dimension_numbers<[1], [0], [0], [1], [0, 0, 1, 1], [], []>} : vector<64x128xf32>, vector<128x321xf32>, vector<64x321xf32> -> vector<64x321xf32>
    %c0_58 = arith.constant 0 : index
    %c0_59 = arith.constant 0 : index
    %68 = vector.load %arg5[%c0_58, %c0_59] : memref<64x1xf32, #tpu.memory_space<vmem>>, vector<64x1xf32>
    %69 = vector.broadcast %68 : vector<64x1xf32> to vector<64x321xf32>
    %70 = arith.addf %67, %69 : vector<64x321xf32>
    %cst_60 = arith.constant 0.000000e+00 : f32
    %71 = vector.broadcast %cst_60 : f32 to vector<64x321xf32>
    %72 = arith.maximumf %70, %71 : vector<64x321xf32>
    %c0_61 = arith.constant 0 : index
    %c0_62 = arith.constant 0 : index
    %73 = vector.load %arg9[%c0_61, %c0_62] : memref<1x321xf32, #tpu.memory_space<vmem>>, vector<1x321xf32>
    %74 = vector.broadcast %73 : vector<1x321xf32> to vector<64x321xf32>
    %75 = arith.mulf %72, %74 : vector<64x321xf32>
    %cst_63 = arith.constant 0.000000e+00 : f32
    %76 = vector.broadcast %cst_63 : f32 to vector<64x20xf32>
    %c0_64 = arith.constant 0 : index
    %c0_65 = arith.constant 0 : index
    %77 = vector.load %arg13[%c0_64, %c0_65] : memref<64x364xf32, #tpu.memory_space<vmem>>, vector<64x20xf32>
    tpu.vector_store %arg13[%c0_64, %c0_65], %76 {strides = array<i32>} : memref<64x364xf32, #tpu.memory_space<vmem>>, vector<64x20xf32>,
    %c0_66 = arith.constant 0 : index
    %c20_67 = arith.constant 20 : index
    %78 = vector.load %arg13[%c0_66, %c20_67] : memref<64x364xf32, #tpu.memory_space<vmem>>, vector<64x321xf32>
    tpu.vector_store %arg13[%c0_66, %c20_67], %75 {strides = array<i32>} : memref<64x364xf32, #tpu.memory_space<vmem>>, vector<64x321xf32>,
    %cst_68 = arith.constant 0.000000e+00 : f32
    %79 = vector.broadcast %cst_68 : f32 to vector<64x23xf32>
    %c0_69 = arith.constant 0 : index
    %c341 = arith.constant 341 : index
    %80 = vector.load %arg13[%c0_69, %c341] : memref<64x364xf32, #tpu.memory_space<vmem>>, vector<64x23xf32>
    tpu.vector_store %arg13[%c0_69, %c341], %79 {strides = array<i32>} : memref<64x364xf32, #tpu.memory_space<vmem>>, vector<64x23xf32>,
    %c0_70 = arith.constant 0 : index
    %c0_71 = arith.constant 0 : index
    %81 = vector.load %arg13[%c0_70, %c0_71] : memref<64x364xf32, #tpu.memory_space<vmem>>, vector<64x304xf32>
    %c0_72 = arith.constant 0 : index
    %c1_73 = arith.constant 1 : index
    %82 = vector.load %arg13[%c0_72, %c1_73] : memref<64x364xf32, #tpu.memory_space<vmem>>, vector<64x304xf32>
    %c0_74 = arith.constant 0 : index
    %c2_75 = arith.constant 2 : index
    %83 = vector.load %arg13[%c0_74, %c2_75] : memref<64x364xf32, #tpu.memory_space<vmem>>, vector<64x304xf32>
    %c0_76 = arith.constant 0 : index
    %c3 = arith.constant 3 : index
    %84 = vector.load %arg13[%c0_76, %c3] : memref<64x364xf32, #tpu.memory_space<vmem>>, vector<64x304xf32>
    %c0_77 = arith.constant 0 : index
    %c19_78 = arith.constant 19 : index
    %85 = vector.load %arg13[%c0_77, %c19_78] : memref<64x364xf32, #tpu.memory_space<vmem>>, vector<64x304xf32>
    %c0_79 = arith.constant 0 : index
    %c20_80 = arith.constant 20 : index
    %86 = vector.load %arg13[%c0_79, %c20_80] : memref<64x364xf32, #tpu.memory_space<vmem>>, vector<64x304xf32>
    %c0_81 = arith.constant 0 : index
    %c21_82 = arith.constant 21 : index
    %87 = vector.load %arg13[%c0_81, %c21_82] : memref<64x364xf32, #tpu.memory_space<vmem>>, vector<64x304xf32>
    %c0_83 = arith.constant 0 : index
    %c22 = arith.constant 22 : index
    %88 = vector.load %arg13[%c0_83, %c22] : memref<64x364xf32, #tpu.memory_space<vmem>>, vector<64x304xf32>
    %c0_84 = arith.constant 0 : index
    %c38_85 = arith.constant 38 : index
    %89 = vector.load %arg13[%c0_84, %c38_85] : memref<64x364xf32, #tpu.memory_space<vmem>>, vector<64x304xf32>
    %c0_86 = arith.constant 0 : index
    %c39_87 = arith.constant 39 : index
    %90 = vector.load %arg13[%c0_86, %c39_87] : memref<64x364xf32, #tpu.memory_space<vmem>>, vector<64x304xf32>
    %c0_88 = arith.constant 0 : index
    %c40_89 = arith.constant 40 : index
    %91 = vector.load %arg13[%c0_88, %c40_89] : memref<64x364xf32, #tpu.memory_space<vmem>>, vector<64x304xf32>
    %c0_90 = arith.constant 0 : index
    %c41 = arith.constant 41 : index
    %92 = vector.load %arg13[%c0_90, %c41] : memref<64x364xf32, #tpu.memory_space<vmem>>, vector<64x304xf32>
    %c0_91 = arith.constant 0 : index
    %c57 = arith.constant 57 : index
    %93 = vector.load %arg13[%c0_91, %c57] : memref<64x364xf32, #tpu.memory_space<vmem>>, vector<64x304xf32>
    %c0_92 = arith.constant 0 : index
    %c58_93 = arith.constant 58 : index
    %94 = vector.load %arg13[%c0_92, %c58_93] : memref<64x364xf32, #tpu.memory_space<vmem>>, vector<64x304xf32>
    %c0_94 = arith.constant 0 : index
    %c59 = arith.constant 59 : index
    %95 = vector.load %arg13[%c0_94, %c59] : memref<64x364xf32, #tpu.memory_space<vmem>>, vector<64x304xf32>
    %c0_95 = arith.constant 0 : index
    %c60 = arith.constant 60 : index
    %96 = vector.load %arg13[%c0_95, %c60] : memref<64x364xf32, #tpu.memory_space<vmem>>, vector<64x304xf32>
    %97 = tpu.concatenate %81, %82, %83, %84, %85, %86, %87, %88, %89, %90, %91, %92, %93, %94, %95, %96 in 0 : vector<64x304xf32>, vector<64x304xf32>, vector<64x304xf32>, vector<64x304xf32>, vector<64x304xf32>, vector<64x304xf32>, vector<64x304xf32>, vector<64x304xf32>, vector<64x304xf32>, vector<64x304xf32>, vector<64x304xf32>, vector<64x304xf32>, vector<64x304xf32>, vector<64x304xf32>, vector<64x304xf32>, vector<64x304xf32> -> vector<1024x304xf32>
    %c0_96 = arith.constant 0 : index
    %c0_97 = arith.constant 0 : index
    %98 = vector.load %arg6[%c0_96, %c0_97] : memref<3x1024xf32, #tpu.memory_space<vmem>>, vector<3x1024xf32>
    %cst_98 = arith.constant dense<0.000000e+00> : vector<3x304xf32>
    %99 = tpu.matmul %98, %97, %cst_98 {dimension_numbers = #tpu.dot_dimension_numbers<[1], [0], [0], [1], [0, 0, 1, 1], [], []>} : vector<3x1024xf32>, vector<1024x304xf32>, vector<3x304xf32> -> vector<3x304xf32>
    %c0_99 = arith.constant 0 : index
    %c0_100 = arith.constant 0 : index
    %100 = vector.load %arg7[%c0_99, %c0_100] : memref<3x1xf32, #tpu.memory_space<vmem>>, vector<3x1xf32>
    %101 = vector.broadcast %100 : vector<3x1xf32> to vector<3x304xf32>
    %102 = arith.addf %99, %101 : vector<3x304xf32>
    %c0_101 = arith.constant 0 : index
    %c0_102 = arith.constant 0 : index
    %c0_103 = arith.constant 0 : index
    %103 = vector.load %arg10[%c0_101, %c0_102, %c0_103] : memref<1x3x304xf32, #tpu.memory_space<vmem>>, vector<1x3x304xf32>
    %104 = vector.shape_cast %103 : vector<1x3x304xf32> to vector<3x304xf32>
    %105 = vector.shape_cast %102 : vector<3x304xf32> to vector<1x3x304xf32>
    tpu.vector_store %arg10[%c0_101, %c0_102, %c0_103], %105 {strides = array<i32>} : memref<1x3x304xf32, #tpu.memory_space<vmem>>, vector<1x3x304xf32>,
    return
  }
  func.func @transform_0(%arg0: i32) -> (i32, i32, i32) {
    %c0_i32 = arith.constant 0 : i32
    %c0_i32_0 = arith.constant 0 : i32
    %c0_i32_1 = arith.constant 0 : i32
    return %arg0, %c0_i32, %c0_i32_0 : i32, i32, i32
  }
  func.func @transform_1(%arg0: i32) -> (i32, i32) {
    %c0_i32 = arith.constant 0 : i32
    %c0_i32_0 = arith.constant 0 : i32
    %c0_i32_1 = arith.constant 0 : i32
    return %c0_i32, %c0_i32_0 : i32, i32
  }
  func.func @transform_2(%arg0: i32) -> (i32, i32) {
    %c0_i32 = arith.constant 0 : i32
    %c0_i32_0 = arith.constant 0 : i32
    %c0_i32_1 = arith.constant 0 : i32
    return %c0_i32, %c0_i32_0 : i32, i32
  }
  func.func @transform_3(%arg0: i32) -> (i32, i32) {
    %c0_i32 = arith.constant 0 : i32
    %c0_i32_0 = arith.constant 0 : i32
    %c0_i32_1 = arith.constant 0 : i32
    return %c0_i32, %c0_i32_0 : i32, i32
  }
  func.func @transform_4(%arg0: i32) -> (i32, i32) {
    %c0_i32 = arith.constant 0 : i32
    %c0_i32_0 = arith.constant 0 : i32
    %c0_i32_1 = arith.constant 0 : i32
    return %c0_i32, %c0_i32_0 : i32, i32
  }
  func.func @transform_5(%arg0: i32) -> (i32, i32) {
    %c0_i32 = arith.constant 0 : i32
    %c0_i32_0 = arith.constant 0 : i32
    %c0_i32_1 = arith.constant 0 : i32
    return %c0_i32, %c0_i32_0 : i32, i32
  }
  func.func @transform_6(%arg0: i32) -> (i32, i32) {
    %c0_i32 = arith.constant 0 : i32
    %c0_i32_0 = arith.constant 0 : i32
    %c0_i32_1 = arith.constant 0 : i32
    return %c0_i32, %c0_i32_0 : i32, i32
  }
  func.func @transform_7(%arg0: i32) -> (i32, i32) {
    %c0_i32 = arith.constant 0 : i32
    %c0_i32_0 = arith.constant 0 : i32
    %c0_i32_1 = arith.constant 0 : i32
    return %c0_i32, %c0_i32_0 : i32, i32
  }
  func.func @transform_8(%arg0: i32) -> (i32, i32) {
    %c0_i32 = arith.constant 0 : i32
    %c0_i32_0 = arith.constant 0 : i32
    %c0_i32_1 = arith.constant 0 : i32
    return %c0_i32, %c0_i32_0 : i32, i32
  }
  func.func @transform_9(%arg0: i32) -> (i32, i32, i32) {
    %c0_i32 = arith.constant 0 : i32
    %c0_i32_0 = arith.constant 0 : i32
    %c0_i32_1 = arith.constant 0 : i32
    return %arg0, %c0_i32, %c0_i32_0 : i32, i32, i32
  }
}

</mosaic_0001>

<bundles_post_ra>
// kernel: g_c2n_forward.1
= control target key start
LH: loop header
LB: loop body
LE: loop exit
PB: predicated region body
PF: predicated region fallthrough
CT: control target
= control target key end

     0   :  { %s3964_s30 = smov 0   ;;  %s6978_s0 = inlined_call_operand.vmem [shape: f32[2,3,256], index: 0, kind: input, shape index: {}]   ;;  %s6979_s1 = inlined_call_operand.vmem [shape: f32[32,72], index: 1, kind: input, shape index: {}]   ;;  %s6980_s2 = inlined_call_operand.vmem [shape: f32[32,1], index: 2, kind: input, shape index: {}]   ;;  %s6981_s3 = inlined_call_operand.vmem [shape: f32[64,128], index: 3, kind: input, shape index: {}]   ;;  %s6982_s4 = inlined_call_operand.vmem [shape: f32[64,1], index: 4, kind: input, shape index: {}]   ;;  %s6983_s5 = inlined_call_operand.vmem [shape: f32[3,1024], index: 5, kind: input, shape index: {}]   ;;  %s6984_s6 = inlined_call_operand.vmem [shape: f32[3,1], index: 6, kind: input, shape index: {}]   ;;  %s6985_s7 = inlined_call_operand.vmem [shape: f32[1,301], index: 7, kind: input, shape index: {}]   ;;  %s6986_s8 = inlined_call_operand.vmem [shape: f32[1,321], index: 8, kind: input, shape index: {}]   ;;  %s6987_s9 = inlined_call_operand.vmem [shape: f32[2,3,304], index: 9, kind: output, shape index: {}]  }
   0x1 LB: > { %s3534_s10 = sadd.s32 4294967295, %s3879_s30   ;;  %p3538_p0 = scmp.ge.s32.totalorder %s3879_s30, 1  ;;  %s3879_s30 = sphi %s3964_s30, %s19_s30  }
   0x2   : > { %p287_p1 = scmp.lt.s32.totalorder %s3879_s30, 3 }
   0x4   : > { %p288_p2 = pnand %p3538_p0, %p287_p1 }
   0x6   : > { %291 = sbr.rel (%p288_p2) target bundleno = 2300 (0x8fc), region = 56 }
   0xb   : > { %p323_p3 = scmp.lt.s32.totalorder %s3534_s10, 1  ;;  %v3881_v0 = vmov 0   ;;  %v3882_v1 = vmov 0.0   ;;  %vm335_vm0 = vcmask 703488   ;;  %s3883_s15 = smov 41   ;;  %v533_v4 = vld [vmem:[%s6980_s2 + $0x18] sm:$0xff] }
   0xc   : > { %3840 = vset.pattern.permute.xlu0 %v3881_v0  ;;  %3841 = vset.pattern.permute.xlu1 %v3881_v0  ;;  %334 = vst [vmem:[#allocation2 + $0x8] sm:$0xff] %v3882_v1  ;;  %333 = vst [vmem:[#allocation2] sm:$0xff] %v3882_v1  ;;  %s3884_s16 = smov 35   ;;  %s3885_s17 = smov 20   ;;  %v532_v5 = vld [vmem:[%s6980_s2 + $0x10] sm:$0xff]  ;;  %v530_v6 = vld [vmem:[%s6980_s2] sm:$0xff] }
   0xd   : > { %s7805_s10 = smov (!%p323_p3, %s3534_s10), 1  ;;  %631 = vmatprep.mubr.f32.mxu0 %v3882_v1  ;;  %336 = vst.msk [vmem:[#allocation2 + $0x10] sm:$0xff] %vm335_vm0, %v3882_v1  ;;  %s3886_s18 = smov 38   ;;  %v531_v7 = vld [vmem:[%s6980_s2 + $0x8] sm:$0xff]  ;;  %v1026_v9 = vld [vmem:[%s6982_s4] sm:$0xff]  ;;  %v1029_v10 = vld [vmem:[%s6982_s4 + $0x18] sm:$0xff] }
   0xe   : > { %s3552_s11 = sshll.u32 %s7805_s10, 3  ;;  %s3887_s19 = smov 23   ;;  %v1027_v8 = vld [vmem:[%s6982_s4 + $0x8] sm:$0xff]  ;;  %v1028_v11 = vld [vmem:[%s6982_s4 + $0x10] sm:$0xff]  ;;  %v1030_v13 = vld [vmem:[%s6982_s4 + $0x20] sm:$0xff]  ;;  %vm369_vm1 = vcmask 18432  }
   0xf   : > { %s327_s14 = scalar_lea.vmem %s6978_s0, %s3552_s11  ;;  %s3888_s20 = smov 44   ;;  %v1031_v12 = vld [vmem:[%s6982_s4 + $0x28] sm:$0xff]  ;;  %v1033_v14 = vld [vmem:[%s6982_s4 + $0x38] sm:$0xff]  ;;  %v1032_v15 = vld [vmem:[%s6982_s4 + $0x30] sm:$0xff]  ;;  %vm342_vm2 = vcmask 288928   ;;  %vm374_vm3 = vcmask 174128  }
  0x10   : > { %v337_v2 = vld [vmem:[%s327_s14] sm:$0x77]  ;;  %s3889_s21 = smov 56   ;;  %s3890_s22 = smov 47   ;;  %vm379_vm4 = vcmask 329928   ;;  %vm347_vm5 = vcmask 444728  }
  0x11   : > { %376 = vrot.lane.b32.xlu1 %v337_v2, %s3883_s15  ;;  %364 = vrot.lane.b32.xlu0 %v337_v2, %s3884_s16  ;;  %v381_v3 = vcombine.high %v337_v2, %v337_v2  ;;  %s3891_s23 = smov 50   ;;  %s3892_s24 = smov 26   ;;  %vm385_vm6 = vcmask 485728   ;;  %vm407_vm7 = vcmask 59392   ;;  %vm390_vm8 = vcmask 641528   ;;  %v4046_v34 = vld [vmem:[%s6979_s1] sm:$0xff] }
  0x12   : > { %s3893_s25 = smov 29   ;;  %s3894_s26 = smov 59   ;;  %vm395_vm9 = vcmask 797328   ;;  %vm352_vm10 = vcmask 600528   ;;  %vm357_vm11 = vcmask 756328   ;;  %vm412_vm12 = vcmask 215128  }
  0x13   : > { %s3895_s27 = smov 62   ;;  %s3896_s28 = smov 53   ;;  %vm417_vm13 = vcmask 370928   ;;  %vm400_vm14 = vcmask 953128   ;;  %vm405_vm15 = vcmask 1043392   ;;  %vm422_vm0 = vcmask 526728  }
  0x14   : > { %s3897_s29 = smov 65   ;;  %s3898_s11 = smov 32   ;;  %v527_v0 = vld [vmem:[%s6979_s1 + $0x8] sm:$0xff] }
  0x15   : > { %339 = vrot.lane.b32.xlu1 %v337_v2, %s3885_s17  ;;  %371 = vrot.lane.b32.xlu0 %v337_v2, %s3886_s18  ;;  %s3908_s16 = smov 106   ;;  %s3909_s18 = smov 70  }
  0x19   : > { %344 = vrot.lane.b32.xlu1 %v337_v2, %s3887_s19  ;;  %382 = vrot.lane.b32.xlu0 %v381_v3, %s3888_s20  ;;  %s3899_s19 = smov 88   ;;  %s3900_s20 = smov 89  }
  0x1d   : > { %402 = vrot.lane.b32.xlu1 %v381_v3, %s3889_s21  ;;  %387 = vrot.lane.b32.xlu0 %v381_v3, %s3890_s22  ;;  %s3901_s21 = smov 90   ;;  %s3902_s22 = smov 107  }
  0x21   : > { %392 = vrot.lane.b32.xlu1 %v381_v3, %s3891_s23  ;;  %349 = vrot.lane.b32.xlu0 %v337_v2, %s3892_s24  ;;  %s3903_s23 = smov 108   ;;  %s3910_s24 = smov 71  }
  0x25   : > { %354 = vrot.lane.b32.xlu1 %v337_v2, %s3893_s25  ;;  %409 = vrot.lane.b32.xlu0 %v381_v3, %s3894_s26  ;;  %s3904_s26 = smov 109   ;;  %s3911_s25 = smov 87  }
  0x29   : > { %414 = vrot.lane.b32.xlu1 %v381_v3, %s3895_s27  ;;  %397 = vrot.lane.b32.xlu0 %v381_v3, %s3896_s28  ;;  %s3905_s27 = smov 126   ;;  %s3906_s28 = smov 127  }
  0x2d   : > { %419 = vrot.lane.b32.xlu1 %v381_v3, %s3897_s29  ;;  %359 = vrot.lane.b32.xlu0 %v337_v2, %s3898_s11  ;;  %v528_v3 = vld [vmem:[%s6979_s1 + $0x10] sm:$0xff]  ;;  %s3912_s29 = smov 68  }
  0x31   : > { %551 = vperm.xlu0 %3840, %v533_v4   ;;  %546 = vperm.xlu1 %3841, %v532_v5  }
  0x35   : > { %536 = vperm.xlu0 %3840, %v530_v6   ;;  %541 = vperm.xlu1 %3841, %v531_v7   ;;  %v529_v7 = vld [vmem:[%s6979_s1 + $0x18] sm:$0xff] }
  0x39   : > { %1041 = vperm.xlu0 %3840, %v1027_v8   ;;  %1036 = vperm.xlu1 %3841, %v1026_v9  }
  0x3d   : > { %1051 = vperm.xlu0 %3840, %v1029_v10   ;;  %1046 = vperm.xlu1 %3841, %v1028_v11  }
  0x41   : > { %1061 = vperm.xlu0 %3840, %v1031_v12   ;;  %1056 = vperm.xlu1 %3841, %v1030_v13  }
  0x45   : > { %1071 = vperm.xlu0 %3840, %v1033_v14   ;;  %1066 = vperm.xlu1 %3841, %v1032_v15  }
  0x83   : > { %v377_v16 = vpop.permute.xlu1 %376  ;;  %v365_v17 = vpop.permute.xlu0 %364 }
  0x84   : > { %370 = vst.msk [vmem:[#allocation2 + $0x8] sm:$0x7] %vm369_vm1, %v365_v17  ;;  %vm362_vm1 = vcmask 912128  }
  0x87   : > { %v340_v18 = vpop.permute.xlu1 %339  ;;  %v372_v19 = vpop.permute.xlu0 %371 }
  0x88   : > { %343 = vst.msk [vmem:[#allocation2] sm:$0x7] %vm342_vm2, %v340_v18  ;;  %vm367_vm2 = vcmask 1043352  }
  0x89   : > { %375 = vst.msk [vmem:[#allocation2 + $0x8] sm:$0x7] %vm374_vm3, %v372_v19  ;;  %vm554_vm3 = vcmask 588800  }
  0x8a   : > { %380 = vst.msk [vmem:[#allocation2 + $0x8] sm:$0x7] %vm379_vm4, %v377_v16  ;;  %3748 = vmatprep.mubr.msk.f32.mxu1 %vm554_vm3, %v4046_v34  ;;  %vm520_vm4 = vcmask 719872  }
  0x8b   : > { %v345_v20 = vpop.permute.xlu1 %344  ;;  %v383_v21 = vpop.permute.xlu0 %382 }
  0x8c   : > { %348 = vst.msk [vmem:[#allocation2] sm:$0x7] %vm347_vm5, %v345_v20  ;;  %vm508_vm5 = vcmask 728064  }
  0x8d   : > { %386 = vst.msk [vmem:[#allocation2 + $0x8] sm:$0x7] %vm385_vm6, %v383_v21  ;;  %vm496_vm6 = vcmask 736256  }
  0x8f   : > { %v403_v22 = vpop.permute.xlu1 %402  ;;  %v388_v23 = vpop.permute.xlu0 %387 }
  0x90   : > { %408 = vst.msk [vmem:[#allocation2 + $0x10] sm:$0x7] %vm407_vm7, %v403_v22  ;;  %vm484_vm7 = vcmask 875520  }
  0x91   : > { %391 = vst.msk [vmem:[#allocation2 + $0x8] sm:$0x7] %vm390_vm8, %v388_v23  ;;  %vm472_vm8 = vcmask 883712  }
  0x93   : > { %v393_v24 = vpop.permute.xlu1 %392  ;;  %v350_v25 = vpop.permute.xlu0 %349 }
  0x94   : > { %396 = vst.msk [vmem:[#allocation2 + $0x8] sm:$0x7] %vm395_vm9, %v393_v24  ;;  %vm460_vm9 = vcmask 891904  }
  0x95   : > { %353 = vst.msk [vmem:[#allocation2] sm:$0x7] %vm352_vm10, %v350_v25  ;;  %vm448_vm10 = vcmask 1031168  }
  0x97   : > { %v355_v26 = vpop.permute.xlu1 %354  ;;  %v410_v27 = vpop.permute.xlu0 %409 }
  0x98   : > { %358 = vst.msk [vmem:[#allocation2] sm:$0x7] %vm357_vm11, %v355_v26  ;;  %vm436_vm11 = vcmask 1039360  }
  0x99   : > { %413 = vst.msk [vmem:[#allocation2 + $0x10] sm:$0x7] %vm412_vm12, %v410_v27  ;;  %vm782_vm12 = vcmask 162816  }
  0x9a   : > { %783 = vst.msk [vmem:[#allocation3] sm:$0xff] %vm782_vm12, %v3882_v1  ;;  %784 = vst.msk [vmem:[#allocation3 + $0x18] sm:$0xff] %vm782_vm12, %v3882_v1 }
  0x9b   : > { %v415_v28 = vpop.permute.xlu1 %414  ;;  %v398_v29 = vpop.permute.xlu0 %397  ;;  %785 = vst.msk [vmem:[#allocation3 + $0x30] sm:$0xff] %vm782_vm12, %v3882_v1  ;;  %786 = vst.msk [vmem:[#allocation3 + $0x48] sm:$0xff] %vm782_vm12, %v3882_v1 }
  0x9c   : > { %418 = vst.msk [vmem:[#allocation2 + $0x10] sm:$0x7] %vm417_vm13, %v415_v28  ;;  %v755_v28 = vlaneseq  ;;  %vm843_vm13 = vcmask 1047712  }
  0x9d   : > { %401 = vst.msk [vmem:[#allocation2 + $0x8] sm:$0x7] %vm400_vm14, %v398_v29  ;;  %vm846_vm14 = vcmask 531456  }
  0x9e   : > { %406 = vst.msk [vmem:[#allocation2 + $0x8] sm:$0x7] %vm405_vm15, %v403_v22  ;;  %v4145_v29 = vshrl.u32 %v755_v28, 7  ;;  %vm857_vm15 = vcmask 704008  }
  0x9f   : > { %v420_v30 = vpop.permute.xlu1 %419  ;;  %v360_v31 = vpop.permute.xlu0 %359  ;;  %1357 = vst.msk [vmem:[#allocation4] sm:$0xff] %vm782_vm12, %v3882_v1  ;;  %1358 = vst.msk [vmem:[#allocation4 + $0x18] sm:$0xff] %vm782_vm12, %v3882_v1 }
  0xa0   : > { %423 = vst.msk [vmem:[#allocation2 + $0x10] sm:$0x7] %vm422_vm0, %v420_v30  ;;  %v6990_v30 = vsub.s32 2, %v4145_v29  ;;  %vm1479_vm0 = vcmask 695296  }
  0xa1   : > { %363 = vst.msk [vmem:[#allocation2] sm:$0x7] %vm362_vm1, %v360_v31  ;;  %v753_v31 = vld [vmem:[%s6985_s7] sm:$0x7]  ;;  %vm1502_vm1 = vcmask 884392  }
  0xa2   : > { %368 = vst.msk [vmem:[#allocation2] sm:$0x7] %vm367_vm2, %v365_v17  ;;  %vm2845_vm2 = vcmask 556032  }
  0xa3   : > { %1359 = vst.msk [vmem:[#allocation4 + $0x30] sm:$0xff] %vm782_vm12, %v3882_v1  ;;  %1360 = vst.msk [vmem:[#allocation4 + $0x48] sm:$0xff] %vm782_vm12, %v3882_v1 }
  0xa4   : > { %1361 = vst.msk [vmem:[#allocation4 + $0x60] sm:$0xff] %vm782_vm12, %v3882_v1  ;;  %1362 = vst.msk [vmem:[#allocation4 + $0x78] sm:$0xff] %vm782_vm12, %v3882_v1 }
  0xa5   : > { %v4062_v35 = vld [vmem:[#allocation2 + $0x8] sm:$0xff]  ;;  %1363 = vst.msk [vmem:[#allocation4 + $0x90] sm:$0xff] %vm782_vm12, %v3882_v1  ;;  %1364 = vst.msk [vmem:[#allocation4 + $0xa8] sm:$0xff] %vm782_vm12, %v3882_v1 }
  0xa7   : > { %v4019_v32 = vld [vmem:[#allocation2 + $0x10] sm:$0xff] }
  0xa8   : > { %518 = vrot.lane.b32.xlu1 %v4019_v32, %s3899_s19 }
  0xa9   : > { %v4023_v33 = vld [vmem:[#allocation2] sm:$0xff] }
  0xaa   : > { %514 = vrot.lane.b32.xlu0 %v4023_v33, %s3899_s19 }
  0xac   : > { %502 = vrot.lane.b32.xlu1 %v4023_v33, %s3900_s20  ;;  %v4080_v36 = vpop.permute.xlu1 %546  ;;  %v4082_v37 = vpop.permute.xlu0 %551 }
  0xae   : > { %506 = vrot.lane.b32.xlu0 %v4019_v32, %s3900_s20 }
  0xb0   : > { %494 = vrot.lane.b32.xlu1 %v4019_v32, %s3901_s21  ;;  %v4084_v38 = vpop.permute.xlu1 %541  ;;  %v4086_v39 = vpop.permute.xlu0 %536 }
  0xb2   : > { %490 = vrot.lane.b32.xlu0 %v4023_v33, %s3901_s21 }
  0xb4   : > { %478 = vrot.lane.b32.xlu1 %v4023_v33, %s3902_s22  ;;  %v4088_v40 = vpop.permute.xlu1 %1036  ;;  %v4090_v41 = vpop.permute.xlu0 %1041 }
  0xb6   : > { %482 = vrot.lane.b32.xlu0 %v4019_v32, %s3902_s22 }
  0xb8   : > { %470 = vrot.lane.b32.xlu1 %v4019_v32, %s3903_s23  ;;  %v4092_v42 = vpop.permute.xlu1 %1046  ;;  %v4094_v43 = vpop.permute.xlu0 %1051 }
  0xba   : > { %466 = vrot.lane.b32.xlu0 %v4023_v33, %s3903_s23 }
  0xbc   : > { %454 = vrot.lane.b32.xlu1 %v4023_v33, %s3904_s26  ;;  %v4096_v44 = vpop.permute.xlu1 %1056  ;;  %v4098_v45 = vpop.permute.xlu0 %1061 }
  0xbe   : > { %458 = vrot.lane.b32.xlu0 %v4019_v32, %s3904_s26 }
  0xc0   : > { %446 = vrot.lane.b32.xlu1 %v4019_v32, %s3905_s27  ;;  %v4100_v46 = vpop.permute.xlu1 %1066  ;;  %v4102_v47 = vpop.permute.xlu0 %1071 }
  0xc2   : > { %442 = vrot.lane.b32.xlu0 %v4023_v33, %s3905_s27 }
  0xc4   : > { %430 = vrot.lane.b32.xlu1 %v4023_v33, %s3906_s28 }
  0xc6   : > { %434 = vrot.lane.b32.xlu0 %v4019_v32, %s3906_s28 }
  0xc8   : > { %504 = vrot.lane.b32.xlu1 %v4062_v35, %s3900_s20 }
  0xca   : > { %516 = vrot.lane.b32.xlu0 %v4062_v35, %s3899_s19 }
  0xcc   : > { %480 = vrot.lane.b32.xlu1 %v4062_v35, %s3902_s22 }
  0xce   : > { %492 = vrot.lane.b32.xlu0 %v4062_v35, %s3901_s21 }
  0xd0   : > { %456 = vrot.lane.b32.xlu1 %v4062_v35, %s3904_s26 }
  0xd2   : > { %468 = vrot.lane.b32.xlu0 %v4062_v35, %s3903_s23 }
  0xd4   : > { %432 = vrot.lane.b32.xlu1 %v4062_v35, %s3906_s28 }
  0xd6   : > { %444 = vrot.lane.b32.xlu0 %v4062_v35, %s3905_s27 }
 0x11a   : > { %v519_v48 = vpop.permute.xlu1 %518 }
 0x11b   : > { %3730 = vmatprep.subr.mxu1 %v519_v48 }
 0x11c   : > { %v515_v49 = vpop.permute.xlu0 %514  ;;  %3731 = vmatpush3.msra.mxu1 %v519_v48 }
 0x11e   : > { %v503_v50 = vpop.permute.xlu1 %502 }
 0x120   : > { %v507_v51 = vpop.permute.xlu0 %506 }
 0x121   : > { %3732 = vmatprep.subr.mxu1 %v507_v51 }
 0x122   : > { %3733 = vmatpush3.msra.mxu1 %v507_v51  ;;  %v495_v52 = vpop.permute.xlu1 %494 }
 0x123   : > { %3734 = vmatprep.subr.mxu1 %v495_v52 }
 0x124   : > { %v491_v53 = vpop.permute.xlu0 %490  ;;  %3735 = vmatpush3.msra.mxu1 %v495_v52 }
 0x126   : > { %v479_v54 = vpop.permute.xlu1 %478 }
 0x128   : > { %v483_v55 = vpop.permute.xlu0 %482 }
 0x129   : > { %3736 = vmatprep.subr.mxu1 %v483_v55 }
 0x12a   : > { %3737 = vmatpush3.msra.mxu1 %v483_v55  ;;  %v471_v56 = vpop.permute.xlu1 %470 }
 0x12b   : > { %3738 = vmatprep.subr.mxu1 %v471_v56 }
 0x12c   : > { %v467_v57 = vpop.permute.xlu0 %466  ;;  %3739 = vmatpush3.msra.mxu1 %v471_v56 }
 0x12e   : > { %v455_v58 = vpop.permute.xlu1 %454 }
 0x130   : > { %v459_v59 = vpop.permute.xlu0 %458 }
 0x131   : > { %3740 = vmatprep.subr.mxu1 %v459_v59 }
 0x132   : > { %3741 = vmatpush3.msra.mxu1 %v459_v59  ;;  %v447_v60 = vpop.permute.xlu1 %446 }
 0x133   : > { %3742 = vmatprep.subr.mxu1 %v447_v60 }
 0x134   : > { %v443_v61 = vpop.permute.xlu0 %442  ;;  %3743 = vmatpush3.msra.mxu1 %v447_v60 }
 0x136   : > { %v431_v62 = vpop.permute.xlu1 %430 }
 0x138   : > { %v435_v63 = vpop.permute.xlu0 %434 }
 0x139   : > { %3744 = vmatprep.subr.mxu1 %v435_v63 }
 0x13a   : > { %3745 = vmatpush3.msra.mxu1 %v435_v63  ;;  %v505_v2 = vpop.permute.xlu1 %504 }
 0x13b   : > { %3746 = vmatprep.subr.mxu1 %v4019_v32  ;;  %v510_v9 = vsel %vm508_vm5, %v505_v2, %v507_v51  ;;  %v509_v11 = vsel %vm508_vm5, %v503_v50, %v505_v2 }
 0x13c   : > { %3747 = vmatpush3.msra.mxu1 %v4019_v32  ;;  %v517_v4 = vpop.permute.xlu0 %516 }
 0x13d   : > { %3749 = vmatmul.mubr.msk.f32.vlgmr.msra.gmra.mxu1 %vm554_vm3, %v527_v0  ;;  %v522_v5 = vsel %vm520_vm4, %v517_v4, %v519_v48  ;;  %v521_v6 = vsel %vm520_vm4, %v515_v49, %v517_v4 }
 0x13e   : > { %581 = vmatprep.subr.mxu0 %v522_v5  ;;  %3751 = vmatprep.mubr.msk.f32.mxu1 %vm554_vm3, %v528_v3  ;;  %v481_v8 = vpop.permute.xlu1 %480 }
 0x13f   : > { %582 = vmatpush1.msra.mxu0 %v521_v6  ;;  %v486_v15 = vsel %vm484_vm7, %v481_v8, %v483_v55  ;;  %v485_v17 = vsel %vm484_vm7, %v479_v54, %v481_v8 }
 0x140   : > { %583 = vmatprep.subr.mxu0 %v510_v9  ;;  %v493_v10 = vpop.permute.xlu0 %492 }
 0x141   : > { %584 = vmatpush1.msra.mxu0 %v509_v11  ;;  %3752 = vmatmul.mubr.msk.f32.gmra.mxu1 %vm554_vm3, %v529_v7  ;;  %v498_v12 = vsel %vm496_vm6, %v493_v10, %v495_v52  ;;  %v497_v13 = vsel %vm496_vm6, %v491_v53, %v493_v10 }
 0x142   : > { %585 = vmatprep.subr.mxu0 %v498_v12  ;;  %v457_v14 = vpop.permute.xlu1 %456 }
 0x143   : > { %586 = vmatpush1.msra.mxu0 %v497_v13  ;;  %v462_v20 = vsel %vm460_vm9, %v457_v14, %v459_v59  ;;  %v461_v23 = vsel %vm460_vm9, %v455_v58, %v457_v14  ;;  %v6989_v58 = vsub.s32 0, %v4145_v29 }
 0x144   : > { %587 = vmatprep.subr.mxu0 %v486_v15  ;;  %v469_v16 = vpop.permute.xlu0 %468 }
 0x145   : > { %588 = vmatpush1.msra.mxu0 %v485_v17  ;;  %v474_v18 = vsel %vm472_vm8, %v469_v16, %v471_v56  ;;  %v473_v19 = vsel %vm472_vm8, %v467_v57, %v469_v16 }
 0x146   : > { %589 = vmatprep.subr.mxu0 %v474_v18  ;;  %v433_v21 = vpop.permute.xlu1 %432 }
 0x147   : > { %590 = vmatpush1.msra.mxu0 %v473_v19  ;;  %v438_v26 = vsel %vm436_vm11, %v433_v21, %v435_v63  ;;  %v437_v27 = vsel %vm436_vm11, %v431_v62, %v433_v21  ;;  %v758_v62 = vrot.slane %v753_v31, %v6989_v58 }
 0x148   : > { %591 = vmatprep.subr.mxu0 %v462_v20  ;;  %v445_v22 = vpop.permute.xlu0 %444 }
 0x149   : > { %592 = vmatpush1.msra.mxu0 %v461_v23  ;;  %v450_v24 = vsel %vm448_vm10, %v445_v22, %v447_v60  ;;  %v449_v25 = vsel %vm448_vm10, %v443_v61, %v445_v22 }
 0x14a   : > { %593 = vmatprep.subr.mxu0 %v450_v24 }
 0x14b   : > { %594 = vmatpush1.msra.mxu0 %v449_v25 }
 0x14c   : > { %595 = vmatprep.subr.mxu0 %v438_v26 }
 0x14d   : > { %596 = vmatpush1.msra.mxu0 %v437_v27 }
 0x14e   : > { %597 = vmatprep.subr.mxu0 %v4062_v35 }
 0x14f   : > { %598 = vmatpush1.msra.mxu0 %v4023_v33 }
 0x150   : > { %3542 = vmatmul.mubr.msk.f32.vlgmr.msra.gmra.mxu0 %vm554_vm3, %v4046_v34  ;;  %v766_v34 = vrot.slane %v753_v31, %v6990_v30 }
 0x151   : > { %637 = vmatprep.mubr.f32.mxu0 %v3882_v1 }
 0x154   : > { %3543 = vmatmul.mubr.msk.f32.gmra.mxu0 %vm554_vm3, %v527_v0 }
 0x155   : > { %643 = vmatprep.mubr.f32.mxu0 %v3882_v1 }
 0x158   : > { %3544 = vmatmul.mubr.msk.f32.gmra.mxu0 %vm554_vm3, %v528_v3  ;;  %v6988_v3 = vsub.s32 1, %v4145_v29 }
 0x159   : > { %649 = vmatprep.mubr.f32.mxu0 %v3882_v1 }
 0x15a   : > { %v762_v12 = vrot.slane %v753_v31, %v6988_v3 }
 0x15c   : > { %3545 = vmatmul.mubr.msk.f32.gmra.mxu0 %vm554_vm3, %v529_v7  ;;  %vm2489_vm3 = vcmask 711680  }
 0x15d   : > { %1138 = vmatprep.mubr.f32.mxu0 %v3882_v1 }
 0x1fd   : > { %v3750_v32 = vpop.f32.mrf.mxu1 }
 0x1fe   : > { %v728_v33 = vadd.f32 %v3750_v32, %v4084_v38 }
 0x1ff   : > { %v722_v35 = vpop.f32.mrf.mxu1 }
 0x200   : > { %v746_v48 = vmax.f32 %v728_v33, 0.0  ;;  %v723_v49 = vadd.f32 %v722_v35, %v4086_v39 }
 0x201   : > { %v3753_v50 = vpop.f32.mrf.mxu1 }
 0x202   : > { %v775_v51 = vmul.f32 %v766_v34, %v746_v48  ;;  %v743_v52 = vmax.f32 %v723_v49, 0.0  ;;  %v738_v60 = vadd.f32 %v3753_v50, %v4082_v37 }
 0x203   : > { %v732_v53 = vpop.f32.mrf.mxu1 }
 0x204   : > { %v772_v54 = vmul.f32 %v766_v34, %v743_v52  ;;  %v733_v55 = vadd.f32 %v732_v53, %v4080_v36  ;;  %809 = vrot.lane.b32.xlu0 %v775_v51, %s3885_s17  ;;  %v752_v5 = vmax.f32 %v738_v60, 0.0 }
 0x206   : > { %v749_v56 = vmax.f32 %v733_v55, 0.0  ;;  %803 = vrot.lane.b32.xlu1 %v772_v54, %s3885_s17  ;;  %v781_v14 = vmul.f32 %v766_v34, %v752_v5 }
 0x208   : > { %v778_v57 = vmul.f32 %v766_v34, %v749_v56 }
 0x20a   : > { %815 = vrot.lane.b32.xlu1 %v778_v57, %s3885_s17 }
 0x210   : > { %v633_v59 = vpop.f32.mrf.mxu0 }
 0x211   : > { %v634_v61 = vadd.f32 %v633_v59, %v4086_v39 }
 0x212   : > { %v635_v63 = vpop.f32.mrf.mxu0 }
 0x213   : > { %v741_v0 = vmax.f32 %v634_v61, 0.0  ;;  %v636_v2 = vadd.f32 %v635_v63, %v4086_v39 }
 0x214   : > { %v639_v4 = vpop.f32.mrf.mxu0 }
 0x215   : > { %v770_v6 = vmul.f32 %v758_v62, %v741_v0  ;;  %v640_v7 = vadd.f32 %v639_v4, %v4084_v38  ;;  %v742_v11 = vmax.f32 %v636_v2, 0.0 }
 0x216   : > { %v641_v8 = vpop.f32.mrf.mxu0 }
 0x217   : > { %v744_v9 = vmax.f32 %v640_v7, 0.0  ;;  %v642_v10 = vadd.f32 %v641_v8, %v4084_v38  ;;  %799 = vrot.lane.b32.xlu0 %v770_v6, %s3885_s17  ;;  %v771_v18 = vmul.f32 %v762_v12, %v742_v11  ;;  %v4330_v11 = vld [vmem:[%s6981_s3] sm:$0xff] }
 0x218   : > { %v645_v13 = vpop.f32.mrf.mxu0  ;;  %3786 = vmatprep.mubr.f32.mxu1 %v4330_v11 }
 0x219   : > { %v773_v39 = vmul.f32 %v758_v62, %v744_v9  ;;  %v745_v15 = vmax.f32 %v642_v10, 0.0  ;;  %v646_v16 = vadd.f32 %v645_v13, %v4080_v36 }
 0x21a   : > { %v647_v17 = vpop.f32.mrf.mxu0 }
 0x21b   : > { %805 = vrot.lane.b32.xlu1 %v773_v39, %s3885_s17  ;;  %821 = vrot.lane.b32.xlu0 %v781_v14, %s3885_s17  ;;  %v774_v38 = vmul.f32 %v762_v12, %v745_v15  ;;  %v747_v20 = vmax.f32 %v646_v16, 0.0  ;;  %v648_v21 = vadd.f32 %v647_v17, %v4080_v36 }
 0x21c   : > { %v651_v19 = vpop.f32.mrf.mxu0 }
 0x21d   : > { %v652_v22 = vadd.f32 %v651_v19, %v4082_v37  ;;  %v776_v26 = vmul.f32 %v758_v62, %v747_v20  ;;  %v748_v27 = vmax.f32 %v648_v21, 0.0 }
 0x21e   : > { %v653_v23 = vpop.f32.mrf.mxu0 }
 0x21f   : > { %v750_v24 = vmax.f32 %v652_v22, 0.0  ;;  %v654_v25 = vadd.f32 %v653_v23, %v4082_v37  ;;  %807 = vrot.lane.b32.xlu1 %v774_v38, %s3885_s17  ;;  %801 = vrot.lane.b32.xlu0 %v771_v18, %s3885_s17  ;;  %v777_v32 = vmul.f32 %v762_v12, %v748_v27 }
 0x221   : > { %v779_v28 = vmul.f32 %v758_v62, %v750_v24  ;;  %v751_v31 = vmax.f32 %v654_v25, 0.0 }
 0x223   : > { %817 = vrot.lane.b32.xlu1 %v779_v28, %s3885_s17  ;;  %811 = vrot.lane.b32.xlu0 %v776_v26, %s3885_s17  ;;  %v780_v36 = vmul.f32 %v762_v12, %v751_v31 }
 0x227   : > { %819 = vrot.lane.b32.xlu1 %v780_v36, %s3885_s17  ;;  %813 = vrot.lane.b32.xlu0 %v777_v32, %s3885_s17 }
 0x276   : > { %v810_v37 = vpop.permute.xlu0 %809 }
 0x278   : > { %v804_v33 = vpop.permute.xlu1 %803 }
 0x27c   : > { %v816_v34 = vpop.permute.xlu1 %815 }
 0x289   : > { %v800_v35 = vpop.permute.xlu0 %799 }
 0x28a   : > { %844 = vst.msk [vmem:[#allocation3] sm:$0xff] %vm843_vm13, %v800_v35 }
 0x28d   : > { %v806_v48 = vpop.permute.xlu1 %805  ;;  %v822_v49 = vpop.permute.xlu0 %821 }
 0x28e   : > { %848 = vst.msk [vmem:[#allocation3 + $0x18] sm:$0xff] %vm843_vm13, %v806_v48 }
 0x291   : > { %v808_v50 = vpop.permute.xlu1 %807  ;;  %v802_v51 = vpop.permute.xlu0 %801  ;;  %v4209_v52 = vld [vmem:[#allocation3] sm:$0xff] }
 0x292   : > { %v4212_v53 = vsel %vm782_vm12, %v806_v48, %v808_v50  ;;  %v826_v54 = vsel %vm782_vm12, %v808_v50, %v810_v37  ;;  %v4216_v55 = vsel %vm782_vm12, %v800_v35, %v802_v51  ;;  %v824_v56 = vsel %vm782_vm12, %v802_v51, %v804_v33  ;;  %974 = vrot.lane.b32.xlu0 %v4209_v52, %s3903_s23 }
 0x293   : > { %850 = vst.msk [vmem:[#allocation3 + $0x28] sm:$0xff] %vm846_vm14, %v826_v54  ;;  %847 = vst.msk [vmem:[#allocation3 + $0x10] sm:$0xff] %vm846_vm14, %v824_v56  ;;  %886 = vrot.lane.b32.xlu1 %v4209_v52, %s3906_s28 }
 0x294   : > { %859 = vst.msk [vmem:[#allocation3 + $0x28] sm:$0xff] %vm857_vm15, %v3882_v1  ;;  %858 = vst.msk [vmem:[#allocation3 + $0x10] sm:$0xff] %vm857_vm15, %v3882_v1 }
 0x295   : > { %v818_v57 = vpop.permute.xlu1 %817  ;;  %v812_v59 = vpop.permute.xlu0 %811  ;;  %v4259_v5 = vld [vmem:[#allocation3 + $0x18] sm:$0xff] }
 0x296   : > { %854 = vst.msk [vmem:[#allocation3 + $0x48] sm:$0xff] %vm843_vm13, %v818_v57  ;;  %851 = vst.msk [vmem:[#allocation3 + $0x30] sm:$0xff] %vm843_vm13, %v812_v59  ;;  %888 = vrot.lane.b32.xlu0 %v4216_v55, %s3906_s28 }
 0x297   : > { %930 = vrot.lane.b32.xlu1 %v4209_v52, %s3904_s26 }
 0x299   : > { %v820_v60 = vpop.permute.xlu1 %819  ;;  %v814_v61 = vpop.permute.xlu0 %813 }
 0x29a   : > { %v4236_v62 = vsel %vm782_vm12, %v818_v57, %v820_v60  ;;  %v830_v63 = vsel %vm782_vm12, %v820_v60, %v822_v49  ;;  %v4240_v0 = vsel %vm782_vm12, %v812_v59, %v814_v61  ;;  %v828_v2 = vsel %vm782_vm12, %v814_v61, %v816_v34  ;;  %932 = vrot.lane.b32.xlu0 %v4216_v55, %s3904_s26 }
 0x29b   : > { %856 = vst.msk [vmem:[#allocation3 + $0x58] sm:$0xff] %vm846_vm14, %v830_v63  ;;  %853 = vst.msk [vmem:[#allocation3 + $0x40] sm:$0xff] %vm846_vm14, %v828_v2  ;;  %v4247_v4 = vld [vmem:[#allocation3 + $0x10] sm:$0xff]  ;;  %v4267_v6 = vld [vmem:[#allocation3 + $0x28] sm:$0xff] }
 0x29c   : > { %861 = vst.msk [vmem:[#allocation3 + $0x58] sm:$0xff] %vm857_vm15, %v3882_v1  ;;  %860 = vst.msk [vmem:[#allocation3 + $0x40] sm:$0xff] %vm857_vm15, %v3882_v1  ;;  %890 = vrot.lane.b32.xlu1 %v4247_v4, %s3906_s28 }
 0x29d   : > { %v4279_v7 = vld [vmem:[#allocation3 + $0x30] sm:$0xff]  ;;  %v4297_v9 = vld [vmem:[#allocation3 + $0x48] sm:$0xff] }
 0x29e   : > { %976 = vrot.lane.b32.xlu0 %v4216_v55, %s3903_s23 }
 0x2a0   : > { %934 = vrot.lane.b32.xlu1 %v4247_v4, %s3904_s26 }
 0x2a2   : > { %892 = vrot.lane.b32.xlu0 %v4259_v5, %s3906_s28 }
 0x2a3   : > { %v4289_v8 = vld [vmem:[#allocation3 + $0x40] sm:$0xff]  ;;  %v4311_v10 = vld [vmem:[#allocation3 + $0x58] sm:$0xff] }
 0x2a4   : > { %980 = vrot.lane.b32.xlu1 %v4259_v5, %s3903_s23 }
 0x2a6   : > { %936 = vrot.lane.b32.xlu0 %v4259_v5, %s3904_s26 }
 0x2a8   : > { %978 = vrot.lane.b32.xlu1 %v4247_v4, %s3903_s23 }
 0x2aa   : > { %896 = vrot.lane.b32.xlu0 %v4267_v6, %s3906_s28 }
 0x2ac   : > { %894 = vrot.lane.b32.xlu1 %v4212_v53, %s3906_s28 }
 0x2ae   : > { %940 = vrot.lane.b32.xlu0 %v4267_v6, %s3904_s26 }
 0x2b0   : > { %938 = vrot.lane.b32.xlu1 %v4212_v53, %s3904_s26 }
 0x2b2   : > { %986 = vrot.lane.b32.xlu0 %v4279_v7, %s3903_s23 }
 0x2b4   : > { %982 = vrot.lane.b32.xlu1 %v4212_v53, %s3903_s23 }
 0x2b6   : > { %984 = vrot.lane.b32.xlu0 %v4267_v6, %s3903_s23 }
 0x2b8   : > { %898 = vrot.lane.b32.xlu1 %v4279_v7, %s3906_s28 }
 0x2ba   : > { %942 = vrot.lane.b32.xlu0 %v4279_v7, %s3904_s26 }
 0x2bc   : > { %902 = vrot.lane.b32.xlu1 %v4289_v8, %s3906_s28 }
 0x2be   : > { %900 = vrot.lane.b32.xlu0 %v4240_v0, %s3906_s28 }
 0x2c0   : > { %992 = vrot.lane.b32.xlu1 %v4297_v9, %s3903_s23 }
 0x2c2   : > { %988 = vrot.lane.b32.xlu0 %v4240_v0, %s3903_s23 }
 0x2c4   : > { %990 = vrot.lane.b32.xlu1 %v4289_v8, %s3903_s23 }
 0x2c6   : > { %944 = vrot.lane.b32.xlu0 %v4240_v0, %s3904_s26 }
 0x2c8   : > { %948 = vrot.lane.b32.xlu1 %v4297_v9, %s3904_s26 }
 0x2ca   : > { %904 = vrot.lane.b32.xlu0 %v4297_v9, %s3906_s28 }
 0x2cc   : > { %946 = vrot.lane.b32.xlu1 %v4289_v8, %s3904_s26 }
 0x2ce   : > { %908 = vrot.lane.b32.xlu0 %v4311_v10, %s3906_s28 }
 0x2d0   : > { %906 = vrot.lane.b32.xlu1 %v4236_v62, %s3906_s28 }
 0x2d2   : > { %996 = vrot.lane.b32.xlu0 %v4311_v10, %s3903_s23 }
 0x2d4   : > { %994 = vrot.lane.b32.xlu1 %v4236_v62, %s3903_s23 }
 0x2d6   : > { %952 = vrot.lane.b32.xlu0 %v4311_v10, %s3904_s26 }
 0x2d8   : > { %950 = vrot.lane.b32.xlu1 %v4236_v62, %s3904_s26 }
 0x304   : > { %v975_v12 = vpop.permute.xlu0 %974 }
 0x305   : > { %v4333_v13 = vpop.permute.xlu1 %886 }
 0x308   : > { %v4335_v14 = vpop.permute.xlu0 %888 }
 0x309   : > { %v4337_v39 = vpop.permute.xlu1 %930 }
 0x30c   : > { %v4339_v15 = vpop.permute.xlu0 %932 }
 0x30e   : > { %v4341_v16 = vpop.permute.xlu1 %890 }
 0x310   : > { %v977_v17 = vpop.permute.xlu0 %976 }
 0x312   : > { %v4343_v18 = vpop.permute.xlu1 %934 }
 0x314   : > { %v4345_v19 = vpop.permute.xlu0 %892 }
 0x316   : > { %v981_v38 = vpop.permute.xlu1 %980 }
 0x318   : > { %v4347_v20 = vpop.permute.xlu0 %936 }
 0x31a   : > { %v979_v21 = vpop.permute.xlu1 %978 }
 0x31c   : > { %v4349_v22 = vpop.permute.xlu0 %896 }
 0x31e   : > { %v4351_v23 = vpop.permute.xlu1 %894 }
 0x320   : > { %v941_v24 = vpop.permute.xlu0 %940 }
 0x322   : > { %v4353_v25 = vpop.permute.xlu1 %938 }
 0x324   : > { %v987_v26 = vpop.permute.xlu0 %986 }
 0x326   : > { %v983_v27 = vpop.permute.xlu1 %982 }
 0x328   : > { %v985_v28 = vpop.permute.xlu0 %984 }
 0x329   : > { %v1001_v3 = vsel %vm472_vm8, %v983_v27, %v985_v28 }
 0x32a   : > { %v4355_v31 = vpop.permute.xlu1 %898 }
 0x32c   : > { %v943_v32 = vpop.permute.xlu0 %942 }
 0x32e   : > { %v4357_v36 = vpop.permute.xlu1 %902 }
 0x330   : > { %v4359_v33 = vpop.permute.xlu0 %900 }
 0x332   : > { %v993_v37 = vpop.permute.xlu1 %992 }
 0x334   : > { %v989_v34 = vpop.permute.xlu0 %988 }
 0x335   : > { %v1002_v2 = vsel %vm472_vm8, %v987_v26, %v989_v34 }
 0x336   : > { %v991_v35 = vpop.permute.xlu1 %990 }
 0x337   : > { %v1003_v63 = vsel %vm472_vm8, %v989_v34, %v991_v35 }
 0x338   : > { %v945_v48 = vpop.permute.xlu0 %944 }
 0x33a   : > { %v949_v49 = vpop.permute.xlu1 %948 }
 0x33c   : > { %v905_v50 = vpop.permute.xlu0 %904 }
 0x33e   : > { %v947_v51 = vpop.permute.xlu1 %946 }
 0x340   : > { %v909_v54 = vpop.permute.xlu0 %908 }
 0x342   : > { %v907_v56 = vpop.permute.xlu1 %906 }
 0x344   : > { %v997_v57 = vpop.permute.xlu0 %996 }
 0x345   : > { %3754 = vmatprep.subr.mxu1 %v997_v57 }
 0x346   : > { %v995_v59 = vpop.permute.xlu1 %994  ;;  %3755 = vmatpush3.msra.mxu1 %v997_v57 }
 0x347   : > { %v1005_v60 = vsel %vm472_vm8, %v995_v59, %v997_v57  ;;  %v1004_v61 = vsel %vm472_vm8, %v993_v37, %v995_v59  ;;  %3756 = vmatprep.subr.mxu1 %v991_v35  ;;  %v1000_v37 = vsel %vm472_vm8, %v981_v38, %v983_v27  ;;  %v999_v57 = vsel %vm472_vm8, %v977_v17, %v979_v21 }
 0x348   : > { %1074 = vmatprep.subr.mxu0 %v1005_v60  ;;  %3757 = vmatpush3.msra.mxu1 %v991_v35  ;;  %v953_v30 = vpop.permute.xlu0 %952  ;;  %v998_v35 = vsel %vm472_vm8, %v975_v12, %v977_v17  ;;  %v958_v38 = vsel %vm460_vm9, %v943_v32, %v945_v48  ;;  %v957_v12 = vsel %vm460_vm9, %v4353_v25, %v941_v24 }
 0x349   : > { %1075 = vmatpush1.msra.mxu0 %v1004_v61  ;;  %3758 = vmatprep.subr.mxu1 %v985_v28  ;;  %v954_v17 = vsel %vm460_vm9, %v4337_v39, %v4339_v15  ;;  %v914_v39 = vsel %vm436_vm11, %v4355_v31, %v4359_v33 }
 0x34a   : > { %1076 = vmatprep.subr.mxu0 %v1003_v63  ;;  %3759 = vmatpush3.msra.mxu1 %v985_v28  ;;  %v951_v58 = vpop.permute.xlu1 %950 }
 0x34b   : > { %1077 = vmatpush1.msra.mxu0 %v1002_v2  ;;  %3760 = vmatprep.subr.mxu1 %v979_v21  ;;  %v961_v26 = vsel %vm460_vm9, %v951_v58, %v953_v30  ;;  %v960_v28 = vsel %vm460_vm9, %v949_v49, %v951_v58  ;;  %v955_v58 = vsel %vm460_vm9, %v4339_v15, %v4343_v18 }
 0x34c   : > { %1078 = vmatprep.subr.mxu0 %v1001_v3  ;;  %3761 = vmatpush3.msra.mxu1 %v979_v21  ;;  %v959_v3 = vsel %vm460_vm9, %v945_v48, %v947_v51  ;;  %v917_v21 = vsel %vm436_vm11, %v907_v56, %v909_v54  ;;  %v913_v15 = vsel %vm436_vm11, %v4351_v23, %v4349_v22 }
 0x34d   : > { %1079 = vmatpush1.msra.mxu0 %v1000_v37  ;;  %3762 = vmatprep.subr.mxu1 %v953_v30 }
 0x34e   : > { %1080 = vmatprep.subr.mxu0 %v999_v57  ;;  %3763 = vmatpush3.msra.mxu1 %v953_v30  ;;  %v956_v30 = vsel %vm460_vm9, %v4347_v20, %v4353_v25  ;;  %v916_v20 = vsel %vm436_vm11, %v905_v50, %v907_v56  ;;  %v911_v25 = vsel %vm436_vm11, %v4335_v14, %v4341_v16 }
 0x34f   : > { %1081 = vmatpush1.msra.mxu0 %v998_v35  ;;  %3764 = vmatprep.subr.mxu1 %v947_v51 }
 0x350   : > { %1082 = vmatprep.subr.mxu0 %v961_v26  ;;  %3765 = vmatpush3.msra.mxu1 %v947_v51 }
 0x351   : > { %1083 = vmatpush1.msra.mxu0 %v960_v28  ;;  %3766 = vmatprep.subr.mxu1 %v941_v24 }
 0x352   : > { %1084 = vmatprep.subr.mxu0 %v959_v3  ;;  %3767 = vmatpush3.msra.mxu1 %v941_v24  ;;  %v912_v24 = vsel %vm436_vm11, %v4345_v19, %v4351_v23 }
 0x353   : > { %1085 = vmatpush1.msra.mxu0 %v958_v38  ;;  %3768 = vmatprep.subr.mxu1 %v4343_v18 }
 0x354   : > { %1086 = vmatprep.subr.mxu0 %v957_v12  ;;  %3769 = vmatpush3.msra.mxu1 %v4343_v18  ;;  %v915_v18 = vsel %vm436_vm11, %v4359_v33, %v4357_v36  ;;  %v7182_v33 = vsub.s32 1, %v4145_v29 }
 0x355   : > { %1087 = vmatpush1.msra.mxu0 %v956_v30  ;;  %3770 = vmatprep.subr.mxu1 %v909_v54 }
 0x356   : > { %1088 = vmatprep.subr.mxu0 %v955_v58  ;;  %3771 = vmatpush3.msra.mxu1 %v909_v54 }
 0x357   : > { %1089 = vmatpush1.msra.mxu0 %v954_v17  ;;  %3772 = vmatprep.subr.mxu1 %v4357_v36 }
 0x358   : > { %1090 = vmatprep.subr.mxu0 %v917_v21  ;;  %3773 = vmatpush3.msra.mxu1 %v4357_v36 }
 0x359   : > { %1091 = vmatpush1.msra.mxu0 %v916_v20  ;;  %3774 = vmatprep.subr.mxu1 %v4349_v22 }
 0x35a   : > { %1092 = vmatprep.subr.mxu0 %v915_v18  ;;  %3775 = vmatpush3.msra.mxu1 %v4349_v22  ;;  %v910_v22 = vsel %vm436_vm11, %v4333_v13, %v4335_v14  ;;  %v1019_v13 = vld [vmem:[%s6981_s3 + $0x8] sm:$0xff] }
 0x35b   : > { %1093 = vmatpush1.msra.mxu0 %v914_v39  ;;  %3776 = vmatprep.subr.mxu1 %v4341_v16 }
 0x35c   : > { %1094 = vmatprep.subr.mxu0 %v913_v15  ;;  %3777 = vmatpush3.msra.mxu1 %v4341_v16  ;;  %v7181_v16 = vsub.s32 0, %v4145_v29 }
 0x35d   : > { %1095 = vmatpush1.msra.mxu0 %v912_v24  ;;  %3778 = vmatprep.subr.mxu1 %v4311_v10 }
 0x35e   : > { %1096 = vmatprep.subr.mxu0 %v911_v25  ;;  %3779 = vmatpush3.msra.mxu1 %v4311_v10 }
 0x35f   : > { %1097 = vmatpush1.msra.mxu0 %v910_v22  ;;  %3780 = vmatprep.subr.mxu1 %v4289_v8 }
 0x360   : > { %1098 = vmatprep.subr.mxu0 %v4236_v62  ;;  %3781 = vmatpush3.msra.mxu1 %v4289_v8  ;;  %v1020_v62 = vld [vmem:[%s6981_s3 + $0x10] sm:$0xff] }
 0x361   : > { %1099 = vmatpush1.msra.mxu0 %v4297_v9  ;;  %3782 = vmatprep.subr.mxu1 %v4267_v6 }
 0x362   : > { %1100 = vmatprep.subr.mxu0 %v4240_v0  ;;  %3783 = vmatpush3.msra.mxu1 %v4267_v6  ;;  %v1021_v0 = vld [vmem:[%s6981_s3 + $0x18] sm:$0xff]  ;;  %v1022_v6 = vld [vmem:[%s6981_s3 + $0x20] sm:$0xff] }
 0x363   : > { %1101 = vmatpush1.msra.mxu0 %v4279_v7  ;;  %3784 = vmatprep.subr.mxu1 %v4247_v4  ;;  %v7180_v7 = vsub.s32 2, %v4145_v29 }
 0x364   : > { %1102 = vmatprep.subr.mxu0 %v4212_v53  ;;  %3785 = vmatpush3.msra.mxu1 %v4247_v4  ;;  %v1023_v53 = vld [vmem:[%s6981_s3 + $0x28] sm:$0xff]  ;;  %v1316_v4 = vld [vmem:[%s6986_s8] sm:$0x7] }
 0x365   : > { %1103 = vmatpush1.msra.mxu0 %v4259_v5  ;;  %3787 = vmatmul.mubr.f32.vlgmr.msra.gmra.mxu1 %v1019_v13  ;;  %v4462_v8 = vrot.slane %v1316_v4, %v7180_v7  ;;  %v4467_v19 = vrot.slane %v1316_v4, %v7181_v16  ;;  %v4474_v34 = vrot.slane %v1316_v4, %v7182_v33 }
 0x366   : > { %1104 = vmatprep.subr.mxu0 %v4216_v55  ;;  %3789 = vmatprep.mubr.f32.mxu1 %v1020_v62  ;;  %v1024_v55 = vld [vmem:[%s6981_s3 + $0x30] sm:$0xff] }
 0x367   : > { %1105 = vmatpush1.msra.mxu0 %v4209_v52  ;;  %v1025_v52 = vld [vmem:[%s6981_s3 + $0x38] sm:$0xff] }
 0x368   : > { %1139 = vmatmul.mubr.f32.vlgmr.msra.gmra.mxu0 %v4330_v11 }
 0x369   : > { %1144 = vmatprep.mubr.f32.mxu0 %v3882_v1  ;;  %3790 = vmatmul.mubr.f32.gmra.mxu1 %v1021_v0 }
 0x36a   : > { %3792 = vmatprep.mubr.f32.mxu1 %v1022_v6 }
 0x36c   : > { %1145 = vmatmul.mubr.f32.gmra.mxu0 %v1019_v13 }
 0x36d   : > { %1150 = vmatprep.mubr.f32.mxu0 %v3882_v1  ;;  %3793 = vmatmul.mubr.f32.gmra.mxu1 %v1023_v53 }
 0x36e   : > { %3795 = vmatprep.mubr.f32.mxu1 %v1024_v55 }
 0x370   : > { %1151 = vmatmul.mubr.f32.gmra.mxu0 %v1020_v62 }
 0x371   : > { %1156 = vmatprep.mubr.f32.mxu0 %v3882_v1  ;;  %3796 = vmatmul.mubr.f32.gmra.mxu1 %v1025_v52 }
 0x374   : > { %1157 = vmatmul.mubr.f32.gmra.mxu0 %v1021_v0 }
 0x375   : > { %1162 = vmatprep.mubr.f32.mxu0 %v3882_v1 }
 0x378   : > { %1163 = vmatmul.mubr.f32.gmra.mxu0 %v1022_v6 }
 0x379   : > { %1168 = vmatprep.mubr.f32.mxu0 %v3882_v1 }
 0x37c   : > { %1169 = vmatmul.mubr.f32.gmra.mxu0 %v1023_v53 }
 0x37d   : > { %1174 = vmatprep.mubr.f32.mxu0 %v3882_v1 }
 0x380   : > { %1175 = vmatmul.mubr.f32.gmra.mxu0 %v1024_v55 }
 0x381   : > { %1180 = vmatprep.mubr.f32.mxu0 %v3882_v1 }
 0x384   : > { %1181 = vmatmul.mubr.f32.gmra.mxu0 %v1025_v52 }
 0x425   : > { %v3788_v5 = vpop.f32.mrf.mxu1 }
 0x426   : > { %v1259_v9 = vadd.f32 %v3788_v5, %v4090_v41 }
 0x427   : > { %v1253_v10 = vpop.f32.mrf.mxu1 }
 0x428   : > { %v1297_v11 = vmax.f32 %v1259_v9, 0.0  ;;  %v1140_v14 = vpop.f32.mrf.mxu0  ;;  %v1254_v27 = vadd.f32 %v1253_v10, %v4088_v40 }
 0x429   : > { %v1141_v23 = vadd.f32 %v1140_v14, %v4088_v40  ;;  %v3791_v31 = vpop.f32.mrf.mxu1 }
 0x42a   : > { %v1338_v32 = vmul.f32 %v4462_v8, %v1297_v11  ;;  %v1142_v36 = vpop.f32.mrf.mxu0  ;;  %v1269_v50 = vadd.f32 %v3791_v31, %v4094_v43  ;;  %v1294_v59 = vmax.f32 %v1254_v27, 0.0 }
 0x42b   : > { %v1292_v48 = vmax.f32 %v1141_v23, 0.0  ;;  %v1143_v49 = vadd.f32 %v1142_v36, %v4088_v40  ;;  %v1263_v51 = vpop.f32.mrf.mxu1 }
 0x42c   : > { %v1146_v54 = vpop.f32.mrf.mxu0  ;;  %1399 = vrot.lane.b32.xlu0 %v1338_v32, %s3885_s17  ;;  %v1264_v61 = vadd.f32 %v1263_v51, %v4092_v42  ;;  %v1303_v37 = vmax.f32 %v1269_v50, 0.0  ;;  %v1335_v35 = vmul.f32 %v4462_v8, %v1294_v59 }
 0x42d   : > { %v1333_v56 = vmul.f32 %v4467_v19, %v1292_v48  ;;  %v1293_v60 = vmax.f32 %v1143_v49, 0.0  ;;  %v3794_v2 = vpop.f32.mrf.mxu1  ;;  %v1147_v57 = vadd.f32 %v1146_v54, %v4090_v41 }
 0x42e   : > { %v1148_v63 = vpop.f32.mrf.mxu0  ;;  %v1300_v26 = vmax.f32 %v1264_v61, 0.0  ;;  %v1344_v12 = vmul.f32 %v4462_v8, %v1303_v37  ;;  %v1279_v58 = vadd.f32 %v3794_v2, %v4098_v45 }
 0x42f   : > { %v1334_v29 = vmul.f32 %v4474_v34, %v1293_v60  ;;  %1389 = vrot.lane.b32.xlu1 %v1333_v56, %s3885_s17  ;;  %v1149_v28 = vadd.f32 %v1148_v63, %v4090_v41  ;;  %v1273_v3 = vpop.f32.mrf.mxu1  ;;  %v1295_v30 = vmax.f32 %v1147_v57, 0.0 }
 0x430   : > { %v1152_v40 = vpop.f32.mrf.mxu0  ;;  %v1341_v21 = vmul.f32 %v4462_v8, %v1300_v26  ;;  %v1309_v24 = vmax.f32 %v1279_v58, 0.0  ;;  %v1274_v0 = vadd.f32 %v1273_v3, %v4096_v44 }
 0x431   : > { %1391 = vrot.lane.b32.xlu0 %v1334_v29, %s3885_s17  ;;  %v1296_v20 = vmax.f32 %v1149_v28, 0.0  ;;  %v1153_v18 = vadd.f32 %v1152_v40, %v4092_v42  ;;  %v3797_v41 = vpop.f32.mrf.mxu1  ;;  %v1336_v15 = vmul.f32 %v4467_v19, %v1295_v30 }
 0x432   : > { %v1154_v38 = vpop.f32.mrf.mxu0  ;;  %v1350_v55 = vmul.f32 %v4462_v8, %v1309_v24  ;;  %v1289_v4 = vadd.f32 %v3797_v41, %v4102_v47  ;;  %v1306_v7 = vmax.f32 %v1274_v0, 0.0 }
 0x433   : > { %1393 = vrot.lane.b32.xlu1 %v1335_v35, %s3885_s17  ;;  %v1155_v25 = vadd.f32 %v1154_v38, %v4092_v42  ;;  %v1337_v13 = vmul.f32 %v4474_v34, %v1296_v20  ;;  %v1298_v62 = vmax.f32 %v1153_v18, 0.0  ;;  %v1283_v6 = vpop.f32.mrf.mxu1 }
 0x434   : > { %v1158_v17 = vpop.f32.mrf.mxu0  ;;  %v1284_v9 = vadd.f32 %v1283_v6, %v4100_v46  ;;  %v1315_v14 = vmax.f32 %v1289_v4, 0.0  ;;  %v1347_v23 = vmul.f32 %v4462_v8, %v1306_v7 }
 0x435   : > { %1411 = vrot.lane.b32.xlu0 %v1344_v12, %s3885_s17  ;;  %v1299_v52 = vmax.f32 %v1155_v25, 0.0  ;;  %v1339_v5 = vmul.f32 %v4467_v19, %v1298_v62  ;;  %v1159_v16 = vadd.f32 %v1158_v17, %v4094_v43 }
 0x436   : > { %v1160_v39 = vpop.f32.mrf.mxu0  ;;  %v1312_v27 = vmax.f32 %v1284_v9, 0.0  ;;  %v1356_v36 = vmul.f32 %v4462_v8, %v1315_v14 }
 0x437   : > { %1405 = vrot.lane.b32.xlu1 %v1341_v21, %s3885_s17  ;;  %v1340_v11 = vmul.f32 %v4474_v34, %v1299_v52  ;;  %v1161_v31 = vadd.f32 %v1160_v39, %v4094_v43  ;;  %v1301_v33 = vmax.f32 %v1159_v16, 0.0 }
 0x438   : > { %v1164_v22 = vpop.f32.mrf.mxu0  ;;  %v1353_v49 = vmul.f32 %v4462_v8, %v1312_v27 }
 0x439   : > { %1395 = vrot.lane.b32.xlu0 %v1336_v15, %s3885_s17  ;;  %v1302_v50 = vmax.f32 %v1161_v31, 0.0  ;;  %v1165_v51 = vadd.f32 %v1164_v22, %v4096_v44  ;;  %v1342_v43 = vmul.f32 %v4467_v19, %v1301_v33 }
 0x43a   : > { %v1166_v53 = vpop.f32.mrf.mxu0 }
 0x43b   : > { %1397 = vrot.lane.b32.xlu1 %v1337_v13, %s3885_s17  ;;  %v1167_v48 = vadd.f32 %v1166_v53, %v4096_v44  ;;  %v1343_v60 = vmul.f32 %v4474_v34, %v1302_v50  ;;  %v1304_v61 = vmax.f32 %v1165_v51, 0.0 }
 0x43c   : > { %v1170_v42 = vpop.f32.mrf.mxu0 }
 0x43d   : > { %1423 = vrot.lane.b32.xlu0 %v1350_v55, %s3885_s17  ;;  %v1305_v56 = vmax.f32 %v1167_v48, 0.0  ;;  %v1171_v59 = vadd.f32 %v1170_v42, %v4098_v45  ;;  %v1345_v37 = vmul.f32 %v4467_v19, %v1304_v61 }
 0x43e   : > { %v1172_v10 = vpop.f32.mrf.mxu0 }
 0x43f   : > { %1401 = vrot.lane.b32.xlu1 %v1339_v5, %s3885_s17  ;;  %v1173_v63 = vadd.f32 %v1172_v10, %v4098_v45  ;;  %v1346_v44 = vmul.f32 %v4474_v34, %v1305_v56  ;;  %v1307_v2 = vmax.f32 %v1171_v59, 0.0 }
 0x440   : > { %v1176_v32 = vpop.f32.mrf.mxu0 }
 0x441   : > { %1403 = vrot.lane.b32.xlu0 %v1340_v11, %s3885_s17  ;;  %v1308_v57 = vmax.f32 %v1173_v63, 0.0  ;;  %v1177_v40 = vadd.f32 %v1176_v32, %v4100_v46  ;;  %v1348_v45 = vmul.f32 %v4467_v19, %v1307_v2 }
 0x442   : > { %v1178_v54 = vpop.f32.mrf.mxu0 }
 0x443   : > { %1417 = vrot.lane.b32.xlu1 %v1347_v23, %s3885_s17  ;;  %v1179_v29 = vadd.f32 %v1178_v54, %v4100_v46  ;;  %v1349_v3 = vmul.f32 %v4474_v34, %v1308_v57  ;;  %v1310_v38 = vmax.f32 %v1177_v40, 0.0 }
 0x444   : > { %v1182_v8 = vpop.f32.mrf.mxu0 }
 0x445   : > { %1435 = vrot.lane.b32.xlu0 %v1356_v36, %s3885_s17  ;;  %v1311_v26 = vmax.f32 %v1179_v29, 0.0  ;;  %v1183_v28 = vadd.f32 %v1182_v8, %v4102_v47  ;;  %v1351_v58 = vmul.f32 %v4467_v19, %v1310_v38 }
 0x446   : > { %v1184_v35 = vpop.f32.mrf.mxu0 }
 0x447   : > { %1429 = vrot.lane.b32.xlu1 %v1353_v49, %s3885_s17  ;;  %v1185_v12 = vadd.f32 %v1184_v35, %v4102_v47  ;;  %v1352_v30 = vmul.f32 %v4474_v34, %v1311_v26  ;;  %v1313_v46 = vmax.f32 %v1183_v28, 0.0 }
 0x449   : > { %1407 = vrot.lane.b32.xlu0 %v1342_v43, %s3885_s17  ;;  %v1314_v17 = vmax.f32 %v1185_v12, 0.0  ;;  %v1354_v21 = vmul.f32 %v4467_v19, %v1313_v46 }
 0x44b   : > { %1409 = vrot.lane.b32.xlu1 %v1343_v60, %s3885_s17  ;;  %v1355_v20 = vmul.f32 %v4474_v34, %v1314_v17 }
 0x44d   : > { %1415 = vrot.lane.b32.xlu0 %v1346_v44, %s3885_s17 }
 0x44f   : > { %1413 = vrot.lane.b32.xlu1 %v1345_v37, %s3885_s17 }
 0x451   : > { %1419 = vrot.lane.b32.xlu0 %v1348_v45, %s3885_s17 }
 0x453   : > { %1421 = vrot.lane.b32.xlu1 %v1349_v3, %s3885_s17 }
 0x455   : > { %1427 = vrot.lane.b32.xlu0 %v1352_v30, %s3885_s17 }
 0x457   : > { %1425 = vrot.lane.b32.xlu1 %v1351_v58, %s3885_s17 }
 0x459   : > { %1431 = vrot.lane.b32.xlu0 %v1354_v21, %s3885_s17 }
 0x45b   : > { %1433 = vrot.lane.b32.xlu1 %v1355_v20, %s3885_s17  ;;  %s3907_s17 = smov 125  }
 0x49e   : > { %v1400_v47 = vpop.permute.xlu0 %1399 }
 0x4a1   : > { %v1390_v18 = vpop.permute.xlu1 %1389 }
 0x4a2   : > { %1477 = vst.msk [vmem:[#allocation4] sm:$0xff] %vm843_vm13, %v1390_v18 }
 0x4a3   : > { %v1392_v41 = vpop.permute.xlu0 %1391 }
 0x4a4   : > { %v4546_v39 = vsel %vm782_vm12, %v1390_v18, %v1392_v41 }
 0x4a5   : > { %1478 = vst [vmem:[#allocation4 + $0x8] sm:$0xff] %v4546_v39  ;;  %v1394_v19 = vpop.permute.xlu1 %1393 }
 0x4a6   : > { %v1438_v15 = vsel %vm782_vm12, %v1392_v41, %v1394_v19 }
 0x4a7   : > { %1480 = vst.msk [vmem:[#allocation4 + $0x10] sm:$0xff] %vm1479_vm0, %v1438_v15  ;;  %v1412_v34 = vpop.permute.xlu0 %1411 }
 0x4a8   : > { %1503 = vst.msk [vmem:[#allocation4 + $0x10] sm:$0xff] %vm1502_vm1, %v3882_v1 }
 0x4a9   : > { %v4553_v24 = vld [vmem:[#allocation4] sm:$0xff]  ;;  %v1406_v25 = vpop.permute.xlu1 %1405 }
 0x4aa   : > { %2265 = vrot.lane.b32.xlu0 %v4553_v24, %s3900_s20  ;;  %1559 = vrot.lane.b32.xlu1 %v4553_v24, %s3906_s28 }
 0x4ab   : > { %v1396_v22 = vpop.permute.xlu0 %1395 }
 0x4ac   : > { %1481 = vst.msk [vmem:[#allocation4 + $0x18] sm:$0xff] %vm843_vm13, %v1396_v22 }
 0x4ad   : > { %v1398_v13 = vpop.permute.xlu1 %1397 }
 0x4ae   : > { %v4561_v62 = vsel %vm782_vm12, %v1396_v22, %v1398_v13  ;;  %v1440_v0 = vsel %vm782_vm12, %v1398_v13, %v1400_v47  ;;  %2177 = vrot.lane.b32.xlu0 %v4553_v24, %s3901_s21  ;;  %1647 = vrot.lane.b32.xlu1 %v4553_v24, %s3905_s27 }
 0x4af   : > { %1482 = vst [vmem:[#allocation4 + $0x20] sm:$0xff] %v4561_v62  ;;  %1483 = vst.msk [vmem:[#allocation4 + $0x28] sm:$0xff] %vm1479_vm0, %v1440_v0  ;;  %v1424_v6 = vpop.permute.xlu0 %1423  ;;  %v1513_v43 = vld [vmem:[#allocation4 + $0x10] sm:$0xff] }
 0x4b0   : > { %1504 = vst.msk [vmem:[#allocation4 + $0x28] sm:$0xff] %vm1502_vm1, %v3882_v1 }
 0x4b1   : > { %v1402_v53 = vpop.permute.xlu1 %1401 }
 0x4b2   : > { %1484 = vst.msk [vmem:[#allocation4 + $0x30] sm:$0xff] %vm843_vm13, %v1402_v53  ;;  %1735 = vrot.lane.b32.xlu1 %v4553_v24, %s3907_s17  ;;  %1561 = vrot.lane.b32.xlu0 %v4546_v39, %s3906_s28 }
 0x4b3   : > { %v1404_v55 = vpop.permute.xlu0 %1403  ;;  %v1514_v63 = vld [vmem:[#allocation4 + $0x18] sm:$0xff] }
 0x4b4   : > { %v4578_v52 = vsel %vm782_vm12, %v1402_v53, %v1404_v55  ;;  %v1442_v4 = vsel %vm782_vm12, %v1404_v55, %v1406_v25 }
 0x4b5   : > { %1485 = vst [vmem:[#allocation4 + $0x38] sm:$0xff] %v4578_v52  ;;  %1486 = vst.msk [vmem:[#allocation4 + $0x40] sm:$0xff] %vm1479_vm0, %v1442_v4  ;;  %v1418_v42 = vpop.permute.xlu1 %1417 }
 0x4b6   : > { %1505 = vst.msk [vmem:[#allocation4 + $0x40] sm:$0xff] %vm1502_vm1, %v3882_v1  ;;  %1824 = vrot.lane.b32.xlu1 %v4553_v24, %s3904_s26  ;;  %1649 = vrot.lane.b32.xlu0 %v4546_v39, %s3905_s27 }
 0x4b7   : > { %v1436_v5 = vpop.permute.xlu0 %1435 }
 0x4b9   : > { %v1430_v7 = vpop.permute.xlu1 %1429  ;;  %v4718_v2 = vld [vmem:[#allocation4 + $0x30] sm:$0xff] }
 0x4ba   : > { %1912 = vrot.lane.b32.xlu1 %v4553_v24, %s3903_s23  ;;  %1737 = vrot.lane.b32.xlu0 %v4546_v39, %s3907_s17 }
 0x4bb   : > { %v1408_v9 = vpop.permute.xlu0 %1407 }
 0x4bc   : > { %1487 = vst.msk [vmem:[#allocation4 + $0x48] sm:$0xff] %vm843_vm13, %v1408_v9 }
 0x4bd   : > { %v1410_v10 = vpop.permute.xlu1 %1409  ;;  %v4828_v22 = vld [vmem:[#allocation4 + $0x40] sm:$0xff] }
 0x4be   : > { %v4595_v11 = vsel %vm782_vm12, %v1408_v9, %v1410_v10  ;;  %v1444_v14 = vsel %vm782_vm12, %v1410_v10, %v1412_v34  ;;  %2000 = vrot.lane.b32.xlu1 %v4553_v24, %s3902_s22  ;;  %1826 = vrot.lane.b32.xlu0 %v4546_v39, %s3904_s26 }
 0x4bf   : > { %1488 = vst [vmem:[#allocation4 + $0x50] sm:$0xff] %v4595_v11  ;;  %1489 = vst.msk [vmem:[#allocation4 + $0x58] sm:$0xff] %vm1479_vm0, %v1444_v14  ;;  %v1416_v16 = vpop.permute.xlu0 %1415 }
 0x4c0   : > { %1506 = vst.msk [vmem:[#allocation4 + $0x58] sm:$0xff] %vm1502_vm1, %v3882_v1  ;;  %v1446_v23 = vsel %vm782_vm12, %v1416_v16, %v1418_v42 }
 0x4c1   : > { %1492 = vst.msk [vmem:[#allocation4 + $0x70] sm:$0xff] %vm1479_vm0, %v1446_v23  ;;  %v1414_v27 = vpop.permute.xlu1 %1413 }
 0x4c2   : > { %1507 = vst.msk [vmem:[#allocation4 + $0x70] sm:$0xff] %vm1502_vm1, %v3882_v1  ;;  %v4611_v31 = vsel %vm782_vm12, %v1414_v27, %v1416_v16  ;;  %2088 = vrot.lane.b32.xlu1 %v4553_v24, %s3908_s16  ;;  %1914 = vrot.lane.b32.xlu0 %v4546_v39, %s3903_s23 }
 0x4c3   : > { %1490 = vst.msk [vmem:[#allocation4 + $0x60] sm:$0xff] %vm843_vm13, %v1414_v27  ;;  %1491 = vst [vmem:[#allocation4 + $0x68] sm:$0xff] %v4611_v31  ;;  %v1420_v32 = vpop.permute.xlu0 %1419 }
 0x4c4   : > { %1493 = vst.msk [vmem:[#allocation4 + $0x78] sm:$0xff] %vm843_vm13, %v1420_v32 }
 0x4c5   : > { %v1422_v36 = vpop.permute.xlu1 %1421 }
 0x4c6   : > { %v4621_v33 = vsel %vm782_vm12, %v1420_v32, %v1422_v36  ;;  %v1448_v48 = vsel %vm782_vm12, %v1422_v36, %v1424_v6  ;;  %2619 = vrot.lane.b32.xlu1 %v4553_v24, %s3909_s18  ;;  %2002 = vrot.lane.b32.xlu0 %v4546_v39, %s3902_s22  ;;  %v4890_v32 = vld [vmem:[#allocation4 + $0x48] sm:$0xff] }
 0x4c7   : > { %1494 = vst [vmem:[#allocation4 + $0x80] sm:$0xff] %v4621_v33  ;;  %1495 = vst.msk [vmem:[#allocation4 + $0x88] sm:$0xff] %vm1479_vm0, %v1448_v48  ;;  %v1428_v49 = vpop.permute.xlu0 %1427 }
 0x4c8   : > { %1508 = vst.msk [vmem:[#allocation4 + $0x88] sm:$0xff] %vm1502_vm1, %v3882_v1  ;;  %v1450_v50 = vsel %vm782_vm12, %v1428_v49, %v1430_v7 }
 0x4c9   : > { %1498 = vst.msk [vmem:[#allocation4 + $0xa0] sm:$0xff] %vm1479_vm0, %v1450_v50  ;;  %v1426_v51 = vpop.permute.xlu1 %1425 }
 0x4ca   : > { %1509 = vst.msk [vmem:[#allocation4 + $0xa0] sm:$0xff] %vm1502_vm1, %v3882_v1  ;;  %v4637_v54 = vsel %vm782_vm12, %v1426_v51, %v1428_v49  ;;  %2530 = vrot.lane.b32.xlu1 %v4553_v24, %s3910_s24  ;;  %2090 = vrot.lane.b32.xlu0 %v4546_v39, %s3908_s16 }
 0x4cb   : > { %1496 = vst.msk [vmem:[#allocation4 + $0x90] sm:$0xff] %vm843_vm13, %v1426_v51  ;;  %1497 = vst [vmem:[#allocation4 + $0x98] sm:$0xff] %v4637_v54  ;;  %v1432_v56 = vpop.permute.xlu0 %1431 }
 0x4cc   : > { %1499 = vst.msk [vmem:[#allocation4 + $0xa8] sm:$0xff] %vm843_vm13, %v1432_v56 }
 0x4cd   : > { %v1434_v59 = vpop.permute.xlu1 %1433 }
 0x4ce   : > { %v4647_v60 = vsel %vm782_vm12, %v1432_v56, %v1434_v59  ;;  %v1452_v61 = vsel %vm782_vm12, %v1434_v59, %v1436_v5  ;;  %2267 = vrot.lane.b32.xlu0 %v4546_v39, %s3900_s20  ;;  %1563 = vrot.lane.b32.xlu1 %v1513_v43, %s3906_s28 }
 0x4cf   : > { %1500 = vst [vmem:[#allocation4 + $0xb0] sm:$0xff] %v4647_v60  ;;  %1501 = vst.msk [vmem:[#allocation4 + $0xb8] sm:$0xff] %vm1479_vm0, %v1452_v61 }
 0x4d0   : > { %1510 = vst.msk [vmem:[#allocation4 + $0xb8] sm:$0xff] %vm1502_vm1, %v3882_v1  ;;  %v4704_v1 = vld [vmem:[#allocation4 + $0x28] sm:$0xff] }
 0x4d2   : > { %2621 = vrot.lane.b32.xlu0 %v4546_v39, %s3909_s18  ;;  %1651 = vrot.lane.b32.xlu1 %v1513_v43, %s3905_s27 }
 0x4d6   : > { %2179 = vrot.lane.b32.xlu0 %v4546_v39, %s3901_s21  ;;  %1739 = vrot.lane.b32.xlu1 %v1513_v43, %s3907_s17 }
 0x4da   : > { %2532 = vrot.lane.b32.xlu0 %v4546_v39, %s3910_s24  ;;  %1828 = vrot.lane.b32.xlu1 %v1513_v43, %s3904_s26 }
 0x4de   : > { %1565 = vrot.lane.b32.xlu0 %v1514_v63, %s3906_s28  ;;  %1916 = vrot.lane.b32.xlu1 %v1513_v43, %s3903_s23 }
 0x4e2   : > { %1653 = vrot.lane.b32.xlu0 %v1514_v63, %s3905_s27  ;;  %2004 = vrot.lane.b32.xlu1 %v1513_v43, %s3902_s22 }
 0x4e6   : > { %1741 = vrot.lane.b32.xlu0 %v1514_v63, %s3907_s17  ;;  %2092 = vrot.lane.b32.xlu1 %v1513_v43, %s3908_s16 }
 0x4ea   : > { %1830 = vrot.lane.b32.xlu0 %v1514_v63, %s3904_s26  ;;  %2269 = vrot.lane.b32.xlu1 %v1513_v43, %s3900_s20 }
 0x4ee   : > { %1918 = vrot.lane.b32.xlu0 %v1514_v63, %s3903_s23  ;;  %2625 = vrot.lane.b32.xlu1 %v1514_v63, %s3909_s18 }
 0x4f2   : > { %2006 = vrot.lane.b32.xlu0 %v1514_v63, %s3902_s22  ;;  %2623 = vrot.lane.b32.xlu1 %v1513_v43, %s3909_s18 }
 0x4f6   : > { %2094 = vrot.lane.b32.xlu0 %v1514_v63, %s3908_s16  ;;  %2181 = vrot.lane.b32.xlu1 %v1513_v43, %s3901_s21 }
 0x4fa   : > { %2271 = vrot.lane.b32.xlu0 %v1514_v63, %s3900_s20  ;;  %2536 = vrot.lane.b32.xlu1 %v1514_v63, %s3910_s24 }
 0x4fe   : > { %2183 = vrot.lane.b32.xlu0 %v1514_v63, %s3901_s21  ;;  %2534 = vrot.lane.b32.xlu1 %v1513_v43, %s3910_s24 }
 0x502   : > { %2273 = vrot.lane.b32.xlu0 %v4561_v62, %s3900_s20  ;;  %1567 = vrot.lane.b32.xlu1 %v4561_v62, %s3906_s28 }
 0x506   : > { %2627 = vrot.lane.b32.xlu0 %v4561_v62, %s3909_s18  ;;  %1655 = vrot.lane.b32.xlu1 %v4561_v62, %s3905_s27 }
 0x50a   : > { %2185 = vrot.lane.b32.xlu0 %v4561_v62, %s3901_s21  ;;  %1743 = vrot.lane.b32.xlu1 %v4561_v62, %s3907_s17 }
 0x50e   : > { %2538 = vrot.lane.b32.xlu0 %v4561_v62, %s3910_s24  ;;  %1832 = vrot.lane.b32.xlu1 %v4561_v62, %s3904_s26 }
 0x512   : > { %2449 = vrot.lane.b32.xlu0 %v4561_v62, %s3911_s25  ;;  %1920 = vrot.lane.b32.xlu1 %v4561_v62, %s3903_s23 }
 0x516   : > { %1569 = vrot.lane.b32.xlu0 %v4704_v1, %s3906_s28  ;;  %2008 = vrot.lane.b32.xlu1 %v4561_v62, %s3902_s22 }
 0x51a   : > { %1657 = vrot.lane.b32.xlu0 %v4704_v1, %s3905_s27  ;;  %2096 = vrot.lane.b32.xlu1 %v4561_v62, %s3908_s16 }
 0x51c   : > { %v4714_v8 = vpop.permute.xlu0 %2265  ;;  %v4716_v44 = vpop.permute.xlu1 %1559 }
 0x51d   : > { %7183 = vst [vmem:[#allocation5_spill] sm:$0xff] %v4714_v8 }
 0x51e   : > { %1745 = vrot.lane.b32.xlu0 %v4704_v1, %s3907_s17  ;;  %1571 = vrot.lane.b32.xlu1 %v4718_v2, %s3906_s28 }
 0x520   : > { %v4724_v29 = vpop.permute.xlu0 %2177  ;;  %v4726_v37 = vpop.permute.xlu1 %1647 }
 0x521   : > { %7184 = vst [vmem:[#allocation6_spill] sm:$0xff] %v4724_v29  ;;  %7185 = vst [vmem:[#allocation7_spill] sm:$0xff] %v4726_v37 }
 0x522   : > { %1834 = vrot.lane.b32.xlu0 %v4704_v1, %s3904_s26  ;;  %1659 = vrot.lane.b32.xlu1 %v4718_v2, %s3905_s27 }
 0x524   : > { %v4732_v57 = vpop.permute.xlu0 %1561  ;;  %v4734_v40 = vpop.permute.xlu1 %1735 }
 0x525   : > { %7186 = vst [vmem:[#allocation8_spill] sm:$0xff] %v4734_v40 }
 0x526   : > { %1922 = vrot.lane.b32.xlu0 %v4704_v1, %s3903_s23  ;;  %1747 = vrot.lane.b32.xlu1 %v4718_v2, %s3907_s17 }
 0x528   : > { %v4740_v35 = vpop.permute.xlu0 %1649  ;;  %v4742_v45 = vpop.permute.xlu1 %1824 }
 0x529   : > { %7187 = vst [vmem:[#allocation9_spill] sm:$0xff] %v4740_v35  ;;  %7188 = vst [vmem:[#allocation10_spill] sm:$0xff] %v4742_v45 }
 0x52a   : > { %2010 = vrot.lane.b32.xlu0 %v4704_v1, %s3902_s22  ;;  %1836 = vrot.lane.b32.xlu1 %v4718_v2, %s3904_s26 }
 0x52c   : > { %v4748_v26 = vpop.permute.xlu0 %1737  ;;  %v4750_v28 = vpop.permute.xlu1 %1912 }
 0x52d   : > { %7189 = vst [vmem:[#allocation11_spill] sm:$0xff] %v4748_v26  ;;  %7190 = vst [vmem:[#allocation12_spill] sm:$0xff] %v4750_v28 }
 0x52e   : > { %2098 = vrot.lane.b32.xlu0 %v4704_v1, %s3908_s16  ;;  %1924 = vrot.lane.b32.xlu1 %v4718_v2, %s3903_s23 }
 0x530   : > { %v4756_v3 = vpop.permute.xlu0 %1826  ;;  %v4758_v38 = vpop.permute.xlu1 %2000 }
 0x531   : > { %7191 = vst [vmem:[#allocation13_spill] sm:$0xff] %v4756_v3  ;;  %7192 = vst [vmem:[#allocation14_spill] sm:$0xff] %v4758_v38 }
 0x532   : > { %2277 = vrot.lane.b32.xlu0 %v4718_v2, %s3900_s20  ;;  %2012 = vrot.lane.b32.xlu1 %v4718_v2, %s3902_s22 }
 0x534   : > { %v4764_v12 = vpop.permute.xlu0 %1914  ;;  %v4766_v30 = vpop.permute.xlu1 %2088 }
 0x535   : > { %7193 = vst [vmem:[#allocation15_spill] sm:$0xff] %v4764_v12  ;;  %7194 = vst [vmem:[#allocation16_spill] sm:$0xff] %v4766_v30 }
 0x536   : > { %2189 = vrot.lane.b32.xlu0 %v4718_v2, %s3901_s21  ;;  %2100 = vrot.lane.b32.xlu1 %v4718_v2, %s3908_s16 }
 0x538   : > { %v4772_v46 = vpop.permute.xlu0 %2002  ;;  %v4774_v58 = vpop.permute.xlu1 %2619 }
 0x539   : > { %7195 = vst [vmem:[#allocation17_spill] sm:$0xff] %v4772_v46  ;;  %7196 = vst [vmem:[#allocation18_spill] sm:$0xff] %v4774_v58 }
 0x53a   : > { %2453 = vrot.lane.b32.xlu0 %v4718_v2, %s3911_s25  ;;  %2275 = vrot.lane.b32.xlu1 %v4704_v1, %s3900_s20 }
 0x53c   : > { %v4780_v17 = vpop.permute.xlu0 %2090  ;;  %v4782_v21 = vpop.permute.xlu1 %2530 }
 0x53d   : > { %7197 = vst [vmem:[#allocation19_spill] sm:$0xff] %v4780_v17  ;;  %7198 = vst [vmem:[#allocation20_spill] sm:$0xff] %v4782_v21 }
 0x53e   : > { %2631 = vrot.lane.b32.xlu1 %v4718_v2, %s3909_s18  ;;  %1573 = vrot.lane.b32.xlu0 %v4578_v52, %s3906_s28 }
 0x540   : > { %v4788_v20 = vpop.permute.xlu0 %2267  ;;  %v4790_v47 = vpop.permute.xlu1 %1563 }
 0x541   : > { %7199 = vst [vmem:[#allocation21_spill] sm:$0xff] %v4788_v20  ;;  %7200 = vst [vmem:[#allocation22_spill] sm:$0xff] %v4790_v47 }
 0x542   : > { %2629 = vrot.lane.b32.xlu1 %v4704_v1, %s3909_s18  ;;  %1661 = vrot.lane.b32.xlu0 %v4578_v52, %s3905_s27 }
 0x544   : > { %v4796_v18 = vpop.permute.xlu0 %2621  ;;  %v4798_v41 = vpop.permute.xlu1 %1651 }
 0x545   : > { %7201 = vst [vmem:[#allocation23_spill] sm:$0xff] %v4796_v18  ;;  %7202 = vst [vmem:[#allocation24_spill] sm:$0xff] %v4798_v41 }
 0x546   : > { %2187 = vrot.lane.b32.xlu1 %v4704_v1, %s3901_s21  ;;  %1749 = vrot.lane.b32.xlu0 %v4578_v52, %s3907_s17 }
 0x548   : > { %v4804_v39 = vpop.permute.xlu0 %2179  ;;  %v4806_v19 = vpop.permute.xlu1 %1739 }
 0x549   : > { %7203 = vst [vmem:[#allocation25_spill] sm:$0xff] %v4804_v39  ;;  %7204 = vst [vmem:[#allocation26_spill] sm:$0xff] %v4806_v19 }
 0x54a   : > { %2542 = vrot.lane.b32.xlu1 %v4718_v2, %s3910_s24  ;;  %1838 = vrot.lane.b32.xlu0 %v4578_v52, %s3904_s26 }
 0x54c   : > { %v4812_v15 = vpop.permute.xlu0 %2532  ;;  %v4814_v34 = vpop.permute.xlu1 %1828 }
 0x54d   : > { %7205 = vst [vmem:[#allocation27_spill] sm:$0xff] %v4812_v15  ;;  %7206 = vst [vmem:[#allocation28_spill] sm:$0xff] %v4814_v34 }
 0x54e   : > { %2540 = vrot.lane.b32.xlu1 %v4704_v1, %s3910_s24  ;;  %1926 = vrot.lane.b32.xlu0 %v4578_v52, %s3903_s23 }
 0x550   : > { %v4820_v24 = vpop.permute.xlu0 %1565  ;;  %v4822_v25 = vpop.permute.xlu1 %1916 }
 0x551   : > { %7207 = vst [vmem:[#allocation29_spill] sm:$0xff] %v4822_v25  ;;  %v5798_v25 = vld [vmem:[#allocation4 + $0x80] sm:$0xff] }
 0x552   : > { %2014 = vrot.lane.b32.xlu0 %v4578_v52, %s3902_s22  ;;  %2451 = vrot.lane.b32.xlu1 %v4704_v1, %s3911_s25 }
 0x554   : > { %v4830_v13 = vpop.permute.xlu0 %1653  ;;  %v4832_v62 = vpop.permute.xlu1 %2004 }
 0x555   : > { %7208 = vst [vmem:[#allocation30_spill] sm:$0xff] %v4830_v13  ;;  %7209 = vst [vmem:[#allocation31_spill] sm:$0xff] %v4832_v62 }
 0x556   : > { %2102 = vrot.lane.b32.xlu0 %v4578_v52, %s3908_s16  ;;  %1575 = vrot.lane.b32.xlu1 %v4828_v22, %s3906_s28 }
 0x558   : > { %v4838_v0 = vpop.permute.xlu0 %1741  ;;  %v4840_v6 = vpop.permute.xlu1 %2092 }
 0x559   : > { %7210 = vst [vmem:[#allocation32_spill] sm:$0xff] %v4838_v0  ;;  %7211 = vst [vmem:[#allocation33_spill] sm:$0xff] %v4840_v6 }
 0x55a   : > { %2279 = vrot.lane.b32.xlu0 %v4578_v52, %s3900_s20  ;;  %1663 = vrot.lane.b32.xlu1 %v4828_v22, %s3905_s27 }
 0x55c   : > { %v4846_v53 = vpop.permute.xlu0 %1830  ;;  %v4848_v55 = vpop.permute.xlu1 %2269 }
 0x55d   : > { %7212 = vst [vmem:[#allocation34_spill] sm:$0xff] %v4846_v53  ;;  %7213 = vst [vmem:[#allocation35_spill] sm:$0xff] %v4848_v55 }
 0x55e   : > { %2633 = vrot.lane.b32.xlu0 %v4578_v52, %s3909_s18  ;;  %1751 = vrot.lane.b32.xlu1 %v4828_v22, %s3907_s17 }
 0x560   : > { %v4854_v4 = vpop.permute.xlu0 %1918  ;;  %v4856_v42 = vpop.permute.xlu1 %2625 }
 0x561   : > { %7214 = vst [vmem:[#allocation36_spill] sm:$0xff] %v4854_v4  ;;  %7215 = vst [vmem:[#allocation37_spill] sm:$0xff] %v4856_v42  ;;  %v5848_v4 = vld [vmem:[#allocation4 + $0x68] sm:$0xff] }
 0x562   : > { %2191 = vrot.lane.b32.xlu0 %v4578_v52, %s3901_s21  ;;  %1840 = vrot.lane.b32.xlu1 %v4828_v22, %s3904_s26 }
 0x564   : > { %v4862_v5 = vpop.permute.xlu0 %2006  ;;  %v4864_v7 = vpop.permute.xlu1 %2623 }
 0x565   : > { %7216 = vst [vmem:[#allocation38_spill] sm:$0xff] %v4862_v5  ;;  %7217 = vst [vmem:[#allocation39_spill] sm:$0xff] %v4864_v7 }
 0x566   : > { %2544 = vrot.lane.b32.xlu0 %v4578_v52, %s3910_s24  ;;  %1928 = vrot.lane.b32.xlu1 %v4828_v22, %s3903_s23 }
 0x568   : > { %v4870_v9 = vpop.permute.xlu0 %2094  ;;  %v4872_v10 = vpop.permute.xlu1 %2181 }
 0x569   : > { %7218 = vst [vmem:[#allocation40_spill] sm:$0xff] %v4870_v9  ;;  %7219 = vst [vmem:[#allocation41_spill] sm:$0xff] %v4872_v10 }
 0x56a   : > { %2455 = vrot.lane.b32.xlu0 %v4578_v52, %s3911_s25  ;;  %2016 = vrot.lane.b32.xlu1 %v4828_v22, %s3902_s22 }
 0x56c   : > { %v4878_v14 = vpop.permute.xlu0 %2271  ;;  %v4880_v16 = vpop.permute.xlu1 %2536 }
 0x56d   : > { %7220 = vst [vmem:[#allocation42_spill] sm:$0xff] %v4878_v14  ;;  %7221 = vst [vmem:[#allocation43_spill] sm:$0xff] %v4880_v16  ;;  %v5012_v14 = vld [vmem:[#allocation4 + $0x60] sm:$0xff] }
 0x56e   : > { %2811 = vrot.lane.b32.xlu0 %v4578_v52, %s3912_s29  ;;  %2104 = vrot.lane.b32.xlu1 %v4828_v22, %s3908_s16 }
 0x570   : > { %v4886_v23 = vpop.permute.xlu0 %2183  ;;  %v4888_v27 = vpop.permute.xlu1 %2534 }
 0x571   : > { %7222 = vst [vmem:[#allocation44_spill] sm:$0xff] %v4886_v23  ;;  %7223 = vst [vmem:[#allocation45_spill] sm:$0xff] %v4888_v27 }
 0x572   : > { %1577 = vrot.lane.b32.xlu0 %v4890_v32, %s3906_s28  ;;  %2281 = vrot.lane.b32.xlu1 %v4828_v22, %s3900_s20 }
 0x574   : > { %v4896_v36 = vpop.permute.xlu0 %2273  ;;  %v4898_v48 = vpop.permute.xlu1 %1567 }
 0x575   : > { %7224 = vst [vmem:[#allocation46_spill] sm:$0xff] %v4896_v36 }
 0x576   : > { %1665 = vrot.lane.b32.xlu0 %v4890_v32, %s3905_s27  ;;  %2637 = vrot.lane.b32.xlu1 %v4890_v32, %s3909_s18 }
 0x578   : > { %v4904_v52 = vpop.permute.xlu0 %2627  ;;  %v4906_v49 = vpop.permute.xlu1 %1655 }
 0x579   : > { %7225 = vst [vmem:[#allocation47_spill] sm:$0xff] %v4904_v52  ;;  %7226 = vst [vmem:[#allocation48_spill] sm:$0xff] %v4906_v49 }
 0x57a   : > { %1753 = vrot.lane.b32.xlu0 %v4890_v32, %s3907_s17  ;;  %2635 = vrot.lane.b32.xlu1 %v4828_v22, %s3909_s18 }
 0x57c   : > { %v4912_v50 = vpop.permute.xlu0 %2185  ;;  %v4914_v51 = vpop.permute.xlu1 %1743 }
 0x57d   : > { %7227 = vst [vmem:[#allocation49_spill] sm:$0xff] %v4912_v50  ;;  %7228 = vst [vmem:[#allocation50_spill] sm:$0xff] %v4914_v51 }
 0x57e   : > { %1842 = vrot.lane.b32.xlu0 %v4890_v32, %s3904_s26  ;;  %2193 = vrot.lane.b32.xlu1 %v4828_v22, %s3901_s21 }
 0x580   : > { %v4920_v43 = vpop.permute.xlu0 %2538  ;;  %v4922_v56 = vpop.permute.xlu1 %1832 }
 0x581   : > { %7229 = vst [vmem:[#allocation51_spill] sm:$0xff] %v4920_v43  ;;  %7230 = vst [vmem:[#allocation52_spill] sm:$0xff] %v4922_v56 }
 0x582   : > { %1930 = vrot.lane.b32.xlu0 %v4890_v32, %s3903_s23  ;;  %2548 = vrot.lane.b32.xlu1 %v4890_v32, %s3910_s24 }
 0x584   : > { %v4928_v59 = vpop.permute.xlu0 %2449  ;;  %v4930_v61 = vpop.permute.xlu1 %1920 }
 0x585   : > { %7231 = vst [vmem:[#allocation53_spill] sm:$0xff] %v4928_v59  ;;  %7232 = vst [vmem:[#allocation54_spill] sm:$0xff] %v4930_v61  ;;  %v3860_v61 = vld [vmem:[#allocation4 + $0x40] sm:$0xff] }
 0x586   : > { %2018 = vrot.lane.b32.xlu0 %v4890_v32, %s3902_s22  ;;  %2546 = vrot.lane.b32.xlu1 %v4828_v22, %s3910_s24 }
 0x588   : > { %v4936_v63 = vpop.permute.xlu0 %1569  ;;  %v4938_v21 = vpop.permute.xlu1 %2008 }
 0x589   : > { %7233 = vst [vmem:[#allocation55_spill] sm:$0xff] %v4936_v63  ;;  %7234 = vst [vmem:[#allocation56_spill] sm:$0xff] %v4938_v21 }
 0x58a   : > { %2106 = vrot.lane.b32.xlu0 %v4890_v32, %s3908_s16  ;;  %2457 = vrot.lane.b32.xlu1 %v4828_v22, %s3911_s25 }
 0x58c   : > { %v4944_v15 = vpop.permute.xlu0 %1657  ;;  %v4946_v59 = vpop.permute.xlu1 %2096 }
 0x58d   : > { %7235 = vst [vmem:[#allocation57_spill] sm:$0xff] %v4944_v15  ;;  %7236 = vst [vmem:[#allocation58_spill] sm:$0xff] %v4946_v59 }
 0x58e   : > { %2283 = vrot.lane.b32.xlu0 %v4890_v32, %s3900_s20  ;;  %2815 = vrot.lane.b32.xlu1 %v4890_v32, %s3912_s29 }
 0x590   : > { %v4952_v27 = vpop.permute.xlu0 %1745  ;;  %v4954_v16 = vpop.permute.xlu1 %1571 }
 0x591   : > { %7237 = vst [vmem:[#allocation59_spill] sm:$0xff] %v4952_v27 }
 0x592   : > { %2195 = vrot.lane.b32.xlu0 %v4890_v32, %s3901_s21  ;;  %2813 = vrot.lane.b32.xlu1 %v4828_v22, %s3912_s29 }
 0x594   : > { %v4960_v43 = vpop.permute.xlu0 %1834  ;;  %v4962_v29 = vpop.permute.xlu1 %1659 }
 0x595   : > { %7238 = vst [vmem:[#allocation60_spill] sm:$0xff] %v4960_v43  ;;  %7239 = vst [vmem:[#allocation61_spill] sm:$0xff] %v4962_v29 }
 0x596   : > { %2459 = vrot.lane.b32.xlu0 %v4890_v32, %s3911_s25  ;;  %1579 = vrot.lane.b32.xlu1 %v4595_v11, %s3906_s28 }
 0x598   : > { %v4968_v39 = vpop.permute.xlu0 %1922  ;;  %v4970_v10 = vpop.permute.xlu1 %1747 }
 0x599   : > { %7240 = vst [vmem:[#allocation62_spill] sm:$0xff] %v4968_v39  ;;  %7241 = vst [vmem:[#allocation63_spill] sm:$0xff] %v4970_v10 }
 0x59a   : > { %2108 = vrot.lane.b32.xlu0 %v4595_v11, %s3908_s16  ;;  %1667 = vrot.lane.b32.xlu1 %v4595_v11, %s3905_s27 }
 0x59c   : > { %v4976_v23 = vpop.permute.xlu0 %2010  ;;  %v4978_v50 = vpop.permute.xlu1 %1836 }
 0x59d   : > { %7242 = vst [vmem:[#allocation64_spill] sm:$0xff] %v4976_v23  ;;  %7243 = vst [vmem:[#allocation65_spill] sm:$0xff] %v4978_v50 }
 0x59e   : > { %2285 = vrot.lane.b32.xlu0 %v4595_v11, %s3900_s20  ;;  %1755 = vrot.lane.b32.xlu1 %v4595_v11, %s3907_s17 }
 0x5a0   : > { %v4984_v58 = vpop.permute.xlu0 %2098  ;;  %v4986_v18 = vpop.permute.xlu1 %1924 }
 0x5a1   : > { %7244 = vst [vmem:[#allocation66_spill] sm:$0xff] %v4984_v58  ;;  %7245 = vst [vmem:[#allocation67_spill] sm:$0xff] %v4986_v18 }
 0x5a2   : > { %2639 = vrot.lane.b32.xlu0 %v4595_v11, %s3909_s18  ;;  %1844 = vrot.lane.b32.xlu1 %v4595_v11, %s3904_s26 }
 0x5a4   : > { %v4992_v7 = vpop.permute.xlu0 %2277  ;;  %v4994_v42 = vpop.permute.xlu1 %2012 }
 0x5a5   : > { %7246 = vst [vmem:[#allocation68_spill] sm:$0xff] %v4992_v7  ;;  %7247 = vst [vmem:[#allocation69_spill] sm:$0xff] %v4994_v42 }
 0x5a6   : > { %2197 = vrot.lane.b32.xlu0 %v4595_v11, %s3901_s21  ;;  %1932 = vrot.lane.b32.xlu1 %v4595_v11, %s3903_s23 }
 0x5a8   : > { %v5000_v52 = vpop.permute.xlu0 %2189  ;;  %v5002_v8 = vpop.permute.xlu1 %2100 }
 0x5a9   : > { %7248 = vst [vmem:[#allocation70_spill] sm:$0xff] %v5000_v52  ;;  %7249 = vst [vmem:[#allocation71_spill] sm:$0xff] %v5002_v8 }
 0x5aa   : > { %2550 = vrot.lane.b32.xlu0 %v4595_v11, %s3910_s24  ;;  %2020 = vrot.lane.b32.xlu1 %v4595_v11, %s3902_s22 }
 0x5ac   : > { %v5008_v20 = vpop.permute.xlu0 %2453  ;;  %v5010_v55 = vpop.permute.xlu1 %2275 }
 0x5ad   : > { %7250 = vst [vmem:[#allocation72_spill] sm:$0xff] %v5008_v20  ;;  %7251 = vst [vmem:[#allocation73_spill] sm:$0xff] %v5010_v55  ;;  %v5026_v20 = vld [vmem:[#allocation4 + $0x58] sm:$0xff] }
 0x5ae   : > { %2461 = vrot.lane.b32.xlu0 %v4595_v11, %s3911_s25  ;;  %1583 = vrot.lane.b32.xlu1 %v5012_v14, %s3906_s28 }
 0x5b0   : > { %v5018_v52 = vpop.permute.xlu0 %1573  ;;  %v5020_v36 = vpop.permute.xlu1 %2631 }
 0x5b1   : > { %7252 = vst [vmem:[#allocation74_spill] sm:$0xff] %v5020_v36 }
 0x5b2   : > { %2817 = vrot.lane.b32.xlu0 %v4595_v11, %s3912_s29  ;;  %1671 = vrot.lane.b32.xlu1 %v5012_v14, %s3905_s27 }
 0x5b4   : > { %v5028_v55 = vpop.permute.xlu0 %1661  ;;  %v5030_v7 = vpop.permute.xlu1 %2629 }
 0x5b5   : > { %7253 = vst [vmem:[#allocation75_spill] sm:$0xff] %v5028_v55  ;;  %7254 = vst [vmem:[#allocation76_spill] sm:$0xff] %v5030_v7 }
 0x5b6   : > { %1581 = vrot.lane.b32.xlu0 %v5026_v20, %s3906_s28  ;;  %1759 = vrot.lane.b32.xlu1 %v5012_v14, %s3907_s17 }
 0x5b8   : > { %v5036_v38 = vpop.permute.xlu0 %1749  ;;  %v5038_v36 = vpop.permute.xlu1 %2187 }
 0x5b9   : > { %7255 = vst [vmem:[#allocation77_spill] sm:$0xff] %v5036_v38  ;;  %7256 = vst [vmem:[#allocation78_spill] sm:$0xff] %v5038_v36 }
 0x5ba   : > { %1669 = vrot.lane.b32.xlu0 %v5026_v20, %s3905_s27  ;;  %1848 = vrot.lane.b32.xlu1 %v5012_v14, %s3904_s26 }
 0x5bc   : > { %v5044_v11 = vpop.permute.xlu0 %1838  ;;  %v5046_v46 = vpop.permute.xlu1 %2542 }
 0x5bd   : > { %7257 = vst [vmem:[#allocation79_spill] sm:$0xff] %v5044_v11  ;;  %7258 = vst [vmem:[#allocation80_spill] sm:$0xff] %v5046_v46 }
 0x5be   : > { %1757 = vrot.lane.b32.xlu0 %v5026_v20, %s3907_s17  ;;  %1936 = vrot.lane.b32.xlu1 %v5012_v14, %s3903_s23 }
 0x5c0   : > { %v5052_v7 = vpop.permute.xlu0 %1926  ;;  %v5054_v62 = vpop.permute.xlu1 %2540 }
 0x5c1   : > { %7259 = vst [vmem:[#allocation81_spill] sm:$0xff] %v5054_v62 }
 0x5c2   : > { %1846 = vrot.lane.b32.xlu0 %v5026_v20, %s3904_s26  ;;  %2024 = vrot.lane.b32.xlu1 %v5012_v14, %s3902_s22 }
 0x5c4   : > { %v5060_v36 = vpop.permute.xlu0 %2014  ;;  %v5062_v5 = vpop.permute.xlu1 %2451 }
 0x5c5   : > { %7260 = vst [vmem:[#allocation82_spill] sm:$0xff] %v5060_v36  ;;  %7261 = vst [vmem:[#allocation83_spill] sm:$0xff] %v5062_v5 }
 0x5c6   : > { %1934 = vrot.lane.b32.xlu0 %v5026_v20, %s3903_s23  ;;  %2112 = vrot.lane.b32.xlu1 %v5012_v14, %s3908_s16 }
 0x5c8   : > { %v5068_v46 = vpop.permute.xlu0 %2102  ;;  %v5070_v21 = vpop.permute.xlu1 %1575 }
 0x5c9   : > { %7262 = vst [vmem:[#allocation84_spill] sm:$0xff] %v5068_v46  ;;  %7263 = vst [vmem:[#allocation85_spill] sm:$0xff] %v5070_v21 }
 0x5ca   : > { %2022 = vrot.lane.b32.xlu0 %v5026_v20, %s3902_s22  ;;  %2110 = vrot.lane.b32.xlu1 %v5026_v20, %s3908_s16 }
 0x5cc   : > { %v5076_v62 = vpop.permute.xlu0 %2279  ;;  %v5078_v23 = vpop.permute.xlu1 %1663 }
 0x5cd   : > { %7264 = vst [vmem:[#allocation86_spill] sm:$0xff] %v5076_v62  ;;  %7265 = vst [vmem:[#allocation87_spill] sm:$0xff] %v5078_v23 }
 0x5ce   : > { %2289 = vrot.lane.b32.xlu0 %v5012_v14, %s3900_s20  ;;  %2287 = vrot.lane.b32.xlu1 %v5026_v20, %s3900_s20 }
 0x5d0   : > { %v5084_v5 = vpop.permute.xlu0 %2633  ;;  %v5086_v42 = vpop.permute.xlu1 %1751 }
 0x5d1   : > { %7266 = vst [vmem:[#allocation88_spill] sm:$0xff] %v5084_v5  ;;  %7267 = vst [vmem:[#allocation89_spill] sm:$0xff] %v5086_v42 }
 0x5d2   : > { %2201 = vrot.lane.b32.xlu0 %v5012_v14, %s3901_s21  ;;  %2643 = vrot.lane.b32.xlu1 %v5012_v14, %s3909_s18 }
 0x5d4   : > { %v5092_v36 = vpop.permute.xlu0 %2191  ;;  %v5094_v62 = vpop.permute.xlu1 %1840 }
 0x5d5   : > { %7268 = vst [vmem:[#allocation90_spill] sm:$0xff] %v5092_v36  ;;  %7269 = vst [vmem:[#allocation91_spill] sm:$0xff] %v5094_v62 }
 0x5d6   : > { %2465 = vrot.lane.b32.xlu0 %v5012_v14, %s3911_s25  ;;  %2641 = vrot.lane.b32.xlu1 %v5026_v20, %s3909_s18 }
 0x5d8   : > { %v5100_v30 = vpop.permute.xlu0 %2544  ;;  %v5102_v5 = vpop.permute.xlu1 %1928 }
 0x5d9   : > { %7270 = vst [vmem:[#allocation92_spill] sm:$0xff] %v5100_v30  ;;  %7271 = vst [vmem:[#allocation93_spill] sm:$0xff] %v5102_v5 }
 0x5da   : > { %1585 = vrot.lane.b32.xlu0 %v4611_v31, %s3906_s28  ;;  %2199 = vrot.lane.b32.xlu1 %v5026_v20, %s3901_s21 }
 0x5dc   : > { %v5108_v37 = vpop.permute.xlu0 %2455  ;;  %v5110_v36 = vpop.permute.xlu1 %2016 }
 0x5dd   : > { %7272 = vst [vmem:[#allocation94_spill] sm:$0xff] %v5108_v37  ;;  %7273 = vst [vmem:[#allocation95_spill] sm:$0xff] %v5110_v36 }
 0x5de   : > { %1673 = vrot.lane.b32.xlu0 %v4611_v31, %s3905_s27  ;;  %2554 = vrot.lane.b32.xlu1 %v5012_v14, %s3910_s24 }
 0x5e0   : > { %v5116_v17 = vpop.permute.xlu0 %2811  ;;  %v5118_v30 = vpop.permute.xlu1 %2104 }
 0x5e1   : > { %7274 = vst [vmem:[#allocation96_spill] sm:$0xff] %v5116_v17  ;;  %7275 = vst [vmem:[#allocation97_spill] sm:$0xff] %v5118_v30 }
 0x5e2   : > { %1761 = vrot.lane.b32.xlu0 %v4611_v31, %s3907_s17  ;;  %2552 = vrot.lane.b32.xlu1 %v5026_v20, %s3910_s24 }
 0x5e4   : > { %v5124_v6 = vpop.permute.xlu0 %1577  ;;  %v5126_v37 = vpop.permute.xlu1 %2281 }
 0x5e5   : > { %7276 = vst [vmem:[#allocation98_spill] sm:$0xff] %v5126_v37 }
 0x5e6   : > { %1850 = vrot.lane.b32.xlu0 %v4611_v31, %s3904_s26  ;;  %2463 = vrot.lane.b32.xlu1 %v5026_v20, %s3911_s25 }
 0x5e8   : > { %v5132_v36 = vpop.permute.xlu0 %1665  ;;  %v5134_v17 = vpop.permute.xlu1 %2637 }
 0x5e9   : > { %7277 = vst [vmem:[#allocation99_spill] sm:$0xff] %v5132_v36  ;;  %7278 = vst [vmem:[#allocation100_spill] sm:$0xff] %v5134_v17  ;;  %v5156_v17 = vld [vmem:[#allocation4 + $0x70] sm:$0xff] }
 0x5ea   : > { %1938 = vrot.lane.b32.xlu0 %v4611_v31, %s3903_s23  ;;  %2821 = vrot.lane.b32.xlu1 %v5012_v14, %s3912_s29 }
 0x5ec   : > { %v5140_v35 = vpop.permute.xlu0 %1753  ;;  %v5142_v41 = vpop.permute.xlu1 %2635 }
 0x5ed   : > { %7279 = vst [vmem:[#allocation101_spill] sm:$0xff] %v5140_v35  ;;  %7280 = vst [vmem:[#allocation102_spill] sm:$0xff] %v5142_v41 }
 0x5ee   : > { %2026 = vrot.lane.b32.xlu0 %v4611_v31, %s3902_s22  ;;  %2819 = vrot.lane.b32.xlu1 %v5026_v20, %s3912_s29 }
 0x5f0   : > { %v5148_v37 = vpop.permute.xlu0 %1842  ;;  %v5150_v9 = vpop.permute.xlu1 %2193 }
 0x5f1   : > { %7281 = vst [vmem:[#allocation103_spill] sm:$0xff] %v5148_v37  ;;  %7282 = vst [vmem:[#allocation104_spill] sm:$0xff] %v5150_v9 }
 0x5f2   : > { %2291 = vrot.lane.b32.xlu0 %v4611_v31, %s3900_s20  ;;  %2114 = vrot.lane.b32.xlu1 %v4611_v31, %s3908_s16 }
 0x5f4   : > { %v5158_v13 = vpop.permute.xlu0 %1930  ;;  %v5160_v41 = vpop.permute.xlu1 %2548 }
 0x5f5   : > { %7283 = vst [vmem:[#allocation105_spill] sm:$0xff] %v5160_v41 }
 0x5f6   : > { %2645 = vrot.lane.b32.xlu0 %v4611_v31, %s3909_s18  ;;  %1587 = vrot.lane.b32.xlu1 %v5156_v17, %s3906_s28 }
 0x5f8   : > { %v5166_v59 = vpop.permute.xlu0 %2018  ;;  %v5168_v9 = vpop.permute.xlu1 %2546 }
 0x5f9   : > { %7284 = vst [vmem:[#allocation106_spill] sm:$0xff] %v5166_v59  ;;  %7285 = vst [vmem:[#allocation107_spill] sm:$0xff] %v5168_v9 }
 0x5fa   : > { %2203 = vrot.lane.b32.xlu0 %v4611_v31, %s3901_s21  ;;  %1675 = vrot.lane.b32.xlu1 %v5156_v17, %s3905_s27 }
 0x5fc   : > { %v5174_v58 = vpop.permute.xlu0 %2106  ;;  %v5176_v49 = vpop.permute.xlu1 %2457 }
 0x5fd   : > { %7286 = vst [vmem:[#allocation108_spill] sm:$0xff] %v5174_v58  ;;  %7287 = vst [vmem:[#allocation109_spill] sm:$0xff] %v5176_v49 }
 0x5fe   : > { %2556 = vrot.lane.b32.xlu0 %v4611_v31, %s3910_s24  ;;  %1763 = vrot.lane.b32.xlu1 %v5156_v17, %s3907_s17 }
 0x600   : > { %v5182_v41 = vpop.permute.xlu0 %2283  ;;  %v5184_v59 = vpop.permute.xlu1 %2815 }
 0x601   : > { %7288 = vst [vmem:[#allocation110_spill] sm:$0xff] %v5182_v41  ;;  %7289 = vst [vmem:[#allocation111_spill] sm:$0xff] %v5184_v59  ;;  %v5202_v59 = vld [vmem:[#allocation4 + $0x78] sm:$0xff] }
 0x602   : > { %2467 = vrot.lane.b32.xlu0 %v4611_v31, %s3911_s25  ;;  %1852 = vrot.lane.b32.xlu1 %v5156_v17, %s3904_s26 }
 0x604   : > { %v5190_v9 = vpop.permute.xlu0 %2195  ;;  %v5192_v15 = vpop.permute.xlu1 %2813 }
 0x605   : > { %7290 = vst [vmem:[#allocation112_spill] sm:$0xff] %v5190_v9  ;;  %7291 = vst [vmem:[#allocation113_spill] sm:$0xff] %v5192_v15 }
 0x606   : > { %2823 = vrot.lane.b32.xlu0 %v4611_v31, %s3912_s29  ;;  %1940 = vrot.lane.b32.xlu1 %v5156_v17, %s3903_s23 }
 0x608   : > { %v5198_v49 = vpop.permute.xlu0 %2459  ;;  %v5200_v41 = vpop.permute.xlu1 %1579 }
 0x609   : > { %7292 = vst [vmem:[#allocation114_spill] sm:$0xff] %v5198_v49 }
 0x60a   : > { %1589 = vrot.lane.b32.xlu0 %v5202_v59, %s3906_s28  ;;  %2028 = vrot.lane.b32.xlu1 %v5156_v17, %s3902_s22 }
 0x60c   : > { %v5208_v9 = vpop.permute.xlu0 %2108  ;;  %v5210_v15 = vpop.permute.xlu1 %1667 }
 0x60d   : > { %7293 = vst [vmem:[#allocation115_spill] sm:$0xff] %v5208_v9  ;;  %7294 = vst [vmem:[#allocation116_spill] sm:$0xff] %v5210_v15 }
 0x60e   : > { %1677 = vrot.lane.b32.xlu0 %v5202_v59, %s3905_s27  ;;  %2293 = vrot.lane.b32.xlu1 %v5156_v17, %s3900_s20 }
 0x610   : > { %v5216_v31 = vpop.permute.xlu0 %2285  ;;  %v5218_v49 = vpop.permute.xlu1 %1755 }
 0x611   : > { %7295 = vst [vmem:[#allocation117_spill] sm:$0xff] %v5216_v31  ;;  %7296 = vst [vmem:[#allocation118_spill] sm:$0xff] %v5218_v49 }
 0x612   : > { %1765 = vrot.lane.b32.xlu0 %v5202_v59, %s3907_s17  ;;  %2649 = vrot.lane.b32.xlu1 %v5202_v59, %s3909_s18 }
 0x614   : > { %v5224_v8 = vpop.permute.xlu0 %2639  ;;  %v5226_v29 = vpop.permute.xlu1 %1844 }
 0x615   : > { %7297 = vst [vmem:[#allocation119_spill] sm:$0xff] %v5224_v8  ;;  %7298 = vst [vmem:[#allocation120_spill] sm:$0xff] %v5226_v29 }
 0x616   : > { %1854 = vrot.lane.b32.xlu0 %v5202_v59, %s3904_s26  ;;  %2647 = vrot.lane.b32.xlu1 %v5156_v17, %s3909_s18 }
 0x618   : > { %v5232_v46 = vpop.permute.xlu0 %2197  ;;  %v5234_v31 = vpop.permute.xlu1 %1932 }
 0x619   : > { %7299 = vst [vmem:[#allocation121_spill] sm:$0xff] %v5232_v46 }
 0x61a   : > { %1942 = vrot.lane.b32.xlu0 %v5202_v59, %s3903_s23  ;;  %2205 = vrot.lane.b32.xlu1 %v5156_v17, %s3901_s21 }
 0x61c   : > { %v5240_v30 = vpop.permute.xlu0 %2550  ;;  %v5242_v8 = vpop.permute.xlu1 %2020 }
 0x61d   : > { %7300 = vst [vmem:[#allocation122_spill] sm:$0xff] %v5240_v30  ;;  %7301 = vst [vmem:[#allocation123_spill] sm:$0xff] %v5242_v8 }
 0x61e   : > { %2030 = vrot.lane.b32.xlu0 %v5202_v59, %s3902_s22  ;;  %2560 = vrot.lane.b32.xlu1 %v5202_v59, %s3910_s24 }
 0x620   : > { %v5248_v55 = vpop.permute.xlu0 %2461  ;;  %v5250_v46 = vpop.permute.xlu1 %1583 }
 0x621   : > { %7302 = vst [vmem:[#allocation124_spill] sm:$0xff] %v5248_v55 }
 0x622   : > { %2118 = vrot.lane.b32.xlu0 %v5202_v59, %s3908_s16  ;;  %2558 = vrot.lane.b32.xlu1 %v5156_v17, %s3910_s24 }
 0x624   : > { %v5256_v23 = vpop.permute.xlu0 %2817  ;;  %v5258_v30 = vpop.permute.xlu1 %1671 }
 0x625   : > { %7303 = vst [vmem:[#allocation125_spill] sm:$0xff] %v5256_v23  ;;  %7304 = vst [vmem:[#allocation126_spill] sm:$0xff] %v5258_v30 }
 0x626   : > { %2116 = vrot.lane.b32.xlu0 %v5156_v17, %s3908_s16  ;;  %2469 = vrot.lane.b32.xlu1 %v5156_v17, %s3911_s25 }
 0x628   : > { %v5264_v8 = vpop.permute.xlu0 %1581  ;;  %v5266_v55 = vpop.permute.xlu1 %1759 }
 0x629   : > { %7305 = vst [vmem:[#allocation127_spill] sm:$0xff] %v5264_v8  ;;  %7306 = vst [vmem:[#allocation128_spill] sm:$0xff] %v5266_v55 }
 0x62a   : > { %2295 = vrot.lane.b32.xlu0 %v5202_v59, %s3900_s20  ;;  %2827 = vrot.lane.b32.xlu1 %v5202_v59, %s3912_s29 }
 0x62c   : > { %v5272_v58 = vpop.permute.xlu0 %1669  ;;  %v5274_v23 = vpop.permute.xlu1 %1848 }
 0x62d   : > { %7307 = vst [vmem:[#allocation129_spill] sm:$0xff] %v5272_v58  ;;  %7308 = vst [vmem:[#allocation130_spill] sm:$0xff] %v5274_v23 }
 0x62e   : > { %2207 = vrot.lane.b32.xlu0 %v5202_v59, %s3901_s21  ;;  %2825 = vrot.lane.b32.xlu1 %v5156_v17, %s3912_s29 }
 0x630   : > { %v5280_v36 = vpop.permute.xlu0 %1757  ;;  %v5282_v9 = vpop.permute.xlu1 %1936 }
 0x631   : > { %7309 = vst [vmem:[#allocation131_spill] sm:$0xff] %v5280_v36 }
 0x632   : > { %2471 = vrot.lane.b32.xlu0 %v5202_v59, %s3911_s25  ;;  %1591 = vrot.lane.b32.xlu1 %v4621_v33, %s3906_s28 }
 0x634   : > { %v5288_v15 = vpop.permute.xlu0 %1846  ;;  %v5290_v58 = vpop.permute.xlu1 %2024 }
 0x635   : > { %7310 = vst [vmem:[#allocation132_spill] sm:$0xff] %v5288_v15  ;;  %7311 = vst [vmem:[#allocation133_spill] sm:$0xff] %v5290_v58 }
 0x636   : > { %2120 = vrot.lane.b32.xlu0 %v4621_v33, %s3908_s16  ;;  %1679 = vrot.lane.b32.xlu1 %v4621_v33, %s3905_s27 }
 0x638   : > { %v5296_v30 = vpop.permute.xlu0 %1934  ;;  %v5298_v45 = vpop.permute.xlu1 %2112 }
 0x639   : > { %7312 = vst [vmem:[#allocation134_spill] sm:$0xff] %v5296_v30  ;;  %7313 = vst [vmem:[#allocation135_spill] sm:$0xff] %v5298_v45 }
 0x63a   : > { %2297 = vrot.lane.b32.xlu0 %v4621_v33, %s3900_s20  ;;  %1767 = vrot.lane.b32.xlu1 %v4621_v33, %s3907_s17 }
 0x63c   : > { %v5304_v40 = vpop.permute.xlu0 %2022  ;;  %v5306_v3 = vpop.permute.xlu1 %2110 }
 0x63d   : > { %7314 = vst [vmem:[#allocation136_spill] sm:$0xff] %v5304_v40  ;;  %7315 = vst [vmem:[#allocation137_spill] sm:$0xff] %v5306_v3 }
 0x63e   : > { %2651 = vrot.lane.b32.xlu0 %v4621_v33, %s3909_s18  ;;  %1856 = vrot.lane.b32.xlu1 %v4621_v33, %s3904_s26 }
 0x640   : > { %v5312_v58 = vpop.permute.xlu0 %2289  ;;  %v5314_v34 = vpop.permute.xlu1 %2287 }
 0x641   : > { %7316 = vst [vmem:[#allocation138_spill] sm:$0xff] %v5312_v58  ;;  %7317 = vst [vmem:[#allocation139_spill] sm:$0xff] %v5314_v34  ;;  %v5332_v34 = vld [vmem:[#allocation4 + $0x90] sm:$0xff] }
 0x642   : > { %2209 = vrot.lane.b32.xlu0 %v4621_v33, %s3901_s21  ;;  %1944 = vrot.lane.b32.xlu1 %v4621_v33, %s3903_s23 }
 0x644   : > { %v5320_v45 = vpop.permute.xlu0 %2201  ;;  %v5322_v40 = vpop.permute.xlu1 %2643 }
 0x645   : > { %7318 = vst [vmem:[#allocation140_spill] sm:$0xff] %v5320_v45  ;;  %7319 = vst [vmem:[#allocation141_spill] sm:$0xff] %v5322_v40 }
 0x646   : > { %2562 = vrot.lane.b32.xlu0 %v4621_v33, %s3910_s24  ;;  %2032 = vrot.lane.b32.xlu1 %v4621_v33, %s3902_s22 }
 0x648   : > { %v5328_v3 = vpop.permute.xlu0 %2465  ;;  %v5330_v58 = vpop.permute.xlu1 %2641 }
 0x649   : > { %7320 = vst [vmem:[#allocation142_spill] sm:$0xff] %v5328_v3  ;;  %7321 = vst [vmem:[#allocation143_spill] sm:$0xff] %v5330_v58  ;;  %v5346_v3 = vld [vmem:[#allocation4 + $0x88] sm:$0xff] }
 0x64a   : > { %2473 = vrot.lane.b32.xlu0 %v4621_v33, %s3911_s25  ;;  %1595 = vrot.lane.b32.xlu1 %v5332_v34, %s3906_s28 }
 0x64c   : > { %v5338_v45 = vpop.permute.xlu0 %1585  ;;  %v5340_v40 = vpop.permute.xlu1 %2199 }
 0x64d   : > { %7322 = vst [vmem:[#allocation144_spill] sm:$0xff] %v5340_v40 }
 0x64e   : > { %2829 = vrot.lane.b32.xlu0 %v4621_v33, %s3912_s29  ;;  %1683 = vrot.lane.b32.xlu1 %v5332_v34, %s3905_s27 }
 0x650   : > { %v5348_v58 = vpop.permute.xlu0 %1673  ;;  %v5350_v26 = vpop.permute.xlu1 %2554 }
 0x651   : > { %7323 = vst [vmem:[#allocation145_spill] sm:$0xff] %v5348_v58  ;;  %7324 = vst [vmem:[#allocation146_spill] sm:$0xff] %v5350_v26 }
 0x652   : > { %1593 = vrot.lane.b32.xlu0 %v5346_v3, %s3906_s28  ;;  %1771 = vrot.lane.b32.xlu1 %v5332_v34, %s3907_s17 }
 0x654   : > { %v5356_v19 = vpop.permute.xlu0 %1761  ;;  %v5358_v40 = vpop.permute.xlu1 %2552 }
 0x655   : > { %7325 = vst [vmem:[#allocation147_spill] sm:$0xff] %v5356_v19  ;;  %7326 = vst [vmem:[#allocation148_spill] sm:$0xff] %v5358_v40 }
 0x656   : > { %1681 = vrot.lane.b32.xlu0 %v5346_v3, %s3905_s27  ;;  %1860 = vrot.lane.b32.xlu1 %v5332_v34, %s3904_s26 }
 0x658   : > { %v5364_v33 = vpop.permute.xlu0 %1850  ;;  %v5366_v58 = vpop.permute.xlu1 %2463 }
 0x659   : > { %7327 = vst [vmem:[#allocation149_spill] sm:$0xff] %v5364_v33  ;;  %7328 = vst [vmem:[#allocation150_spill] sm:$0xff] %v5366_v58 }
 0x65a   : > { %1769 = vrot.lane.b32.xlu0 %v5346_v3, %s3907_s17  ;;  %1948 = vrot.lane.b32.xlu1 %v5332_v34, %s3903_s23 }
 0x65c   : > { %v5372_v26 = vpop.permute.xlu0 %1938  ;;  %v5374_v53 = vpop.permute.xlu1 %2821 }
 0x65d   : > { %7329 = vst [vmem:[#allocation151_spill] sm:$0xff] %v5374_v53 }
 0x65e   : > { %1858 = vrot.lane.b32.xlu0 %v5346_v3, %s3904_s26  ;;  %2036 = vrot.lane.b32.xlu1 %v5332_v34, %s3902_s22 }
 0x660   : > { %v5380_v40 = vpop.permute.xlu0 %2026  ;;  %v5382_v0 = vpop.permute.xlu1 %2819 }
 0x661   : > { %7330 = vst [vmem:[#allocation152_spill] sm:$0xff] %v5380_v40  ;;  %7331 = vst [vmem:[#allocation153_spill] sm:$0xff] %v5382_v0 }
 0x662   : > { %1946 = vrot.lane.b32.xlu0 %v5346_v3, %s3903_s23  ;;  %2124 = vrot.lane.b32.xlu1 %v5332_v34, %s3908_s16 }
 0x664   : > { %v5388_v58 = vpop.permute.xlu0 %2291  ;;  %v5390_v56 = vpop.permute.xlu1 %2114 }
 0x665   : > { %7332 = vst [vmem:[#allocation154_spill] sm:$0xff] %v5388_v58  ;;  %7333 = vst [vmem:[#allocation155_spill] sm:$0xff] %v5390_v56 }
 0x666   : > { %2034 = vrot.lane.b32.xlu0 %v5346_v3, %s3902_s22  ;;  %2122 = vrot.lane.b32.xlu1 %v5346_v3, %s3908_s16 }
 0x668   : > { %v5396_v53 = vpop.permute.xlu0 %2645  ;;  %v5398_v40 = vpop.permute.xlu1 %1587 }
 0x669   : > { %7334 = vst [vmem:[#allocation156_spill] sm:$0xff] %v5396_v53  ;;  %7335 = vst [vmem:[#allocation157_spill] sm:$0xff] %v5398_v40 }
 0x66a   : > { %2301 = vrot.lane.b32.xlu0 %v5332_v34, %s3900_s20  ;;  %2299 = vrot.lane.b32.xlu1 %v5346_v3, %s3900_s20 }
 0x66c   : > { %v5404_v0 = vpop.permute.xlu0 %2203  ;;  %v5406_v58 = vpop.permute.xlu1 %1675 }
 0x66d   : > { %7336 = vst [vmem:[#allocation158_spill] sm:$0xff] %v5404_v0  ;;  %7337 = vst [vmem:[#allocation159_spill] sm:$0xff] %v5406_v58 }
 0x66e   : > { %2213 = vrot.lane.b32.xlu0 %v5332_v34, %s3901_s21  ;;  %2655 = vrot.lane.b32.xlu1 %v5332_v34, %s3909_s18 }
 0x670   : > { %v5412_v56 = vpop.permute.xlu0 %2556  ;;  %v5414_v53 = vpop.permute.xlu1 %1763 }
 0x671   : > { %7338 = vst [vmem:[#allocation160_spill] sm:$0xff] %v5412_v56  ;;  %7339 = vst [vmem:[#allocation161_spill] sm:$0xff] %v5414_v53 }
 0x672   : > { %2477 = vrot.lane.b32.xlu0 %v5332_v34, %s3911_s25  ;;  %2653 = vrot.lane.b32.xlu1 %v5346_v3, %s3909_s18 }
 0x674   : > { %v5420_v43 = vpop.permute.xlu0 %2467  ;;  %v5422_v0 = vpop.permute.xlu1 %1852 }
 0x675   : > { %7340 = vst [vmem:[#allocation162_spill] sm:$0xff] %v5420_v43  ;;  %7341 = vst [vmem:[#allocation163_spill] sm:$0xff] %v5422_v0 }
 0x676   : > { %1597 = vrot.lane.b32.xlu0 %v4637_v54, %s3906_s28  ;;  %2211 = vrot.lane.b32.xlu1 %v5346_v3, %s3901_s21 }
 0x678   : > { %v5428_v58 = vpop.permute.xlu0 %2823  ;;  %v5430_v56 = vpop.permute.xlu1 %1940 }
 0x679   : > { %7342 = vst [vmem:[#allocation164_spill] sm:$0xff] %v5428_v58  ;;  %7343 = vst [vmem:[#allocation165_spill] sm:$0xff] %v5430_v56 }
 0x67a   : > { %1685 = vrot.lane.b32.xlu0 %v4637_v54, %s3905_s27  ;;  %2566 = vrot.lane.b32.xlu1 %v5332_v34, %s3910_s24 }
 0x67c   : > { %v5436_v51 = vpop.permute.xlu0 %1589  ;;  %v5438_v43 = vpop.permute.xlu1 %2028 }
 0x67d   : > { %7344 = vst [vmem:[#allocation166_spill] sm:$0xff] %v5438_v43 }
 0x67e   : > { %1773 = vrot.lane.b32.xlu0 %v4637_v54, %s3907_s17  ;;  %2564 = vrot.lane.b32.xlu1 %v5346_v3, %s3910_s24 }
 0x680   : > { %v5444_v27 = vpop.permute.xlu0 %1677  ;;  %v5446_v58 = vpop.permute.xlu1 %2293 }
 0x681   : > { %7345 = vst [vmem:[#allocation167_spill] sm:$0xff] %v5444_v27  ;;  %7346 = vst [vmem:[#allocation168_spill] sm:$0xff] %v5446_v58 }
 0x682   : > { %1862 = vrot.lane.b32.xlu0 %v4637_v54, %s3904_s26  ;;  %2475 = vrot.lane.b32.xlu1 %v5346_v3, %s3911_s25 }
 0x684   : > { %v5452_v50 = vpop.permute.xlu0 %1765  ;;  %v5454_v10 = vpop.permute.xlu1 %2649 }
 0x685   : > { %7347 = vst [vmem:[#allocation169_spill] sm:$0xff] %v5452_v50  ;;  %7348 = vst [vmem:[#allocation170_spill] sm:$0xff] %v5454_v10  ;;  %v5476_v10 = vld [vmem:[#allocation4 + $0xa0] sm:$0xff] }
 0x686   : > { %1950 = vrot.lane.b32.xlu0 %v4637_v54, %s3903_s23  ;;  %2833 = vrot.lane.b32.xlu1 %v5332_v34, %s3912_s29 }
 0x688   : > { %v5460_v43 = vpop.permute.xlu0 %1854  ;;  %v5462_v27 = vpop.permute.xlu1 %2647 }
 0x689   : > { %7349 = vst [vmem:[#allocation171_spill] sm:$0xff] %v5460_v43  ;;  %7350 = vst [vmem:[#allocation172_spill] sm:$0xff] %v5462_v27  ;;  %v5656_v43 = vld [vmem:[#allocation4 + $0xb0] sm:$0xff] }
 0x68a   : > { %2038 = vrot.lane.b32.xlu0 %v4637_v54, %s3902_s22  ;;  %2831 = vrot.lane.b32.xlu1 %v5346_v3, %s3912_s29 }
 0x68c   : > { %v5468_v58 = vpop.permute.xlu0 %1942  ;;  %v5470_v11 = vpop.permute.xlu1 %2205 }
 0x68d   : > { %7351 = vst [vmem:[#allocation173_spill] sm:$0xff] %v5470_v11 }
 0x68e   : > { %2303 = vrot.lane.b32.xlu0 %v4637_v54, %s3900_s20  ;;  %2126 = vrot.lane.b32.xlu1 %v4637_v54, %s3908_s16 }
 0x690   : > { %v5478_v62 = vpop.permute.xlu0 %2030  ;;  %v5480_v27 = vpop.permute.xlu1 %2560 }
 0x691   : > { %7352 = vst [vmem:[#allocation174_spill] sm:$0xff] %v5478_v62  ;;  %7353 = vst [vmem:[#allocation175_spill] sm:$0xff] %v5480_v27 }
 0x692   : > { %2657 = vrot.lane.b32.xlu0 %v4637_v54, %s3909_s18  ;;  %1599 = vrot.lane.b32.xlu1 %v5476_v10, %s3906_s28 }
 0x694   : > { %v5486_v38 = vpop.permute.xlu0 %2118  ;;  %v5488_v11 = vpop.permute.xlu1 %2558 }
 0x695   : > { %7354 = vst [vmem:[#allocation176_spill] sm:$0xff] %v5486_v38  ;;  %7355 = vst [vmem:[#allocation177_spill] sm:$0xff] %v5488_v11 }
 0x696   : > { %2215 = vrot.lane.b32.xlu0 %v4637_v54, %s3901_s21  ;;  %1687 = vrot.lane.b32.xlu1 %v5476_v10, %s3905_s27 }
 0x698   : > { %v5494_v42 = vpop.permute.xlu0 %2116  ;;  %v5496_v62 = vpop.permute.xlu1 %2469 }
 0x699   : > { %7356 = vst [vmem:[#allocation178_spill] sm:$0xff] %v5494_v42  ;;  %7357 = vst [vmem:[#allocation179_spill] sm:$0xff] %v5496_v62 }
 0x69a   : > { %2568 = vrot.lane.b32.xlu0 %v4637_v54, %s3910_s24  ;;  %1775 = vrot.lane.b32.xlu1 %v5476_v10, %s3907_s17 }
 0x69c   : > { %v5502_v27 = vpop.permute.xlu0 %2295  ;;  %v5504_v38 = vpop.permute.xlu1 %2827 }
 0x69d   : > { %7358 = vst [vmem:[#allocation180_spill] sm:$0xff] %v5502_v27  ;;  %7359 = vst [vmem:[#allocation181_spill] sm:$0xff] %v5504_v38  ;;  %v5522_v38 = vld [vmem:[#allocation4 + $0xa8] sm:$0xff] }
 0x69e   : > { %2479 = vrot.lane.b32.xlu0 %v4637_v54, %s3911_s25  ;;  %1864 = vrot.lane.b32.xlu1 %v5476_v10, %s3904_s26 }
 0x6a0   : > { %v5510_v11 = vpop.permute.xlu0 %2207  ;;  %v5512_v42 = vpop.permute.xlu1 %2825 }
 0x6a1   : > { %7360 = vst [vmem:[#allocation182_spill] sm:$0xff] %v5510_v11  ;;  %7361 = vst [vmem:[#allocation183_spill] sm:$0xff] %v5512_v42 }
 0x6a2   : > { %2835 = vrot.lane.b32.xlu0 %v4637_v54, %s3912_s29  ;;  %1952 = vrot.lane.b32.xlu1 %v5476_v10, %s3903_s23 }
 0x6a4   : > { %v5518_v62 = vpop.permute.xlu0 %2471  ;;  %v5520_v27 = vpop.permute.xlu1 %1591 }
 0x6a5   : > { %7362 = vst [vmem:[#allocation184_spill] sm:$0xff] %v5518_v62 }
 0x6a6   : > { %1601 = vrot.lane.b32.xlu0 %v5522_v38, %s3906_s28  ;;  %2040 = vrot.lane.b32.xlu1 %v5476_v10, %s3902_s22 }
 0x6a8   : > { %v5528_v11 = vpop.permute.xlu0 %2120  ;;  %v5530_v42 = vpop.permute.xlu1 %1679 }
 0x6a9   : > { %7363 = vst [vmem:[#allocation185_spill] sm:$0xff] %v5528_v11  ;;  %7364 = vst [vmem:[#allocation186_spill] sm:$0xff] %v5530_v42 }
 0x6aa   : > { %1689 = vrot.lane.b32.xlu0 %v5522_v38, %s3905_s27  ;;  %2307 = vrot.lane.b32.xlu1 %v5522_v38, %s3900_s20 }
 0x6ac   : > { %v5536_v54 = vpop.permute.xlu0 %2297  ;;  %v5538_v62 = vpop.permute.xlu1 %1767 }
 0x6ad   : > { %7365 = vst [vmem:[#allocation187_spill] sm:$0xff] %v5536_v54  ;;  %7366 = vst [vmem:[#allocation188_spill] sm:$0xff] %v5538_v62  ;;  %v5708_v62 = vld [vmem:[#allocation4 + $0x8] sm:$0xff] }
 0x6ae   : > { %1777 = vrot.lane.b32.xlu0 %v5522_v38, %s3907_s17  ;;  %2305 = vrot.lane.b32.xlu1 %v5476_v10, %s3900_s20 }
 0x6b0   : > { %v5544_v37 = vpop.permute.xlu0 %2651  ;;  %v5546_v11 = vpop.permute.xlu1 %1856 }
 0x6b1   : > { %7367 = vst [vmem:[#allocation189_spill] sm:$0xff] %v5544_v37  ;;  %7368 = vst [vmem:[#allocation190_spill] sm:$0xff] %v5546_v11  ;;  %v5698_v11 = vld [vmem:[#allocation4 + $0x18] sm:$0xff] }
 0x6b2   : > { %1866 = vrot.lane.b32.xlu0 %v5522_v38, %s3904_s26  ;;  %2661 = vrot.lane.b32.xlu1 %v5522_v38, %s3909_s18 }
 0x6b4   : > { %v5552_v42 = vpop.permute.xlu0 %2209  ;;  %v5554_v54 = vpop.permute.xlu1 %1944 }
 0x6b5   : > { %7369 = vst [vmem:[#allocation191_spill] sm:$0xff] %v5552_v42 }
 0x6b6   : > { %1954 = vrot.lane.b32.xlu0 %v5522_v38, %s3903_s23  ;;  %2659 = vrot.lane.b32.xlu1 %v5476_v10, %s3909_s18 }
 0x6b8   : > { %v5560_v35 = vpop.permute.xlu0 %2562  ;;  %v5562_v37 = vpop.permute.xlu1 %2032 }
 0x6b9   : > { %7370 = vst [vmem:[#allocation192_spill] sm:$0xff] %v5560_v35  ;;  %7371 = vst [vmem:[#allocation193_spill] sm:$0xff] %v5562_v37 }
 0x6ba   : > { %2042 = vrot.lane.b32.xlu0 %v5522_v38, %s3902_s22  ;;  %2217 = vrot.lane.b32.xlu1 %v5476_v10, %s3901_s21 }
 0x6bc   : > { %v5568_v29 = vpop.permute.xlu0 %2473  ;;  %v5570_v42 = vpop.permute.xlu1 %1595 }
 0x6bd   : > { %7372 = vst [vmem:[#allocation194_spill] sm:$0xff] %v5568_v29 }
 0x6be   : > { %2130 = vrot.lane.b32.xlu0 %v5522_v38, %s3908_s16  ;;  %2572 = vrot.lane.b32.xlu1 %v5522_v38, %s3910_s24 }
 0x6c0   : > { %v5576_v15 = vpop.permute.xlu0 %2829  ;;  %v5578_v35 = vpop.permute.xlu1 %1683 }
 0x6c1   : > { %7373 = vst [vmem:[#allocation195_spill] sm:$0xff] %v5576_v15  ;;  %7374 = vst [vmem:[#allocation196_spill] sm:$0xff] %v5578_v35 }
 0x6c2   : > { %2128 = vrot.lane.b32.xlu0 %v5476_v10, %s3908_s16  ;;  %2570 = vrot.lane.b32.xlu1 %v5476_v10, %s3910_s24 }
 0x6c4   : > { %v5584_v37 = vpop.permute.xlu0 %1593  ;;  %v5586_v29 = vpop.permute.xlu1 %1771 }
 0x6c5   : > { %7375 = vst [vmem:[#allocation197_spill] sm:$0xff] %v5584_v37  ;;  %7376 = vst [vmem:[#allocation198_spill] sm:$0xff] %v5586_v29 }
 0x6c6   : > { %2219 = vrot.lane.b32.xlu0 %v5522_v38, %s3901_s21  ;;  %2481 = vrot.lane.b32.xlu1 %v5476_v10, %s3911_s25 }
 0x6c8   : > { %v5592_v49 = vpop.permute.xlu0 %1681  ;;  %v5594_v15 = vpop.permute.xlu1 %1860 }
 0x6c9   : > { %7377 = vst [vmem:[#allocation199_spill] sm:$0xff] %v5592_v49  ;;  %7378 = vst [vmem:[#allocation200_spill] sm:$0xff] %v5594_v15 }
 0x6ca   : > { %2483 = vrot.lane.b32.xlu0 %v5522_v38, %s3911_s25  ;;  %2839 = vrot.lane.b32.xlu1 %v5522_v38, %s3912_s29 }
 0x6cc   : > { %v5600_v35 = vpop.permute.xlu0 %1769  ;;  %v5602_v36 = vpop.permute.xlu1 %1948 }
 0x6cd   : > { %7379 = vst [vmem:[#allocation201_spill] sm:$0xff] %v5600_v35  ;;  %v5718_v35 = vld [vmem:[#allocation4 + $0x20] sm:$0xff] }
 0x6ce   : > { %2132 = vrot.lane.b32.xlu0 %v4647_v60, %s3908_s16  ;;  %2837 = vrot.lane.b32.xlu1 %v5476_v10, %s3912_s29 }
 0x6d0   : > { %v5608_v23 = vpop.permute.xlu0 %1858  ;;  %v5610_v49 = vpop.permute.xlu1 %2036 }
 0x6d1   : > { %7380 = vst [vmem:[#allocation202_spill] sm:$0xff] %v5608_v23  ;;  %7381 = vst [vmem:[#allocation203_spill] sm:$0xff] %v5610_v49 }
 0x6d2   : > { %2663 = vrot.lane.b32.xlu0 %v4647_v60, %s3909_s18  ;;  %1603 = vrot.lane.b32.xlu1 %v4647_v60, %s3906_s28 }
 0x6d4   : > { %v5616_v55 = vpop.permute.xlu0 %1946  ;;  %v5618_v33 = vpop.permute.xlu1 %2124 }
 0x6d5   : > { %7382 = vst [vmem:[#allocation204_spill] sm:$0xff] %v5616_v55  ;;  %7383 = vst [vmem:[#allocation205_spill] sm:$0xff] %v5618_v33 }
 0x6d6   : > { %2221 = vrot.lane.b32.xlu0 %v4647_v60, %s3901_s21  ;;  %1691 = vrot.lane.b32.xlu1 %v4647_v60, %s3905_s27 }
 0x6d8   : > { %v5624_v0 = vpop.permute.xlu0 %2034  ;;  %v5626_v19 = vpop.permute.xlu1 %2122 }
 0x6d9   : > { %7384 = vst [vmem:[#allocation206_spill] sm:$0xff] %v5624_v0  ;;  %7385 = vst [vmem:[#allocation207_spill] sm:$0xff] %v5626_v19  ;;  %v5648_v19 = vld [vmem:[#allocation4 + $0xb8] sm:$0xff] }
 0x6da   : > { %2574 = vrot.lane.b32.xlu0 %v4647_v60, %s3910_s24  ;;  %1779 = vrot.lane.b32.xlu1 %v4647_v60, %s3907_s17 }
 0x6dc   : > { %v5632_v49 = vpop.permute.xlu0 %2301  ;;  %v5634_v53 = vpop.permute.xlu1 %2299 }
 0x6dd   : > { %7386 = vst [vmem:[#allocation208_spill] sm:$0xff] %v5632_v49  ;;  %7387 = vst [vmem:[#allocation209_spill] sm:$0xff] %v5634_v53 }
 0x6de   : > { %2485 = vrot.lane.b32.xlu0 %v4647_v60, %s3911_s25  ;;  %1868 = vrot.lane.b32.xlu1 %v4647_v60, %s3904_s26 }
 0x6e0   : > { %v5640_v33 = vpop.permute.xlu0 %2213  ;;  %v5642_v0 = vpop.permute.xlu1 %2655 }
 0x6e1   : > { %7388 = vst [vmem:[#allocation210_spill] sm:$0xff] %v5640_v33  ;;  %7389 = vst [vmem:[#allocation211_spill] sm:$0xff] %v5642_v0 }
 0x6e2   : > { %2841 = vrot.lane.b32.xlu0 %v4647_v60, %s3912_s29  ;;  %1956 = vrot.lane.b32.xlu1 %v4647_v60, %s3903_s23 }
 0x6e4   : > { %v5650_v49 = vpop.permute.xlu0 %2477  ;;  %v5652_v53 = vpop.permute.xlu1 %2653 }
 0x6e5   : > { %7390 = vst [vmem:[#allocation212_spill] sm:$0xff] %v5650_v49  ;;  %7391 = vst [vmem:[#allocation213_spill] sm:$0xff] %v5652_v53 }
 0x6e6   : > { %1605 = vrot.lane.b32.xlu0 %v5648_v19, %s3906_s28  ;;  %2044 = vrot.lane.b32.xlu1 %v5656_v43, %s3902_s22 }
 0x6e8   : > { %v5660_v33 = vpop.permute.xlu0 %1597  ;;  %v5662_v0 = vpop.permute.xlu1 %2211 }
 0x6e9   : > { %7392 = vst [vmem:[#allocation214_spill] sm:$0xff] %v5662_v0  ;;  %v5682_v0 = vld [vmem:[#allocation4 + $0x10] sm:$0xff] }
 0x6ea   : > { %1693 = vrot.lane.b32.xlu0 %v5648_v19, %s3905_s27  ;;  %2309 = vrot.lane.b32.xlu1 %v5656_v43, %s3900_s20 }
 0x6ec   : > { %v5668_v60 = vpop.permute.xlu0 %1685  ;;  %v5670_v49 = vpop.permute.xlu1 %2566 }
 0x6ed   : > { %7393 = vst [vmem:[#allocation215_spill] sm:$0xff] %v5668_v60  ;;  %7394 = vst [vmem:[#allocation216_spill] sm:$0xff] %v5670_v49 }
 0x6ee   : > { %1781 = vrot.lane.b32.xlu0 %v5648_v19, %s3907_s17  ;;  %2809 = vrot.lane.b32.xlu1 %v4718_v2, %s3912_s29 }
 0x6f0   : > { %v5676_v53 = vpop.permute.xlu0 %1773  ;;  %v5678_v50 = vpop.permute.xlu1 %2564 }
 0x6f1   : > { %7395 = vst [vmem:[#allocation217_spill] sm:$0xff] %v5676_v53  ;;  %7396 = vst [vmem:[#allocation218_spill] sm:$0xff] %v5678_v50  ;;  %v5762_v53 = vld [vmem:[#allocation4 + $0x98] sm:$0xff] }
 0x6f2   : > { %1870 = vrot.lane.b32.xlu0 %v5648_v19, %s3904_s26  ;;  %2445 = vrot.lane.b32.xlu1 %v5682_v0, %s3911_s25 }
 0x6f4   : > { %v5686_v60 = vpop.permute.xlu0 %1862  ;;  %v5688_v49 = vpop.permute.xlu1 %2475 }
 0x6f5   : > { %7397 = vst [vmem:[#allocation219_spill] sm:$0xff] %v5686_v60  ;;  %7398 = vst [vmem:[#allocation220_spill] sm:$0xff] %v5688_v49 }
 0x6f6   : > { %1958 = vrot.lane.b32.xlu0 %v5648_v19, %s3903_s23  ;;  %2807 = vrot.lane.b32.xlu1 %v4704_v1, %s3912_s29  ;;  %s3913_s23 = smov 69  }
 0x6f8   : > { %v5694_v2 = vpop.permute.xlu0 %1950  ;;  %v5696_v50 = vpop.permute.xlu1 %2833 }
 0x6f9   : > { %7399 = vst [vmem:[#allocation221_spill] sm:$0xff] %v5696_v50 }
 0x6fa   : > { %2447 = vrot.lane.b32.xlu0 %v5698_v11, %s3911_s25  ;;  %2803 = vrot.lane.b32.xlu1 %v5698_v11, %s3912_s29 }
 0x6fc   : > { %v5704_v23 = vpop.permute.xlu0 %2038  ;;  %v5706_v49 = vpop.permute.xlu1 %2831 }
 0x6fd   : > { %7400 = vst [vmem:[#allocation222_spill] sm:$0xff] %v5704_v23  ;;  %7401 = vst [vmem:[#allocation223_spill] sm:$0xff] %v5706_v49  ;;  %v5722_v23 = vld [vmem:[#allocation4] sm:$0xff] }
 0x6fe   : > { %2443 = vrot.lane.b32.xlu0 %v5708_v62, %s3911_s25  ;;  %2801 = vrot.lane.b32.xlu1 %v5682_v0, %s3912_s29 }
 0x700   : > { %v5714_v1 = vpop.permute.xlu0 %2303  ;;  %v5716_v50 = vpop.permute.xlu1 %2126 }
 0x701   : > { %7402 = vst [vmem:[#allocation224_spill] sm:$0xff] %v5714_v1  ;;  %7403 = vst [vmem:[#allocation225_spill] sm:$0xff] %v5716_v50 }
 0x702   : > { %2805 = vrot.lane.b32.xlu0 %v5718_v35, %s3912_s29  ;;  %2797 = vrot.lane.b32.xlu1 %v5722_v23, %s3912_s29 }
 0x704   : > { %v5726_v49 = vpop.permute.xlu0 %2657  ;;  %v5728_v15 = vpop.permute.xlu1 %1599 }
 0x705   : > { %7404 = vst [vmem:[#allocation226_spill] sm:$0xff] %v5726_v49 }
 0x706   : > { %2441 = vrot.lane.b32.xlu0 %v5722_v23, %s3911_s25  ;;  %2393 = vrot.lane.b32.xlu1 %v5476_v10, %s3899_s19 }
 0x708   : > { %v5734_v1 = vpop.permute.xlu0 %2215  ;;  %v5736_v50 = vpop.permute.xlu1 %1687 }
 0x709   : > { %7405 = vst [vmem:[#allocation227_spill] sm:$0xff] %v5734_v1  ;;  %7406 = vst [vmem:[#allocation228_spill] sm:$0xff] %v5736_v50 }
 0x70a   : > { %2397 = vrot.lane.b32.xlu0 %v5656_v43, %s3899_s19  ;;  %2750 = vrot.lane.b32.xlu1 %v5522_v38, %s3913_s23 }
 0x70c   : > { %v5742_v49 = vpop.permute.xlu0 %2568  ;;  %v5744_v29 = vpop.permute.xlu1 %1775 }
 0x70d   : > { %7407 = vst [vmem:[#allocation229_spill] sm:$0xff] %v5742_v49  ;;  %7408 = vst [vmem:[#allocation230_spill] sm:$0xff] %v5744_v29 }
 0x70e   : > { %2799 = vrot.lane.b32.xlu0 %v5708_v62, %s3912_s29  ;;  %2387 = vrot.lane.b32.xlu1 %v5346_v3, %s3899_s19 }
 0x710   : > { %v5750_v1 = vpop.permute.xlu0 %2479  ;;  %v5752_v50 = vpop.permute.xlu1 %1864 }
 0x711   : > { %7409 = vst [vmem:[#allocation231_spill] sm:$0xff] %v5750_v1  ;;  %7410 = vst [vmem:[#allocation232_spill] sm:$0xff] %v5752_v50 }
 0x712   : > { %2395 = vrot.lane.b32.xlu0 %v5522_v38, %s3899_s19  ;;  %2748 = vrot.lane.b32.xlu1 %v5476_v10, %s3913_s23  ;;  %v5779_v10 = vld [vmem:[%s6983_s5] sm:$0x77] }
 0x713   : > { %7414 = vst [vmem:[#allocation236_spill] sm:$0xff] %v5779_v10  ;;  %v5787_v28 = vcombine.high %v5779_v10, %v5779_v10 }
 0x714   : > { %v5758_v60 = vpop.permute.xlu0 %2835  ;;  %v5760_v49 = vpop.permute.xlu1 %1952 }
 0x715   : > { %7411 = vst [vmem:[#allocation233_spill] sm:$0xff] %v5758_v60  ;;  %7412 = vst [vmem:[#allocation234_spill] sm:$0xff] %v5760_v49  ;;  %2972 = vmatprep.mubr.f32.mxu0 %v5787_v28 }
 0x716   : > { %2391 = vrot.lane.b32.xlu0 %v5762_v53, %s3899_s19  ;;  %2134 = vrot.lane.b32.xlu1 %v5648_v19, %s3908_s16  ;;  %7417 = vst [vmem:[#allocation239_spill] sm:$0xff] %v5787_v28 }
 0x718   : > { %v5768_v1 = vpop.permute.xlu0 %1601  ;;  %v5770_v50 = vpop.permute.xlu1 %2040 }
 0x719   : > { %7413 = vst [vmem:[#allocation235_spill] sm:$0xff] %v5770_v50 }
 0x71a   : > { %2752 = vrot.lane.b32.xlu0 %v5656_v43, %s3913_s23  ;;  %2744 = vrot.lane.b32.xlu1 %v5332_v34, %s3913_s23 }
 0x71c   : > { %v5781_v60 = vpop.permute.xlu0 %1689  ;;  %v5783_v29 = vpop.permute.xlu1 %2307 }
 0x71d   : > { %7415 = vst [vmem:[#allocation237_spill] sm:$0xff] %v5781_v60  ;;  %7416 = vst [vmem:[#allocation238_spill] sm:$0xff] %v5783_v29 }
 0x71e   : > { %2389 = vrot.lane.b32.xlu0 %v5332_v34, %s3899_s19  ;;  %2381 = vrot.lane.b32.xlu1 %v5156_v17, %s3899_s19 }
 0x720   : > { %v5794_v50 = vpop.permute.xlu0 %1777  ;;  %v5796_v12 = vpop.permute.xlu1 %2305 }
 0x721   : > { %7418 = vst [vmem:[#allocation240_spill] sm:$0xff] %v5794_v50  ;;  %7419 = vst [vmem:[#allocation241_spill] sm:$0xff] %v5796_v12 }
 0x722   : > { %2385 = vrot.lane.b32.xlu0 %v5798_v25, %s3899_s19  ;;  %2742 = vrot.lane.b32.xlu1 %v5346_v3, %s3913_s23  ;;  %v5823_v3 = vld [vmem:[%s6983_s5 + $0x8] sm:$0x77] }
 0x723   : > { %7423 = vst [vmem:[#allocation245_spill] sm:$0xff] %v5823_v3 }
 0x724   : > { %v5804_v29 = vpop.permute.xlu0 %1866  ;;  %v5806_v10 = vpop.permute.xlu1 %2661 }
 0x725   : > { %7420 = vst [vmem:[#allocation242_spill] sm:$0xff] %v5804_v29  ;;  %7421 = vst [vmem:[#allocation243_spill] sm:$0xff] %v5806_v10  ;;  %v5829_v29 = vcombine.high %v5823_v3, %v5823_v3 }
 0x726   : > { %2046 = vrot.lane.b32.xlu0 %v5648_v19, %s3902_s22  ;;  %2738 = vrot.lane.b32.xlu1 %v5202_v59, %s3913_s23 }
 0x727   : > { %7425 = vst [vmem:[#allocation247_spill] sm:$0xff] %v5829_v29  ;;  %3043 = vmatprep.mubr.f32.mxu1 %v5829_v29 }
 0x728   : > { %v5812_v28 = vpop.permute.xlu0 %1954  ;;  %v5814_v12 = vpop.permute.xlu1 %2659 }
 0x729   : > { %7422 = vst [vmem:[#allocation244_spill] sm:$0xff] %v5814_v12 }
 0x72a   : > { %2746 = vrot.lane.b32.xlu0 %v5762_v53, %s3913_s23  ;;  %2375 = vrot.lane.b32.xlu1 %v5026_v20, %s3899_s19 }
 0x72c   : > { %v2043_v10 = vpop.permute.xlu0 %2042  ;;  %v5825_v60 = vpop.permute.xlu1 %2217 }
 0x72d   : > { %7424 = vst [vmem:[#allocation246_spill] sm:$0xff] %v5825_v60 }
 0x72e   : > { %2383 = vrot.lane.b32.xlu0 %v5202_v59, %s3899_s19  ;;  %2736 = vrot.lane.b32.xlu1 %v5156_v17, %s3913_s23 }
 0x730   : > { %v5836_v12 = vpop.permute.xlu0 %2130  ;;  %v5838_v50 = vpop.permute.xlu1 %2572 }
 0x731   : > { %7426 = vst [vmem:[#allocation248_spill] sm:$0xff] %v5836_v12  ;;  %7427 = vst [vmem:[#allocation249_spill] sm:$0xff] %v5838_v50  ;;  %v5902_v12 = vld [vmem:[#allocation4 + $0x28] sm:$0xff] }
 0x732   : > { %2311 = vrot.lane.b32.xlu0 %v5648_v19, %s3900_s20  ;;  %2732 = vrot.lane.b32.xlu1 %v5012_v14, %s3913_s23 }
 0x734   : > { %v5844_v60 = vpop.permute.xlu0 %2128  ;;  %v5846_v3 = vpop.permute.xlu1 %2570 }
 0x735   : > { %7428 = vst [vmem:[#allocation250_spill] sm:$0xff] %v5844_v60  ;;  %7429 = vst [vmem:[#allocation251_spill] sm:$0xff] %v5846_v3 }
 0x736   : > { %2379 = vrot.lane.b32.xlu0 %v5848_v4, %s3899_s19  ;;  %2665 = vrot.lane.b32.xlu1 %v5648_v19, %s3909_s18  ;;  %s3798_s18 = smul.u32 12, %s7805_s10 }
 0x738   : > { %v5854_v17 = vpop.permute.xlu0 %2219  ;;  %v5856_v29 = vpop.permute.xlu1 %2481 }
 0x739   : > { %7430 = vst [vmem:[#allocation252_spill] sm:$0xff] %v5854_v17  ;;  %7431 = vst [vmem:[#allocation253_spill] sm:$0xff] %v5856_v29  ;;  %v5874_v29 = vld [vmem:[#allocation4 + $0x50] sm:$0xff] }
 0x73a   : > { %2740 = vrot.lane.b32.xlu0 %v5798_v25, %s3913_s23  ;;  %2369 = vrot.lane.b32.xlu1 %v4828_v22, %s3899_s19 }
 0x73c   : > { %v5862_v50 = vpop.permute.xlu0 %2483  ;;  %v5864_v3 = vpop.permute.xlu1 %2839 }
 0x73d   : > { %7432 = vst [vmem:[#allocation254_spill] sm:$0xff] %v5862_v50  ;;  %7433 = vst [vmem:[#allocation255_spill] sm:$0xff] %v5864_v3 }
 0x73e   : > { %2377 = vrot.lane.b32.xlu0 %v5012_v14, %s3899_s19  ;;  %2730 = vrot.lane.b32.xlu1 %v5026_v20, %s3913_s23 }
 0x740   : > { %v5870_v60 = vpop.permute.xlu0 %2132  ;;  %v5872_v17 = vpop.permute.xlu1 %2837 }
 0x741   : > { %7434 = vst [vmem:[#allocation256_spill] sm:$0xff] %v5870_v60  ;;  %7435 = vst [vmem:[#allocation257_spill] sm:$0xff] %v5872_v17  ;;  %v5916_v60 = vld [vmem:[#allocation4 + $0x30] sm:$0xff] }
 0x742   : > { %2373 = vrot.lane.b32.xlu0 %v5874_v29, %s3899_s19  ;;  %2223 = vrot.lane.b32.xlu1 %v5648_v19, %s3901_s21 }
 0x744   : > { %v5880_v22 = vpop.permute.xlu0 %2663  ;;  %v1604_v3 = vpop.permute.xlu1 %1603 }
 0x745   : > { %7436 = vst [vmem:[#allocation258_spill] sm:$0xff] %v5880_v22  ;;  %v5898_v22 = vld [vmem:[#allocation4 + $0x38] sm:$0xff]  ;;  %v1621_v39 = vsel %vm436_vm11, %v5768_v1, %v1604_v3 }
 0x746   : > { %2734 = vrot.lane.b32.xlu0 %v5848_v4, %s3913_s23  ;;  %2576 = vrot.lane.b32.xlu1 %v5648_v19, %s3910_s24 }
 0x748   : > { %v5886_v20 = vpop.permute.xlu0 %2221  ;;  %v5888_v14 = vpop.permute.xlu1 %1691 }
 0x749   : > { %7437 = vst [vmem:[#allocation259_spill] sm:$0xff] %v5886_v20  ;;  %7438 = vst [vmem:[#allocation260_spill] sm:$0xff] %v5888_v14 }
 0x74a   : > { %2371 = vrot.lane.b32.xlu0 %v4890_v32, %s3899_s19  ;;  %2726 = vrot.lane.b32.xlu1 %v4890_v32, %s3913_s23 }
 0x74c   : > { %v5894_v17 = vpop.permute.xlu0 %2574  ;;  %v5896_v50 = vpop.permute.xlu1 %1779 }
 0x74d   : > { %7439 = vst [vmem:[#allocation261_spill] sm:$0xff] %v5894_v17  ;;  %7440 = vst [vmem:[#allocation262_spill] sm:$0xff] %v5896_v50 }
 0x74e   : > { %2367 = vrot.lane.b32.xlu0 %v5898_v22, %s3899_s19  ;;  %2363 = vrot.lane.b32.xlu1 %v5902_v12, %s3899_s19 }
 0x750   : > { %v5906_v20 = vpop.permute.xlu0 %2485  ;;  %v5908_v14 = vpop.permute.xlu1 %1868 }
 0x751   : > { %7441 = vst [vmem:[#allocation263_spill] sm:$0xff] %v5906_v20  ;;  %7442 = vst [vmem:[#allocation264_spill] sm:$0xff] %v5908_v14 }
 0x752   : > { %2728 = vrot.lane.b32.xlu0 %v5874_v29, %s3913_s23  ;;  %2487 = vrot.lane.b32.xlu1 %v5648_v19, %s3911_s25 }
 0x754   : > { %v5914_v32 = vpop.permute.xlu0 %2841  ;;  %v1957_v17 = vpop.permute.xlu1 %1956 }
 0x755   : > { %7443 = vst [vmem:[#allocation265_spill] sm:$0xff] %v5914_v32 }
 0x756   : > { %2365 = vrot.lane.b32.xlu0 %v5916_v60, %s3899_s19  ;;  %2843 = vrot.lane.b32.xlu1 %v5648_v19, %s3912_s29  ;;  %s332_s29 = scalar_lea.vmem %s6987_s9, %s3798_s18 }
 0x758   : > { %v5922_v20 = vpop.permute.xlu0 %1605  ;;  %v5924_v14 = vpop.permute.xlu1 %2044 }
 0x759   : > { %7444 = vst [vmem:[#allocation266_spill] sm:$0xff] %v5922_v20  ;;  %v5928_v50 = vsel %vm484_vm7, %v2043_v10, %v5924_v14  ;;  %v1622_v32 = vsel %vm436_vm11, %v1604_v3, %v5922_v20  ;;  %v1620_v10 = vsel %vm436_vm11, %v5660_v33, %v5728_v15  ;;  %v1619_v20 = vsel %vm436_vm11, %v5570_v42, %v5660_v33 }
 0x75a   : > { %7445 = vst [vmem:[#allocation267_spill] sm:$0xff] %v5928_v50  ;;  %2361 = vrot.lane.b32.xlu0 %v5718_v35, %s3899_s19  ;;  %2724 = vrot.lane.b32.xlu1 %v3860_v61, %s3913_s23  ;;  %v1617_v61 = vsel %vm436_vm11, %v5436_v51, %v5520_v27  ;;  %v1616_v42 = vsel %vm436_vm11, %v5338_v45, %v5398_v40 }
 0x75b   : > { %2908 = vmatprep.subr.mxu0 %v1622_v32  ;;  %v1615_v3 = vsel %vm436_vm11, %v5250_v46, %v5338_v45  ;;  %v1613_v51 = vsel %vm436_vm11, %v5124_v6, %v5200_v41  ;;  %v1612_v45 = vsel %vm436_vm11, %v5018_v52, %v5070_v21  ;;  %v1611_v32 = vsel %vm436_vm11, %v4954_v16, %v5018_v52  ;;  %v7590_v21 = vld [vmem:[#allocation245_spill] sm:$0xff] }
 0x75c   : > { %2909 = vmatpush1.msra.mxu0 %v1621_v39  ;;  %v5937_v18 = vpop.permute.xlu0 %1693  ;;  %v5942_v50 = vpop.permute.xlu1 %2309  ;;  %v1618_v39 = vsel %vm436_vm11, %v5520_v27, %v5584_v37  ;;  %v1614_v27 = vsel %vm436_vm11, %v5200_v41, %v5264_v8  ;;  %v1610_v41 = vsel %vm436_vm11, %v4898_v48, %v4936_v63  ;;  %v1609_v6 = vsel %vm436_vm11, %v4820_v24, %v4898_v48  ;;  %v7569_v63 = vld [vmem:[#allocation95_spill] sm:$0xff]  ;;  %v7681_v37 = vld [vmem:[#allocation162_spill] sm:$0xff] }
 0x75d   : > { %7446 = vst [vmem:[#allocation268_spill] sm:$0xff] %v5937_v18  ;;  %2910 = vmatprep.subr.mxu0 %v1620_v10  ;;  %v1608_v16 = vsel %vm436_vm11, %v4732_v57, %v4790_v47  ;;  %v1974_v24 = vsel %vm472_vm8, %v5812_v28, %v1957_v17  ;;  %v1972_v28 = vsel %vm472_vm8, %v5602_v36, %v5694_v2 }
 0x75e   : > { %2911 = vmatpush1.msra.mxu0 %v1619_v20  ;;  %2722 = vrot.lane.b32.xlu0 %v5898_v22, %s3913_s23  ;;  %v1970_v36 = vsel %vm472_vm8, %v5468_v58, %v5554_v54 }
 0x75f   : > { %2720 = vrot.lane.b32.xlu1 %v5916_v60, %s3913_s23  ;;  %2912 = vmatprep.subr.mxu0 %v1618_v39  ;;  %v1607_v39 = vsel %vm436_vm11, %v4716_v44, %v4732_v57  ;;  %v1973_v57 = vsel %vm472_vm8, %v5694_v2, %v5760_v49  ;;  %v7449_v2 = vld [vmem:[#allocation67_spill] sm:$0xff]  ;;  %vm1783_vm11 = vcmask 1022976  }
 0x760   : > { %2913 = vmatpush1.msra.mxu0 %v1617_v61  ;;  %v5957_v1 = vpop.permute.xlu0 %1781  ;;  %v5962_v33 = vpop.permute.xlu1 %2809 }
 0x761   : > { %2914 = vmatprep.subr.mxu0 %v1616_v42 }
 0x762   : > { %2915 = vmatpush1.msra.mxu0 %v1615_v3  ;;  %2359 = vrot.lane.b32.xlu0 %v5698_v11, %s3899_s19 }
 0x763   : > { %2399 = vrot.lane.b32.xlu1 %v5648_v19, %s3899_s19  ;;  %2916 = vmatprep.subr.mxu0 %v1614_v27  ;;  %v2890_v27 = vld [vmem:[%s6984_s6] sm:$0x7] }
 0x764   : > { %2917 = vmatpush1.msra.mxu0 %v1613_v51  ;;  %v5977_v20 = vpop.permute.xlu0 %1870  ;;  %v5982_v46 = vpop.permute.xlu1 %2445 }
 0x765   : > { %7447 = vst [vmem:[#allocation269_spill] sm:$0xff] %v5977_v20  ;;  %2918 = vmatprep.subr.mxu0 %v1612_v45 }
 0x766   : > { %2919 = vmatpush1.msra.mxu0 %v1611_v32  ;;  %2355 = vrot.lane.b32.xlu0 %v5708_v62, %s3899_s19 }
 0x767   : > { %2754 = vrot.lane.b32.xlu1 %v5648_v19, %s3913_s23  ;;  %2920 = vmatprep.subr.mxu0 %v1610_v41 }
 0x768   : > { %2921 = vmatpush1.msra.mxu0 %v1609_v6  ;;  %v5997_v10 = vpop.permute.xlu0 %1958  ;;  %v6002_v52 = vpop.permute.xlu1 %2807 }
 0x769   : > { %7448 = vst [vmem:[#allocation270_spill] sm:$0xff] %v5997_v10  ;;  %2922 = vmatprep.subr.mxu0 %v1608_v16  ;;  %v1975_v19 = vsel %vm472_vm8, %v1957_v17, %v5997_v10  ;;  %v1964_v17 = vsel %vm472_vm8, %v7449_v2, %v5052_v7  ;;  %v7457_v16 = vld [vmem:[#allocation264_spill] sm:$0xff] }
 0x76a   : > { %2923 = vmatpush1.msra.mxu0 %v1607_v39  ;;  %2716 = vrot.lane.b32.xlu0 %v5718_v35, %s3913_s23  ;;  %v1887_v39 = vsel %vm460_vm9, %v7457_v16, %v5977_v20 }
 0x76b   : > { %2357 = vrot.lane.b32.xlu1 %v5682_v0, %s3899_s19  ;;  %2924 = vmatprep.subr.mxu0 %v5656_v43  ;;  %v1968_v43 = vsel %vm472_vm8, %v5282_v9, %v5372_v26  ;;  %v3862_v9 = vld [vmem:[#allocation4 + $0x48] sm:$0xff] }
 0x76c   : > { %2979 = vmatprep.subr.mxu1 %v1975_v19  ;;  %2925 = vmatpush1.msra.mxu0 %v5522_v38  ;;  %v6017_v48 = vpop.permute.xlu0 %2447  ;;  %v2804_v44 = vpop.permute.xlu1 %2803  ;;  %v1971_v38 = vsel %vm472_vm8, %v5554_v54, %v5616_v55  ;;  %v1966_v54 = vsel %vm472_vm8, %v5158_v13, %v5234_v31  ;;  %v7458_v19 = vld [vmem:[#allocation240_spill] sm:$0xff] }
 0x76d   : > { %2980 = vmatpush1.msra.mxu1 %v1974_v24  ;;  %2926 = vmatprep.subr.mxu0 %v5762_v53 }
 0x76e   : > { %2981 = vmatprep.subr.mxu1 %v1973_v57  ;;  %2927 = vmatpush1.msra.mxu0 %v5332_v34  ;;  %v7460_v57 = vld [vmem:[#allocation230_spill] sm:$0xff] }
 0x76f   : > { %2982 = vmatpush1.msra.mxu1 %v1972_v28  ;;  %2353 = vrot.lane.b32.xlu0 %v5722_v23, %s3899_s19  ;;  %v7461_v28 = vld [vmem:[#allocation217_spill] sm:$0xff] }
 0x770   : > { %2718 = vrot.lane.b32.xlu1 %v5902_v12, %s3913_s23  ;;  %2928 = vmatprep.subr.mxu0 %v5798_v25  ;;  %v6035_v53 = vpop.permute.xlu0 %2443  ;;  %v6037_v34 = vpop.permute.xlu1 %2801  ;;  %v1969_v12 = vsel %vm472_vm8, %v5372_v26, %v5430_v56  ;;  %v3861_v25 = vld [vmem:[#allocation4 + $0x60] sm:$0xff] }
 0x771   : > { %2983 = vmatprep.subr.mxu1 %v1971_v38  ;;  %2929 = vmatpush1.msra.mxu0 %v5202_v59  ;;  %v1797_v38 = vsel %vm1783_vm11, %v7461_v28, %v7460_v57 }
 0x772   : > { %2984 = vmatpush1.msra.mxu1 %v1970_v36  ;;  %2930 = vmatprep.subr.mxu0 %v5848_v4  ;;  %v1967_v4 = vsel %vm472_vm8, %v5234_v31, %v5296_v30  ;;  %v7450_v31 = vld [vmem:[#allocation62_spill] sm:$0xff]  ;;  %v7462_v36 = vld [vmem:[#allocation232_spill] sm:$0xff] }
 0x773   : > { %2985 = vmatprep.subr.mxu1 %v1969_v12  ;;  %2931 = vmatpush1.msra.mxu0 %v3861_v25  ;;  %v7463_v12 = vld [vmem:[#allocation219_spill] sm:$0xff] }
 0x774   : > { %2986 = vmatpush1.msra.mxu1 %v1968_v43  ;;  %2710 = vrot.lane.b32.xlu0 %v5708_v62, %s3913_s23  ;;  %v6052_v58 = vpop.permute.xlu0 %2805  ;;  %v2798_v59 = vpop.permute.xlu1 %2797  ;;  %v1885_v25 = vsel %vm460_vm9, %v7463_v12, %v7462_v36 }
 0x775   : > { %2714 = vrot.lane.b32.xlu1 %v5698_v11, %s3913_s23  ;;  %2932 = vmatprep.subr.mxu0 %v5874_v29  ;;  %v6062_v26 = vsel %vm2845_vm2, %v2804_v44, %v6052_v58  ;;  %v1965_v29 = vsel %vm472_vm8, %v5052_v7, %v5102_v5  ;;  %v7528_v5 = vld [vmem:[#allocation115_spill] sm:$0xff] }
 0x776   : > { %2987 = vmatprep.subr.mxu1 %v1967_v4  ;;  %2933 = vmatpush1.msra.mxu0 %v3862_v9  ;;  %v7464_v9 = vld [vmem:[#allocation198_spill] sm:$0xff] }
 0x777   : > { %2988 = vmatpush1.msra.mxu1 %v1966_v54  ;;  %2934 = vmatprep.subr.mxu0 %v5898_v22  ;;  %v7452_v22 = vld [vmem:[#allocation36_spill] sm:$0xff]  ;;  %v1796_v54 = vsel %vm1783_vm11, %v7464_v9, %v7461_v28  ;;  %v7479_v9 = vld [vmem:[#allocation118_spill] sm:$0xff] }
 0x778   : > { %2989 = vmatprep.subr.mxu1 %v1965_v29  ;;  %2935 = vmatpush1.msra.mxu0 %v5916_v60  ;;  %v2442_v61 = vpop.permute.xlu0 %2441  ;;  %v6075_v42 = vpop.permute.xlu1 %2393  ;;  %v7451_v60 = vld [vmem:[#allocation54_spill] sm:$0xff]  ;;  %v7465_v29 = vld [vmem:[#allocation200_spill] sm:$0xff] }
 0x779   : > { %2990 = vmatpush1.msra.mxu1 %v1964_v17  ;;  %2708 = vrot.lane.b32.xlu0 %v5722_v23, %s3913_s23  ;;  %v6081_v13 = vsel %vm2489_vm3, %v2442_v61, %v6035_v53  ;;  %v1963_v7 = vsel %vm472_vm8, %v7451_v60, %v7450_v31  ;;  %v1962_v3 = vsel %vm472_vm8, %v7452_v22, %v7451_v60  ;;  %v7466_v61 = vld [vmem:[#allocation201_spill] sm:$0xff]  ;;  %v7467_v60 = vld [vmem:[#allocation188_spill] sm:$0xff]  ;;  %v7468_v22 = vld [vmem:[#allocation202_spill] sm:$0xff] }
 0x77a   : > { %2712 = vrot.lane.b32.xlu1 %v5682_v0, %s3913_s23  ;;  %2936 = vmatprep.subr.mxu0 %v5718_v35  ;;  %v7453_v0 = vld [vmem:[#allocation29_spill] sm:$0xff]  ;;  %v7454_v35 = vld [vmem:[#allocation15_spill] sm:$0xff]  ;;  %v1884_v2 = vsel %vm460_vm9, %v7465_v29, %v7463_v12  ;;  %v7480_v29 = vld [vmem:[#allocation132_spill] sm:$0xff] }
 0x77b   : > { %2991 = vmatprep.subr.mxu1 %v1963_v7  ;;  %2937 = vmatpush1.msra.mxu0 %v5698_v11  ;;  %v1961_v51 = vsel %vm472_vm8, %v7454_v35, %v7453_v0  ;;  %v7455_v11 = vld [vmem:[#allocation12_spill] sm:$0xff]  ;;  %v1795_v7 = vsel %vm1783_vm11, %v7467_v60, %v7466_v61  ;;  %v7521_v0 = vld [vmem:[#allocation178_spill] sm:$0xff] }
 0x77c   : > { %2992 = vmatpush1.msra.mxu1 %v1962_v3  ;;  %2938 = vmatprep.subr.mxu0 %v5708_v62  ;;  %v6100_v45 = vpop.permute.xlu0 %2397  ;;  %v6102_v32 = vpop.permute.xlu1 %2750  ;;  %v1960_v41 = vsel %vm472_vm8, %v7455_v11, %v7454_v35  ;;  %v7456_v62 = vld [vmem:[#allocation262_spill] sm:$0xff]  ;;  %v7470_v35 = vld [vmem:[#allocation169_spill] sm:$0xff]  ;;  %v7471_v11 = vld [vmem:[#allocation171_spill] sm:$0xff]  ;;  %vm2136_vm8 = vcmask 867328  }
 0x77d   : > { %2993 = vmatprep.subr.mxu1 %v1961_v51  ;;  %2939 = vmatpush1.msra.mxu0 %v5722_v23  ;;  %v1799_v6 = vsel %vm1783_vm11, %v7456_v62, %v5957_v1  ;;  %v1798_v24 = vsel %vm1783_vm11, %v7458_v19, %v7456_v62  ;;  %v7459_v23 = vld [vmem:[#allocation242_spill] sm:$0xff]  ;;  %v1794_v51 = vsel %vm1783_vm11, %v7470_v35, %v7467_v60  ;;  %v7473_v62 = vld [vmem:[#allocation147_spill] sm:$0xff] }
 0x77e   : > { %2994 = vmatpush1.msra.mxu1 %v1960_v41  ;;  %2893 = vperm.xlu1 %3841, %v2890_v27   ;;  %v1886_v44 = vsel %vm460_vm9, %v7459_v23, %v7457_v16  ;;  %v7469_v3 = vld [vmem:[#allocation190_spill] sm:$0xff]  ;;  %v7472_v41 = vld [vmem:[#allocation161_spill] sm:$0xff]  ;;  %v7474_v16 = vld [vmem:[#allocation163_spill] sm:$0xff] }
 0x77f   : > { %2940 = vmatprep.subr.mxu0 %v1799_v6  ;;  %2995 = vmatprep.subr.mxu1 %v1887_v39  ;;  %v1883_v27 = vsel %vm460_vm9, %v7469_v3, %v7468_v22  ;;  %v1793_v6 = vsel %vm1783_vm11, %v7473_v62, %v7472_v41  ;;  %v7475_v39 = vld [vmem:[#allocation149_spill] sm:$0xff] }
 0x780   : > { %2941 = vmatpush2.msra.mxu0 %v1798_v24  ;;  %2996 = vmatpush1.msra.mxu1 %v1886_v44  ;;  %v6126_v43 = vpop.permute.xlu0 %2799  ;;  %v6128_v4 = vpop.permute.xlu1 %2387  ;;  %v1881_v19 = vsel %vm460_vm9, %v7475_v39, %v7474_v16  ;;  %v7476_v44 = vld [vmem:[#allocation128_spill] sm:$0xff] }
 0x781   : > { %2942 = vmatprep.subr.mxu0 %v1797_v38  ;;  %2997 = vmatprep.subr.mxu1 %v1885_v25  ;;  %v6138_v17 = vsel %vm2845_vm2, %v2798_v59, %v6126_v43  ;;  %v1882_v59 = vsel %vm460_vm9, %v7471_v11, %v7469_v3  ;;  %v1792_v28 = vsel %vm1783_vm11, %v7476_v44, %v7473_v62  ;;  %v7477_v38 = vld [vmem:[#allocation130_spill] sm:$0xff]  ;;  %v7478_v25 = vld [vmem:[#allocation131_spill] sm:$0xff]  ;;  %v7485_v11 = vld [vmem:[#allocation77_spill] sm:$0xff] }
 0x782   : > { %2943 = vmatpush2.msra.mxu0 %v1796_v54  ;;  %2998 = vmatpush1.msra.mxu1 %v1884_v2  ;;  %v1880_v12 = vsel %vm460_vm9, %v7477_v38, %v7475_v39  ;;  %v1791_v54 = vsel %vm1783_vm11, %v7479_v9, %v7478_v25  ;;  %v7481_v2 = vld [vmem:[#allocation120_spill] sm:$0xff]  ;;  %v7486_v62 = vld [vmem:[#allocation91_spill] sm:$0xff] }
 0x783   : > { %2944 = vmatprep.subr.mxu0 %v1795_v7  ;;  %2999 = vmatprep.subr.mxu1 %v1883_v27  ;;  %v1879_v60 = vsel %vm460_vm9, %v7481_v2, %v7480_v29  ;;  %v7482_v7 = vld [vmem:[#allocation101_spill] sm:$0xff]  ;;  %v7483_v27 = vld [vmem:[#allocation103_spill] sm:$0xff]  ;;  %v7505_v29 = vld [vmem:[#allocation248_spill] sm:$0xff] }
 0x784   : > { %2945 = vmatpush2.msra.mxu0 %v1794_v51  ;;  %3000 = vmatpush1.msra.mxu1 %v1882_v59  ;;  %v6158_v24 = vpop.permute.xlu0 %2395  ;;  %v6160_v23 = vpop.permute.xlu1 %2748  ;;  %v1790_v3 = vsel %vm1783_vm11, %v7482_v7, %v7479_v9  ;;  %v1878_v35 = vsel %vm460_vm9, %v7483_v27, %v7481_v2  ;;  %v7484_v51 = vld [vmem:[#allocation89_spill] sm:$0xff]  ;;  %v7492_v2 = vld [vmem:[#allocation50_spill] sm:$0xff]  ;;  %v7493_v7 = vld [vmem:[#allocation60_spill] sm:$0xff] }
 0x785   : > { %2946 = vmatprep.subr.mxu0 %v1793_v6  ;;  %3001 = vmatprep.subr.mxu1 %v1881_v19  ;;  %v1789_v59 = vsel %vm1783_vm11, %v7485_v11, %v7484_v51  ;;  %v7487_v6 = vld [vmem:[#allocation79_spill] sm:$0xff] }
 0x786   : > { %2947 = vmatpush2.msra.mxu0 %v1792_v28  ;;  %3002 = vmatpush1.msra.mxu1 %v1880_v12  ;;  %v1877_v39 = vsel %vm460_vm9, %v7487_v6, %v7486_v62  ;;  %v7489_v28 = vld [vmem:[#allocation63_spill] sm:$0xff]  ;;  %v7490_v12 = vld [vmem:[#allocation65_spill] sm:$0xff] }
 0x787   : > { %2948 = vmatprep.subr.mxu0 %v1791_v54  ;;  %3003 = vmatprep.subr.mxu1 %v1879_v60  ;;  %v1788_v38 = vsel %vm1783_vm11, %v7489_v28, %v7485_v11  ;;  %v1876_v9 = vsel %vm460_vm9, %v7490_v12, %v7487_v6  ;;  %v7491_v54 = vld [vmem:[#allocation59_spill] sm:$0xff]  ;;  %v7499_v12 = vld [vmem:[#allocation28_spill] sm:$0xff] }
 0x788   : > { %2949 = vmatpush2.msra.mxu0 %v1790_v3  ;;  %3004 = vmatpush1.msra.mxu1 %v1878_v35  ;;  %v6186_v19 = vpop.permute.xlu0 %2391  ;;  %v6188_v44 = vpop.permute.xlu1 %2134  ;;  %v1787_v60 = vsel %vm1783_vm11, %v7492_v2, %v7491_v54  ;;  %v7494_v3 = vld [vmem:[#allocation52_spill] sm:$0xff]  ;;  %v7498_v28 = vld [vmem:[#allocation11_spill] sm:$0xff] }
 0x789   : > { %7488 = vst [vmem:[#allocation67_spill] sm:$0xff] %v6188_v44  ;;  %2950 = vmatprep.subr.mxu0 %v1789_v59  ;;  %3005 = vmatprep.subr.mxu1 %v1877_v39  ;;  %v1875_v27 = vsel %vm460_vm9, %v7494_v3, %v7493_v7  ;;  %v7495_v35 = vld [vmem:[#allocation32_spill] sm:$0xff]  ;;  %v7496_v59 = vld [vmem:[#allocation34_spill] sm:$0xff] }
 0x78a   : > { %2951 = vmatpush2.msra.mxu0 %v1788_v38  ;;  %3006 = vmatpush1.msra.mxu1 %v1876_v9  ;;  %v1786_v11 = vsel %vm1783_vm11, %v7495_v35, %v7492_v2  ;;  %v1874_v6 = vsel %vm460_vm9, %v7496_v59, %v7494_v3  ;;  %v7497_v39 = vld [vmem:[#allocation26_spill] sm:$0xff]  ;;  %v7500_v9 = vld [vmem:[#allocation13_spill] sm:$0xff]  ;;  %v7502_v3 = vld [vmem:[#allocation8_spill] sm:$0xff] }
 0x78b   : > { %2952 = vmatprep.subr.mxu0 %v1787_v60  ;;  %3007 = vmatprep.subr.mxu1 %v1875_v27  ;;  %v1785_v38 = vsel %vm1783_vm11, %v7498_v28, %v7497_v39  ;;  %v1873_v7 = vsel %vm460_vm9, %v7500_v9, %v7499_v12  ;;  %v7501_v60 = vld [vmem:[#allocation256_spill] sm:$0xff]  ;;  %v1784_v35 = vsel %vm1783_vm11, %v7502_v3, %v7498_v28  ;;  %v7547_v39 = vld [vmem:[#allocation19_spill] sm:$0xff] }
 0x78c   : > { %2953 = vmatpush2.msra.mxu0 %v1786_v11  ;;  %3008 = vmatpush1.msra.mxu1 %v1874_v6  ;;  %v2152_v27 = vsel %vm2136_vm8, %v7501_v60, %v6188_v44  ;;  %v6217_v62 = vpop.permute.xlu0 %2752  ;;  %v6219_v2 = vpop.permute.xlu1 %2744  ;;  %v7503_v11 = vld [vmem:[#allocation10_spill] sm:$0xff]  ;;  %v7504_v6 = vld [vmem:[#allocation260_spill] sm:$0xff]  ;;  %v2151_v16 = vsel %vm2136_vm8, %v7505_v29, %v7501_v60  ;;  %v7512_v60 = vld [vmem:[#allocation205_spill] sm:$0xff] }
 0x78d   : > { %2954 = vmatprep.subr.mxu0 %v1785_v38  ;;  %3009 = vmatprep.subr.mxu1 %v1873_v7  ;;  %v1872_v59 = vsel %vm460_vm9, %v7503_v11, %v7500_v9  ;;  %v1710_v12 = vsel %vm448_vm10, %v7504_v6, %v5937_v18  ;;  %v7506_v7 = vld [vmem:[#allocation237_spill] sm:$0xff]  ;;  %v7507_v28 = vld [vmem:[#allocation228_spill] sm:$0xff]  ;;  %v7508_v9 = vld [vmem:[#allocation215_spill] sm:$0xff]  ;;  %vm2756_vm9 = vcmask 564224  }
 0x78e   : > { %2955 = vmatpush2.msra.mxu0 %v1784_v35  ;;  %3010 = vmatpush1.msra.mxu1 %v1872_v59  ;;  %v1709_v38 = vsel %vm448_vm10, %v7506_v7, %v7504_v6  ;;  %v1708_v3 = vsel %vm448_vm10, %v7508_v9, %v7507_v28  ;;  %v7509_v35 = vld [vmem:[#allocation250_spill] sm:$0xff]  ;;  %v7510_v11 = vld [vmem:[#allocation225_spill] sm:$0xff]  ;;  %v7511_v29 = vld [vmem:[#allocation196_spill] sm:$0xff] }
 0x78f   : > { %2956 = vmatprep.subr.mxu0 %v1710_v12  ;;  %3011 = vmatprep.subr.mxu1 %v2152_v27  ;;  %v2150_v59 = vsel %vm2136_vm8, %v7510_v11, %v7509_v35  ;;  %v1707_v12 = vsel %vm448_vm10, %v7511_v29, %v7508_v9  ;;  %v7513_v6 = vld [vmem:[#allocation199_spill] sm:$0xff]  ;;  %v7514_v7 = vld [vmem:[#allocation186_spill] sm:$0xff]  ;;  %v7518_v29 = vld [vmem:[#allocation176_spill] sm:$0xff] }
 0x790   : > { %2957 = vmatpush2.msra.mxu0 %v1709_v38  ;;  %3012 = vmatpush2.msra.mxu1 %v2151_v16  ;;  %v2390_v22 = vpop.permute.xlu0 %2389  ;;  %v6242_v36 = vpop.permute.xlu1 %2381  ;;  %v2149_v16 = vsel %vm2136_vm8, %v7512_v60, %v7510_v11  ;;  %v1706_v38 = vsel %vm448_vm10, %v7514_v7, %v7513_v6  ;;  %v7517_v9 = vld [vmem:[#allocation167_spill] sm:$0xff]  ;;  %v7520_v60 = vld [vmem:[#allocation145_spill] sm:$0xff]  ;;  %v7578_v54 = vld [vmem:[#allocation180_spill] sm:$0xff] }
 0x791   : > { %2958 = vmatprep.subr.mxu0 %v1708_v3  ;;  %3013 = vmatprep.subr.mxu1 %v2150_v59  ;;  %v6252_v27 = vsel %vm520_vm4, %v2390_v22, %v6186_v19  ;;  %v7515_v3 = vld [vmem:[#allocation207_spill] sm:$0xff]  ;;  %v7516_v59 = vld [vmem:[#allocation185_spill] sm:$0xff]  ;;  %v1705_v11 = vsel %vm448_vm10, %v7517_v9, %v7514_v7  ;;  %v7523_v7 = vld [vmem:[#allocation126_spill] sm:$0xff] }
 0x792   : > { %2959 = vmatpush2.msra.mxu0 %v1707_v12  ;;  %3014 = vmatpush2.msra.mxu1 %v2149_v16  ;;  %v2148_v20 = vsel %vm2136_vm8, %v7516_v59, %v7515_v3  ;;  %v2147_v22 = vsel %vm2136_vm8, %v7518_v29, %v7516_v59  ;;  %v7519_v12 = vld [vmem:[#allocation159_spill] sm:$0xff]  ;;  %v1703_v59 = vsel %vm448_vm10, %v7523_v7, %v7520_v60  ;;  %v7525_v29 = vld [vmem:[#allocation129_spill] sm:$0xff]  ;;  %v7633_v35 = vld [vmem:[#allocation158_spill] sm:$0xff] }
 0x793   : > { %2960 = vmatprep.subr.mxu0 %v1706_v38  ;;  %3015 = vmatprep.subr.mxu1 %v2148_v20  ;;  %v1704_v16 = vsel %vm448_vm10, %v7520_v60, %v7519_v12  ;;  %v7522_v6 = vld [vmem:[#allocation155_spill] sm:$0xff]  ;;  %v7527_v28 = vld [vmem:[#allocation137_spill] sm:$0xff] }
 0x794   : > { %2961 = vmatpush2.msra.mxu0 %v1705_v11  ;;  %3016 = vmatpush2.msra.mxu1 %v2147_v22  ;;  %v2146_v31 = vsel %vm2136_vm8, %v7522_v6, %v7521_v0  ;;  %v6272_v38 = vpop.permute.xlu0 %2385  ;;  %v6274_v20 = vpop.permute.xlu1 %2742  ;;  %v7524_v9 = vld [vmem:[#allocation135_spill] sm:$0xff]  ;;  %v7526_v22 = vld [vmem:[#allocation116_spill] sm:$0xff]  ;;  %v2144_v18 = vsel %vm2136_vm8, %v7528_v5, %v7527_v28  ;;  %v7570_v0 = vld [vmem:[#allocation82_spill] sm:$0xff] }
 0x795   : > { %2962 = vmatprep.subr.mxu0 %v1704_v16  ;;  %3017 = vmatprep.subr.mxu1 %v2146_v31  ;;  %v2145_v11 = vsel %vm2136_vm8, %v7524_v9, %v7522_v6  ;;  %v1702_v12 = vsel %vm448_vm10, %v7526_v22, %v7525_v29  ;;  %v7529_v31 = vld [vmem:[#allocation99_spill] sm:$0xff]  ;;  %v7530_v16 = vld [vmem:[#allocation108_spill] sm:$0xff] }
 0x796   : > { %2963 = vmatpush2.msra.mxu0 %v1703_v59  ;;  %3018 = vmatpush2.msra.mxu1 %v2145_v11  ;;  %v1701_v60 = vsel %vm448_vm10, %v7529_v31, %v7526_v22  ;;  %v2143_v6 = vsel %vm2136_vm8, %v7530_v16, %v7528_v5  ;;  %v7531_v7 = vld [vmem:[#allocation87_spill] sm:$0xff]  ;;  %v7533_v11 = vld [vmem:[#allocation97_spill] sm:$0xff]  ;;  %v7534_v29 = vld [vmem:[#allocation84_spill] sm:$0xff] }
 0x797   : > { %2964 = vmatprep.subr.mxu0 %v1702_v12  ;;  %3019 = vmatprep.subr.mxu1 %v2144_v18  ;;  %v7532_v59 = vld [vmem:[#allocation75_spill] sm:$0xff]  ;;  %v2142_v30 = vsel %vm2136_vm8, %v7534_v29, %v7533_v11  ;;  %v7536_v22 = vld [vmem:[#allocation61_spill] sm:$0xff]  ;;  %v6313_v16 = vld [vmem:[%s6983_s5 + $0x10] sm:$0x77] }
 0x798   : > { %2965 = vmatpush2.msra.mxu0 %v1701_v60  ;;  %3020 = vmatpush2.msra.mxu1 %v2143_v6  ;;  %v1700_v9 = vsel %vm448_vm10, %v7532_v59, %v7531_v7  ;;  %v6300_v12 = vpop.permute.xlu0 %2046  ;;  %v6302_v18 = vpop.permute.xlu1 %2738  ;;  %v1699_v5 = vsel %vm448_vm10, %v7536_v22, %v7532_v59  ;;  %v7537_v31 = vld [vmem:[#allocation71_spill] sm:$0xff]  ;;  %v7538_v6 = vld [vmem:[#allocation57_spill] sm:$0xff]  ;;  %v7539_v7 = vld [vmem:[#allocation48_spill] sm:$0xff] }
 0x799   : > { %7535 = vst [vmem:[#allocation54_spill] sm:$0xff] %v6300_v12  ;;  %2966 = vmatprep.subr.mxu0 %v1700_v9  ;;  %3021 = vmatprep.subr.mxu1 %v2142_v30  ;;  %v2141_v60 = vsel %vm2136_vm8, %v7537_v31, %v7534_v29  ;;  %v1698_v9 = vsel %vm448_vm10, %v7539_v7, %v7538_v6  ;;  %v7540_v30 = vld [vmem:[#allocation66_spill] sm:$0xff]  ;;  %v7543_v22 = vld [vmem:[#allocation40_spill] sm:$0xff]  ;;  %v7546_v6 = vld [vmem:[#allocation33_spill] sm:$0xff] }
 0x79a   : > { %2967 = vmatpush2.msra.mxu0 %v1699_v5  ;;  %3022 = vmatpush2.msra.mxu1 %v2141_v60  ;;  %v7541_v11 = vld [vmem:[#allocation58_spill] sm:$0xff]  ;;  %v7544_v5 = vld [vmem:[#allocation24_spill] sm:$0xff]  ;;  %v7545_v60 = vld [vmem:[#allocation9_spill] sm:$0xff] }
 0x79b   : > { %v2140_v47 = vsel %vm2136_vm8, %v7541_v11, %v7540_v30  ;;  %2968 = vmatprep.subr.mxu0 %v1698_v9  ;;  %v7542_v59 = vld [vmem:[#allocation30_spill] sm:$0xff]  ;;  %v2139_v31 = vsel %vm2136_vm8, %v7543_v22, %v7541_v11  ;;  %v1696_v28 = vsel %vm448_vm10, %v7545_v60, %v7544_v5  ;;  %v2138_v9 = vsel %vm2136_vm8, %v7547_v39, %v7546_v6 }
 0x79c   : > { %3023 = vmatprep.subr.mxu1 %v2140_v47  ;;  %v1697_v29 = vsel %vm448_vm10, %v7542_v59, %v7539_v7  ;;  %v2063_v47 = vsel %vm484_vm7, %v5924_v14, %v6300_v12  ;;  %v6336_v7 = vpop.permute.xlu0 %2746  ;;  %v6338_v59 = vpop.permute.xlu1 %2375  ;;  %v6342_v11 = vcombine.high %v6313_v16, %v6313_v16  ;;  %v7551_v12 = vld [vmem:[#allocation236_spill] sm:$0xff]  ;;  %v7554_v6 = vld [vmem:[#allocation222_spill] sm:$0xff] }
 0x79d   : > { %2969 = vmatpush2.msra.mxu0 %v1697_v29  ;;  %3024 = vmatpush2.msra.mxu1 %v2139_v31  ;;  %v7549_v29 = vld [vmem:[#allocation7_spill] sm:$0xff]  ;;  %v7550_v31 = vld [vmem:[#allocation16_spill] sm:$0xff]  ;;  %v6353_v14 = vsel %vm2756_vm9, %v6219_v2, %v6336_v7 }
 0x79e   : > { %7548 = vst [vmem:[#allocation36_spill] sm:$0xff] %v6342_v11  ;;  %2970 = vmatprep.subr.mxu0 %v1696_v28  ;;  %3025 = vmatprep.subr.mxu1 %v2138_v9  ;;  %v1695_v22 = vsel %vm448_vm10, %v7549_v29, %v7545_v60  ;;  %v2137_v5 = vsel %vm2136_vm8, %v7550_v31, %v7547_v39  ;;  %v7552_v28 = vld [vmem:[#allocation267_spill] sm:$0xff]  ;;  %vm2667_vm10 = vcmask 572416  }
 0x79f   : > { %2971 = vmatpush2.msra.mxu0 %v1695_v22  ;;  %3026 = vmatpush2.msra.mxu1 %v2137_v5  ;;  %v7553_v9 = vld [vmem:[#allocation235_spill] sm:$0xff]  ;;  %v7557_v5 = vld [vmem:[#allocation193_spill] sm:$0xff]  ;;  %v7558_v22 = vld [vmem:[#allocation174_spill] sm:$0xff] }
 0x7a0   : > { %2973 = vmatmul.mubr.f32.vlgmr.msra.gmra.mxu0 %v7551_v12  ;;  %3027 = vmatprep.subr.mxu1 %v2063_v47  ;;  %v2061_v60 = vsel %vm484_vm7, %v7554_v6, %v7553_v9  ;;  %v6360_v29 = vpop.permute.xlu0 %2383  ;;  %v6362_v30 = vpop.permute.xlu1 %2736  ;;  %v7555_v39 = vld [vmem:[#allocation203_spill] sm:$0xff]  ;;  %v7556_v12 = vld [vmem:[#allocation206_spill] sm:$0xff]  ;;  %v2058_v31 = vsel %vm484_vm7, %v7558_v22, %v7557_v5  ;;  %v7560_v9 = vld [vmem:[#allocation152_spill] sm:$0xff] }
 0x7a1   : > { %3028 = vmatpush2.msra.mxu1 %v7552_v28  ;;  %3114 = vmatprep.mubr.f32.mxu0 %v6342_v11  ;;  %v2060_v2 = vsel %vm484_vm7, %v7555_v39, %v7554_v6  ;;  %v2059_v47 = vsel %vm484_vm7, %v7557_v5, %v7556_v12  ;;  %v7559_v28 = vld [vmem:[#allocation166_spill] sm:$0xff]  ;;  %v7562_v6 = vld [vmem:[#allocation133_spill] sm:$0xff]  ;;  %v7564_v22 = vld [vmem:[#allocation136_spill] sm:$0xff] }
 0x7a2   : > { %3029 = vmatprep.subr.mxu1 %v2061_v60  ;;  %v2057_v11 = vsel %vm484_vm7, %v7560_v9, %v7559_v28  ;;  %v2056_v39 = vsel %vm484_vm7, %v7562_v6, %v7560_v9  ;;  %v7563_v5 = vld [vmem:[#allocation238_spill] sm:$0xff]  ;;  %v7567_v9 = vld [vmem:[#allocation241_spill] sm:$0xff]  ;;  %v7568_v6 = vld [vmem:[#allocation224_spill] sm:$0xff] }
 0x7a3   : > { %3030 = vmatpush2.msra.mxu1 %v2060_v2 }
 0x7a4   : > { %3031 = vmatprep.subr.mxu1 %v2059_v47  ;;  %v6377_v60 = vpop.permute.xlu0 %2311  ;;  %v6379_v56 = vpop.permute.xlu1 %2732  ;;  %v2327_v47 = vsel %vm508_vm5, %v7563_v5, %v5942_v50 }
 0x7a5   : > { %3032 = vmatpush2.msra.mxu1 %v2058_v31  ;;  %7561 = vst [vmem:[#allocation15_spill] sm:$0xff] %v6377_v60  ;;  %v2328_v2 = vsel %vm508_vm5, %v5942_v50, %v6377_v60  ;;  %v7565_v31 = vld [vmem:[#allocation123_spill] sm:$0xff]  ;;  %v2326_v60 = vsel %vm508_vm5, %v7568_v6, %v7567_v9  ;;  %v2053_v50 = vsel %vm484_vm7, %v7570_v0, %v7569_v63  ;;  %v7576_v63 = vld [vmem:[#allocation64_spill] sm:$0xff] }
 0x7a6   : > { %3033 = vmatprep.subr.mxu1 %v2057_v11  ;;  %v2055_v28 = vsel %vm484_vm7, %v7565_v31, %v7564_v22  ;;  %3050 = vmatprep.subr.mxu0 %v2328_v2  ;;  %v7566_v11 = vld [vmem:[#allocation106_spill] sm:$0xff]  ;;  %v7577_v22 = vld [vmem:[#allocation56_spill] sm:$0xff] }
 0x7a7   : > { %3034 = vmatpush2.msra.mxu1 %v2056_v39  ;;  %v2054_v12 = vsel %vm484_vm7, %v7566_v11, %v7565_v31  ;;  %3051 = vmatpush1.msra.mxu0 %v2327_v47  ;;  %v7573_v47 = vld [vmem:[#allocation69_spill] sm:$0xff]  ;;  %v7575_v11 = vld [vmem:[#allocation187_spill] sm:$0xff] }
 0x7a8   : > { %3035 = vmatprep.subr.mxu1 %v2055_v28  ;;  %v6402_v39 = vpop.permute.xlu0 %2379  ;;  %3052 = vmatprep.subr.mxu0 %v2326_v60  ;;  %v6404_v5 = vpop.permute.xlu1 %2665  ;;  %v7572_v28 = vld [vmem:[#allocation208_spill] sm:$0xff]  ;;  %v2052_v31 = vsel %vm484_vm7, %v7573_v47, %v7570_v0  ;;  %v2051_v60 = vsel %vm484_vm7, %v7577_v22, %v7576_v63  ;;  %v7584_v63 = vld [vmem:[#allocation258_spill] sm:$0xff] }
 0x7a9   : > { %3036 = vmatpush2.msra.mxu1 %v2054_v12  ;;  %7571 = vst [vmem:[#allocation12_spill] sm:$0xff] %v6404_v5  ;;  %v2325_v2 = vsel %vm508_vm5, %v7572_v28, %v7568_v6  ;;  %v7574_v12 = vld [vmem:[#allocation209_spill] sm:$0xff]  ;;  %v2323_v6 = vsel %vm508_vm5, %v7578_v54, %v7575_v11  ;;  %v7580_v28 = vld [vmem:[#allocation168_spill] sm:$0xff]  ;;  %v2683_v54 = vsel %vm2667_vm10, %v7584_v63, %v6404_v5 }
 0x7aa   : > { %3037 = vmatprep.subr.mxu1 %v2053_v50  ;;  %3053 = vmatpush1.msra.mxu0 %v2325_v2  ;;  %v2324_v9 = vsel %vm508_vm5, %v7575_v11, %v7574_v12  ;;  %v7579_v50 = vld [vmem:[#allocation38_spill] sm:$0xff]  ;;  %v7583_v12 = vld [vmem:[#allocation17_spill] sm:$0xff] }
 0x7ab   : > { %3038 = vmatpush2.msra.mxu1 %v2052_v31  ;;  %3054 = vmatprep.subr.mxu0 %v2324_v9  ;;  %v2050_v0 = vsel %vm484_vm7, %v7579_v50, %v7577_v22  ;;  %v7581_v2 = vld [vmem:[#allocation154_spill] sm:$0xff]  ;;  %v7582_v31 = vld [vmem:[#allocation31_spill] sm:$0xff] }
 0x7ac   : > { %3039 = vmatprep.subr.mxu1 %v2051_v60  ;;  %3055 = vmatpush1.msra.mxu0 %v2323_v6  ;;  %v2322_v47 = vsel %vm508_vm5, %v7581_v2, %v7580_v28  ;;  %v2049_v9 = vsel %vm484_vm7, %v7583_v12, %v7582_v31  ;;  %v6433_v11 = vpop.permute.xlu0 %2740  ;;  %v6435_v60 = vpop.permute.xlu1 %2369  ;;  %v7585_v22 = vld [vmem:[#allocation138_spill] sm:$0xff]  ;;  %v7587_v28 = vld [vmem:[#allocation139_spill] sm:$0xff]  ;;  %v7588_v31 = vld [vmem:[#allocation117_spill] sm:$0xff] }
 0x7ad   : > { %3040 = vmatpush2.msra.mxu1 %v2050_v0  ;;  %3056 = vmatprep.subr.mxu0 %v2322_v47  ;;  %v2321_v6 = vsel %vm508_vm5, %v7585_v22, %v7581_v2  ;;  %v7586_v50 = vld [vmem:[#allocation14_spill] sm:$0xff]  ;;  %v2320_v55 = vsel %vm508_vm5, %v7588_v31, %v7587_v28  ;;  %v7589_v47 = vld [vmem:[#allocation243_spill] sm:$0xff] }
 0x7ae   : > { %3041 = vmatprep.subr.mxu1 %v2049_v9  ;;  %v2048_v0 = vsel %vm484_vm7, %v7586_v50, %v7583_v12  ;;  %3057 = vmatpush1.msra.mxu0 %v2321_v6  ;;  %v2682_v5 = vsel %vm2667_vm10, %v7589_v47, %v7584_v63  ;;  %v7591_v2 = vld [vmem:[#allocation110_spill] sm:$0xff]  ;;  %v7592_v12 = vld [vmem:[#allocation244_spill] sm:$0xff]  ;;  %v7598_v47 = vld [vmem:[#allocation213_spill] sm:$0xff] }
 0x7af   : > { %3042 = vmatpush2.msra.mxu1 %v2048_v0  ;;  %3058 = vmatprep.subr.mxu0 %v2320_v55  ;;  %v2319_v9 = vsel %vm508_vm5, %v7591_v2, %v7588_v31  ;;  %v7593_v22 = vld [vmem:[#allocation226_spill] sm:$0xff]  ;;  %v7599_v2 = vld [vmem:[#allocation189_spill] sm:$0xff] }
 0x7b0   : > { %3044 = vmatmul.mubr.f32.vlgmr.msra.gmra.mxu1 %v7590_v21  ;;  %3121 = vmatprep.subr.mxu1 %v2683_v54  ;;  %v2681_v6 = vsel %vm2667_vm10, %v7593_v22, %v7592_v12  ;;  %v6456_v50 = vpop.permute.xlu0 %2377  ;;  %v7594_v55 = vld [vmem:[#allocation98_spill] sm:$0xff]  ;;  %v6461_v63 = vpop.permute.xlu1 %2730  ;;  %v7596_v21 = vld [vmem:[#allocation211_spill] sm:$0xff]  ;;  %v7600_v12 = vld [vmem:[#allocation73_spill] sm:$0xff] }
 0x7b1   : > { %3122 = vmatpush1.msra.mxu1 %v2682_v5  ;;  %3059 = vmatpush1.msra.mxu0 %v2319_v9  ;;  %v7595_v0 = vld [vmem:[#allocation86_spill] sm:$0xff]  ;;  %v2680_v54 = vsel %vm2667_vm10, %v7596_v21, %v7593_v22  ;;  %v7597_v5 = vld [vmem:[#allocation68_spill] sm:$0xff]  ;;  %v2679_v9 = vsel %vm2667_vm10, %v7599_v2, %v7598_v47  ;;  %v7606_v47 = vld [vmem:[#allocation35_spill] sm:$0xff] }
 0x7b2   : > { %v2318_v28 = vsel %vm508_vm5, %v7595_v0, %v7594_v55  ;;  %3123 = vmatprep.subr.mxu1 %v2681_v6  ;;  %v2317_v31 = vsel %vm508_vm5, %v7597_v5, %v7595_v0  ;;  %v7601_v55 = vld [vmem:[#allocation46_spill] sm:$0xff]  ;;  %v7604_v21 = vld [vmem:[#allocation172_spill] sm:$0xff] }
 0x7b3   : > { %3060 = vmatprep.subr.mxu0 %v2318_v28  ;;  %3124 = vmatpush1.msra.mxu1 %v2680_v54  ;;  %v2316_v3 = vsel %vm508_vm5, %v7601_v55, %v7600_v12  ;;  %v7602_v6 = vld [vmem:[#allocation170_spill] sm:$0xff]  ;;  %v7605_v54 = vld [vmem:[#allocation156_spill] sm:$0xff]  ;;  %v7607_v12 = vld [vmem:[#allocation21_spill] sm:$0xff] }
 0x7b4   : > { %3061 = vmatpush1.msra.mxu0 %v2317_v31  ;;  %3125 = vmatprep.subr.mxu1 %v2679_v9  ;;  %v2678_v22 = vsel %vm2667_vm10, %v7602_v6, %v7599_v2  ;;  %v7603_v28 = vld [vmem:[#allocation42_spill] sm:$0xff]  ;;  %v2677_v5 = vsel %vm2667_vm10, %v7605_v54, %v7604_v21  ;;  %v6484_v31 = vpop.permute.xlu0 %2373  ;;  %v2314_v9 = vsel %vm508_vm5, %v7607_v12, %v7606_v47  ;;  %v6489_v51 = vpop.permute.xlu1 %2223  ;;  %v7613_v21 = vld [vmem:[#allocation119_spill] sm:$0xff] }
 0x7b5   : > { %3062 = vmatprep.subr.mxu0 %v2316_v3  ;;  %v2315_v0 = vsel %vm508_vm5, %v7603_v28, %v7601_v55  ;;  %3126 = vmatpush1.msra.mxu1 %v2678_v22  ;;  %7608 = vst [vmem:[#allocation262_spill] sm:$0xff] %v6489_v51  ;;  %v7609_v3 = vld [vmem:[#allocation141_spill] sm:$0xff]  ;;  %v7611_v22 = vld [vmem:[#allocation259_spill] sm:$0xff] }
 0x7b6   : > { %3063 = vmatpush1.msra.mxu0 %v2315_v0  ;;  %3127 = vmatprep.subr.mxu1 %v2677_v5  ;;  %v2676_v2 = vsel %vm2667_vm10, %v7609_v3, %v7605_v54  ;;  %v7610_v55 = vld [vmem:[#allocation5_spill] sm:$0xff]  ;;  %v2240_v28 = vsel %vm496_vm6, %v7611_v22, %v6489_v51  ;;  %v7612_v0 = vld [vmem:[#allocation143_spill] sm:$0xff]  ;;  %v7614_v5 = vld [vmem:[#allocation252_spill] sm:$0xff] }
 0x7b7   : > { %3064 = vmatprep.subr.mxu0 %v2314_v9  ;;  %v2313_v6 = vsel %vm508_vm5, %v7610_v55, %v7607_v12  ;;  %3128 = vmatpush1.msra.mxu1 %v2676_v2  ;;  %v2675_v47 = vsel %vm2667_vm10, %v7613_v21, %v7612_v0  ;;  %v2239_v49 = vsel %vm496_vm6, %v7614_v5, %v7611_v22  ;;  %v7615_v54 = vld [vmem:[#allocation100_spill] sm:$0xff]  ;;  %v7616_v12 = vld [vmem:[#allocation102_spill] sm:$0xff]  ;;  %v7624_v5 = vld [vmem:[#allocation47_spill] sm:$0xff]  ;;  %vm2578_vm5 = vcmask 580608  }
 0x7b8   : > { %3065 = vmatpush1.msra.mxu0 %v2313_v6  ;;  %3129 = vmatprep.subr.mxu1 %v2675_v47  ;;  %v2674_v9 = vsel %vm2667_vm10, %v7615_v54, %v7613_v21  ;;  %v7617_v3 = vld [vmem:[#allocation88_spill] sm:$0xff]  ;;  %v6512_v55 = vpop.permute.xlu0 %2734  ;;  %v7618_v51 = vld [vmem:[#allocation246_spill] sm:$0xff]  ;;  %v7619_v6 = vld [vmem:[#allocation227_spill] sm:$0xff]  ;;  %v6517_v8 = vpop.permute.xlu1 %2576 }
 0x7b9   : > { %3066 = vmatprep.subr.mxu0 %v2240_v28  ;;  %3130 = vmatpush1.msra.mxu1 %v2674_v9  ;;  %v2673_v2 = vsel %vm2667_vm10, %v7617_v3, %v7616_v12  ;;  %v2238_v0 = vsel %vm496_vm6, %v7619_v6, %v7618_v51  ;;  %7620 = vst [vmem:[#allocation264_spill] sm:$0xff] %v6517_v8  ;;  %v7621_v47 = vld [vmem:[#allocation74_spill] sm:$0xff]  ;;  %v7626_v51 = vld [vmem:[#allocation191_spill] sm:$0xff] }
 0x7ba   : > { %3067 = vmatpush1.msra.mxu0 %v2239_v49  ;;  %3131 = vmatprep.subr.mxu1 %v2673_v2  ;;  %v2672_v21 = vsel %vm2667_vm10, %v7621_v47, %v7617_v3  ;;  %v7622_v22 = vld [vmem:[#allocation210_spill] sm:$0xff]  ;;  %v7623_v49 = vld [vmem:[#allocation76_spill] sm:$0xff]  ;;  %v7627_v2 = vld [vmem:[#allocation37_spill] sm:$0xff] }
 0x7bb   : > { %3068 = vmatprep.subr.mxu0 %v2238_v0  ;;  %v2237_v28 = vsel %vm496_vm6, %v7622_v22, %v7619_v6  ;;  %3132 = vmatpush1.msra.mxu1 %v2672_v21  ;;  %v2671_v54 = vsel %vm2667_vm10, %v7624_v5, %v7623_v49  ;;  %v7625_v9 = vld [vmem:[#allocation214_spill] sm:$0xff]  ;;  %v2670_v0 = vsel %vm2667_vm10, %v7627_v2, %v7624_v5  ;;  %v7629_v47 = vld [vmem:[#allocation39_spill] sm:$0xff]  ;;  %v7632_v49 = vld [vmem:[#allocation173_spill] sm:$0xff] }
 0x7bc   : > { %3069 = vmatpush1.msra.mxu0 %v2237_v28  ;;  %v2236_v12 = vsel %vm496_vm6, %v7626_v51, %v7625_v9  ;;  %3133 = vmatprep.subr.mxu1 %v2671_v54  ;;  %v7628_v3 = vld [vmem:[#allocation182_spill] sm:$0xff]  ;;  %v7630_v21 = vld [vmem:[#allocation23_spill] sm:$0xff]  ;;  %v7631_v28 = vld [vmem:[#allocation261_spill] sm:$0xff]  ;;  %v6543_v54 = vpop.permute.xlu0 %2371  ;;  %v6548_v5 = vpop.permute.xlu1 %2726 }
 0x7bd   : > { %3070 = vmatprep.subr.mxu0 %v2236_v12  ;;  %v2235_v6 = vsel %vm496_vm6, %v7628_v3, %v7626_v51  ;;  %3134 = vmatpush1.msra.mxu1 %v2670_v0  ;;  %v2669_v22 = vsel %vm2667_vm10, %v7630_v21, %v7629_v47  ;;  %v2594_v9 = vsel %vm2578_vm5, %v7631_v28, %v6517_v8  ;;  %v7634_v51 = vld [vmem:[#allocation18_spill] sm:$0xff]  ;;  %v7635_v0 = vld [vmem:[#allocation140_spill] sm:$0xff]  ;;  %v7637_v8 = vld [vmem:[#allocation121_spill] sm:$0xff] }
 0x7be   : > { %3071 = vmatpush1.msra.mxu0 %v2235_v6  ;;  %v2234_v12 = vsel %vm496_vm6, %v7633_v35, %v7632_v49  ;;  %3135 = vmatprep.subr.mxu1 %v2669_v22  ;;  %v2668_v2 = vsel %vm2667_vm10, %v7634_v51, %v7630_v21  ;;  %v2233_v3 = vsel %vm496_vm6, %v7635_v0, %v7633_v35  ;;  %v7636_v6 = vld [vmem:[#allocation144_spill] sm:$0xff]  ;;  %v7638_v49 = vld [vmem:[#allocation249_spill] sm:$0xff] }
 0x7bf   : > { %3072 = vmatprep.subr.mxu0 %v2234_v12  ;;  %3136 = vmatpush1.msra.mxu1 %v2668_v2  ;;  %v2232_v47 = vsel %vm496_vm6, %v7637_v8, %v7636_v6  ;;  %v2593_v25 = vsel %vm2578_vm5, %v7638_v49, %v7631_v28  ;;  %v7639_v22 = vld [vmem:[#allocation112_spill] sm:$0xff]  ;;  %v7640_v12 = vld [vmem:[#allocation251_spill] sm:$0xff]  ;;  %v7641_v51 = vld [vmem:[#allocation229_spill] sm:$0xff] }
 0x7c0   : > { %3073 = vmatpush1.msra.mxu0 %v2233_v3  ;;  %3137 = vmatprep.subr.mxu1 %v2594_v9  ;;  %v2231_v21 = vsel %vm496_vm6, %v7639_v22, %v7637_v8  ;;  %v2592_v35 = vsel %vm2578_vm5, %v7641_v51, %v7640_v12  ;;  %v6568_v2 = vpop.permute.xlu0 %2367  ;;  %v7642_v0 = vld [vmem:[#allocation104_spill] sm:$0xff]  ;;  %v7643_v3 = vld [vmem:[#allocation90_spill] sm:$0xff]  ;;  %v6573_v10 = vpop.permute.xlu1 %2363 }
 0x7c1   : > { %3074 = vmatprep.subr.mxu0 %v2232_v47  ;;  %3138 = vmatpush1.msra.mxu1 %v2593_v25  ;;  %v2230_v6 = vsel %vm496_vm6, %v7643_v3, %v7642_v0  ;;  %v7644_v49 = vld [vmem:[#allocation216_spill] sm:$0xff]  ;;  %v7645_v8 = vld [vmem:[#allocation70_spill] sm:$0xff]  ;;  %v7649_v0 = vld [vmem:[#allocation49_spill] sm:$0xff] }
 0x7c2   : > { %3075 = vmatpush1.msra.mxu0 %v2231_v21  ;;  %3139 = vmatprep.subr.mxu1 %v2592_v35  ;;  %v2591_v9 = vsel %vm2578_vm5, %v7644_v49, %v7641_v51  ;;  %v2229_v25 = vsel %vm496_vm6, %v7645_v8, %v7643_v3  ;;  %v7646_v47 = vld [vmem:[#allocation218_spill] sm:$0xff]  ;;  %v7647_v28 = vld [vmem:[#allocation192_spill] sm:$0xff]  ;;  %v7650_v35 = vld [vmem:[#allocation175_spill] sm:$0xff] }
 0x7c3   : > { %3076 = vmatprep.subr.mxu0 %v2230_v6  ;;  %3140 = vmatpush1.msra.mxu1 %v2591_v9  ;;  %v2590_v22 = vsel %vm2578_vm5, %v7647_v28, %v7646_v47  ;;  %v7648_v21 = vld [vmem:[#allocation78_spill] sm:$0xff]  ;;  %v2589_v51 = vsel %vm2578_vm5, %v7650_v35, %v7647_v28  ;;  %v7651_v6 = vld [vmem:[#allocation44_spill] sm:$0xff]  ;;  %v7652_v49 = vld [vmem:[#allocation177_spill] sm:$0xff] }
 0x7c4   : > { %3077 = vmatpush1.msra.mxu0 %v2229_v25  ;;  %v2228_v12 = vsel %vm496_vm6, %v7649_v0, %v7648_v21  ;;  %3141 = vmatprep.subr.mxu1 %v2590_v22  ;;  %v2227_v3 = vsel %vm496_vm6, %v7651_v6, %v7649_v0  ;;  %v7653_v9 = vld [vmem:[#allocation160_spill] sm:$0xff]  ;;  %v6596_v25 = vpop.permute.xlu0 %2728  ;;  %v7654_v47 = vld [vmem:[#allocation41_spill] sm:$0xff]  ;;  %v6601_v44 = vpop.permute.xlu1 %2487  ;;  %v7658_v0 = vld [vmem:[#allocation6_spill] sm:$0xff] }
 0x7c5   : > { %3078 = vmatprep.subr.mxu0 %v2228_v12  ;;  %3142 = vmatpush1.msra.mxu1 %v2589_v51  ;;  %v2588_v8 = vsel %vm2578_vm5, %v7653_v9, %v7652_v49  ;;  %v7655_v21 = vld [vmem:[#allocation25_spill] sm:$0xff]  ;;  %7656 = vst [vmem:[#allocation240_spill] sm:$0xff] %v6601_v44  ;;  %v7657_v12 = vld [vmem:[#allocation146_spill] sm:$0xff]  ;;  %v7659_v51 = vld [vmem:[#allocation263_spill] sm:$0xff] }
 0x7c6   : > { %3079 = vmatpush1.msra.mxu0 %v2227_v3  ;;  %v2226_v22 = vsel %vm496_vm6, %v7655_v21, %v7654_v47  ;;  %3143 = vmatprep.subr.mxu1 %v2588_v8  ;;  %v2587_v28 = vsel %vm2578_vm5, %v7657_v12, %v7653_v9  ;;  %v2225_v35 = vsel %vm496_vm6, %v7658_v0, %v7655_v21  ;;  %v7660_v3 = vld [vmem:[#allocation148_spill] sm:$0xff]  ;;  %v7661_v49 = vld [vmem:[#allocation122_spill] sm:$0xff]  ;;  %v7663_v9 = vld [vmem:[#allocation105_spill] sm:$0xff] }
 0x7c7   : > { %3080 = vmatprep.subr.mxu0 %v2226_v22  ;;  %v2505_v6 = vsel %vm2489_vm3, %v7659_v51, %v6601_v44  ;;  %3144 = vmatpush1.msra.mxu1 %v2587_v28  ;;  %v2586_v47 = vsel %vm2578_vm5, %v7661_v49, %v7660_v3  ;;  %v7662_v8 = vld [vmem:[#allocation254_spill] sm:$0xff]  ;;  %v2585_v22 = vsel %vm2578_vm5, %v7663_v9, %v7661_v49  ;;  %v7664_v21 = vld [vmem:[#allocation107_spill] sm:$0xff]  ;;  %v7665_v12 = vld [vmem:[#allocation92_spill] sm:$0xff] }
 0x7c8   : > { %3081 = vmatpush1.msra.mxu0 %v2225_v35  ;;  %v2504_v40 = vsel %vm2489_vm3, %v7662_v8, %v7659_v51  ;;  %3145 = vmatprep.subr.mxu1 %v2586_v47  ;;  %v2584_v28 = vsel %vm2578_vm5, %v7665_v12, %v7664_v21  ;;  %v6624_v0 = vpop.permute.xlu0 %2365  ;;  %v7666_v3 = vld [vmem:[#allocation253_spill] sm:$0xff]  ;;  %v7667_v35 = vld [vmem:[#allocation231_spill] sm:$0xff]  ;;  %v6629_v41 = vpop.permute.xlu1 %2843  ;;  %v7669_v47 = vld [vmem:[#allocation80_spill] sm:$0xff] }
 0x7c9   : > { %3082 = vmatprep.subr.mxu0 %v2505_v6  ;;  %3146 = vmatpush1.msra.mxu1 %v2585_v22  ;;  %v2503_v44 = vsel %vm2489_vm3, %v7667_v35, %v7666_v3  ;;  %7668 = vst [vmem:[#allocation242_spill] sm:$0xff] %v6629_v41  ;;  %v2583_v49 = vsel %vm2578_vm5, %v7669_v47, %v7665_v12  ;;  %v7670_v51 = vld [vmem:[#allocation212_spill] sm:$0xff]  ;;  %v7672_v8 = vld [vmem:[#allocation51_spill] sm:$0xff]  ;;  %v7674_v21 = vld [vmem:[#allocation194_spill] sm:$0xff] }
 0x7ca   : > { %3083 = vmatpush2.msra.mxu0 %v2504_v40  ;;  %3147 = vmatprep.subr.mxu1 %v2584_v28  ;;  %v2502_v6 = vsel %vm2489_vm3, %v7670_v51, %v7667_v35  ;;  %v7671_v40 = vld [vmem:[#allocation81_spill] sm:$0xff]  ;;  %v7673_v22 = vld [vmem:[#allocation220_spill] sm:$0xff]  ;;  %v7675_v28 = vld [vmem:[#allocation43_spill] sm:$0xff] }
 0x7cb   : > { %3084 = vmatprep.subr.mxu0 %v2503_v44  ;;  %3148 = vmatpush1.msra.mxu1 %v2583_v49  ;;  %v2582_v9 = vsel %vm2578_vm5, %v7672_v8, %v7671_v40  ;;  %v2501_v3 = vsel %vm2489_vm3, %v7674_v21, %v7673_v22  ;;  %v2581_v12 = vsel %vm2578_vm5, %v7675_v28, %v7672_v8  ;;  %v7676_v44 = vld [vmem:[#allocation184_spill] sm:$0xff]  ;;  %v7677_v47 = vld [vmem:[#allocation45_spill] sm:$0xff]  ;;  %v7678_v49 = vld [vmem:[#allocation27_spill] sm:$0xff] }
 0x7cc   : > { %3085 = vmatpush2.msra.mxu0 %v2502_v6  ;;  %3149 = vmatprep.subr.mxu1 %v2582_v9  ;;  %v2500_v35 = vsel %vm2489_vm3, %v7676_v44, %v7674_v21  ;;  %v2580_v51 = vsel %vm2578_vm5, %v7678_v49, %v7677_v47  ;;  %v7679_v6 = vld [vmem:[#allocation265_spill] sm:$0xff]  ;;  %v6655_v9 = vpop.permute.xlu0 %2361  ;;  %v7680_v22 = vld [vmem:[#allocation179_spill] sm:$0xff]  ;;  %v6660_v8 = vpop.permute.xlu1 %2724  ;;  %v7682_v21 = vld [vmem:[#allocation20_spill] sm:$0xff] }
 0x7cd   : > { %3086 = vmatprep.subr.mxu0 %v2501_v3  ;;  %3150 = vmatpush1.msra.mxu1 %v2581_v12  ;;  %v2861_v40 = vsel %vm2845_vm2, %v7679_v6, %v6629_v41  ;;  %v2499_v3 = vsel %vm2489_vm3, %v7681_v37, %v7680_v22  ;;  %v2579_v28 = vsel %vm2578_vm5, %v7682_v21, %v7678_v49  ;;  %v7683_v12 = vld [vmem:[#allocation142_spill] sm:$0xff]  ;;  %v7685_v47 = vld [vmem:[#allocation124_spill] sm:$0xff]  ;;  %v7686_v22 = vld [vmem:[#allocation255_spill] sm:$0xff] }
 0x7ce   : > { %3087 = vmatpush2.msra.mxu0 %v2500_v35  ;;  %3151 = vmatprep.subr.mxu1 %v2580_v51  ;;  %v2498_v44 = vsel %vm2489_vm3, %v7683_v12, %v7681_v37  ;;  %v7684_v35 = vld [vmem:[#allocation150_spill] sm:$0xff]  ;;  %v2860_v61 = vsel %vm2845_vm2, %v7686_v22, %v7679_v6  ;;  %v7689_v21 = vld [vmem:[#allocation233_spill] sm:$0xff]  ;;  %v7694_v6 = vld [vmem:[#allocation223_spill] sm:$0xff] }
 0x7cf   : > { %3088 = vmatprep.subr.mxu0 %v2499_v3  ;;  %3152 = vmatpush1.msra.mxu1 %v2579_v28  ;;  %v2497_v41 = vsel %vm2489_vm3, %v7685_v47, %v7684_v35  ;;  %v7687_v51 = vld [vmem:[#allocation114_spill] sm:$0xff]  ;;  %v7688_v3 = vld [vmem:[#allocation257_spill] sm:$0xff] }
 0x7d0   : > { %3089 = vmatpush2.msra.mxu0 %v2498_v44  ;;  %3153 = vmatprep.subr.mxu1 %v2861_v40  ;;  %v2496_v49 = vsel %vm2489_vm3, %v7687_v51, %v7685_v47  ;;  %v2859_v37 = vsel %vm2845_vm2, %v7689_v21, %v7688_v3  ;;  %v6680_v28 = vpop.permute.xlu0 %2722  ;;  %v7690_v12 = vld [vmem:[#allocation109_spill] sm:$0xff]  ;;  %v7691_v44 = vld [vmem:[#allocation94_spill] sm:$0xff]  ;;  %v7695_v51 = vld [vmem:[#allocation195_spill] sm:$0xff] }
 0x7d1   : > { %3090 = vmatprep.subr.mxu0 %v2497_v41  ;;  %3154 = vmatpush2.msra.mxu1 %v2860_v61  ;;  %v2495_v35 = vsel %vm2489_vm3, %v7691_v44, %v7690_v12  ;;  %v7692_v40 = vld [vmem:[#allocation221_spill] sm:$0xff]  ;;  %v6688_v22 = vpop.permute.xlu1 %2720  ;;  %v7693_v61 = vld [vmem:[#allocation72_spill] sm:$0xff]  ;;  %v7696_v3 = vld [vmem:[#allocation83_spill] sm:$0xff] }
 0x7d2   : > { %3091 = vmatpush2.msra.mxu0 %v2496_v49  ;;  %3155 = vmatprep.subr.mxu1 %v2859_v37  ;;  %v2858_v41 = vsel %vm2845_vm2, %v7692_v40, %v7689_v21  ;;  %v2494_v47 = vsel %vm2489_vm3, %v7693_v61, %v7691_v44  ;;  %v2857_v49 = vsel %vm2845_vm2, %v7695_v51, %v7694_v6  ;;  %v7697_v12 = vld [vmem:[#allocation53_spill] sm:$0xff]  ;;  %v7699_v44 = vld [vmem:[#allocation183_spill] sm:$0xff] }
 0x7d3   : > { %3092 = vmatprep.subr.mxu0 %v2495_v35  ;;  %3156 = vmatpush2.msra.mxu1 %v2858_v41  ;;  %v2493_v37 = vsel %vm2489_vm3, %v7697_v12, %v7696_v3  ;;  %v2492_v35 = vsel %vm2489_vm3, %v6017_v48, %v7697_v12  ;;  %v7698_v21 = vld [vmem:[#allocation181_spill] sm:$0xff]  ;;  %v7700_v41 = vld [vmem:[#allocation164_spill] sm:$0xff]  ;;  %v2491_v3 = vsel %vm2489_vm3, %v6035_v53, %v5982_v46  ;;  %v7701_v48 = vld [vmem:[#allocation151_spill] sm:$0xff] }
 0x7d4   : > { %3093 = vmatpush2.msra.mxu0 %v2494_v47  ;;  %3157 = vmatprep.subr.mxu1 %v2857_v49  ;;  %v2856_v40 = vsel %vm2845_vm2, %v7698_v21, %v7695_v51  ;;  %v2855_v61 = vsel %vm2845_vm2, %v7700_v41, %v7699_v44  ;;  %v2360_v47 = vpop.permute.xlu0 %2359  ;;  %v2854_v12 = vsel %vm2845_vm2, %v7701_v48, %v7700_v41  ;;  %v7702_v51 = vld [vmem:[#allocation153_spill] sm:$0xff] }
 0x7d5   : > { %3094 = vmatprep.subr.mxu0 %v2493_v37  ;;  %3158 = vmatpush2.msra.mxu1 %v2856_v40  ;;  %v6714_v49 = vpop.permute.xlu1 %2399  ;;  %v7703_v37 = vld [vmem:[#allocation125_spill] sm:$0xff]  ;;  %v2415_v53 = vsel %vm520_vm4, %v6158_v24, %v6100_v45 }
 0x7d6   : > { %3095 = vmatpush2.msra.mxu0 %v2492_v35  ;;  %3159 = vmatprep.subr.mxu1 %v2855_v61  ;;  %v2853_v21 = vsel %vm2845_vm2, %v7703_v37, %v7702_v51  ;;  %v2416_v35 = vsel %vm520_vm4, %v6100_v45, %v6714_v49  ;;  %v7705_v41 = vld [vmem:[#allocation113_spill] sm:$0xff]  ;;  %v7706_v61 = vld [vmem:[#allocation96_spill] sm:$0xff] }
 0x7d7   : > { %3096 = vmatprep.subr.mxu0 %v2491_v3  ;;  %3160 = vmatpush2.msra.mxu1 %v2854_v12  ;;  %v7704_v3 = vld [vmem:[#allocation111_spill] sm:$0xff]  ;;  %v2851_v48 = vsel %vm2845_vm2, %v7706_v61, %v7705_v41  ;;  %v2414_v12 = vsel %vm520_vm4, %v6186_v19, %v6075_v42  ;;  %v2850_v45 = vsel %vm2845_vm2, %v5962_v33, %v7706_v61 }
 0x7d8   : > { %3097 = vmatpush2.msra.mxu0 %v6081_v13  ;;  %3161 = vmatprep.subr.mxu1 %v2853_v21  ;;  %v2852_v40 = vsel %vm2845_vm2, %v7704_v3, %v7703_v37  ;;  %v2356_v13 = vpop.permute.xlu0 %2355  ;;  %v2849_v37 = vsel %vm2845_vm2, %v6052_v58, %v6002_v52  ;;  %v2412_v21 = vsel %vm520_vm4, %v6272_v38, %v6128_v4 }
 0x7d9   : > { %3098 = vmatprep.subr.mxu0 %v2416_v35  ;;  %3162 = vmatpush2.msra.mxu1 %v2852_v40  ;;  %v6738_v24 = vpop.permute.xlu1 %2754  ;;  %v2411_v19 = vsel %vm520_vm4, %v6360_v29, %v6272_v38  ;;  %v2847_v33 = vsel %vm2845_vm2, %v6126_v43, %v6037_v34  ;;  %v2410_v35 = vsel %vm520_vm4, %v6402_v39, %v6242_v36 }
 0x7da   : > { %3099 = vmatpush2.msra.mxu0 %v2415_v53  ;;  %3163 = vmatprep.subr.mxu1 %v2851_v48  ;;  %v2772_v58 = vsel %vm2756_vm9, %v6217_v62, %v6738_v24  ;;  %v2409_v38 = vsel %vm520_vm4, %v6456_v50, %v6402_v39  ;;  %v2408_v43 = vsel %vm520_vm4, %v6484_v31, %v6338_v59 }
 0x7db   : > { %3100 = vmatprep.subr.mxu0 %v2414_v12  ;;  %3164 = vmatpush2.msra.mxu1 %v2850_v45  ;;  %v2771_v29 = vsel %vm2756_vm9, %v6102_v32, %v6217_v62  ;;  %v2407_v53 = vsel %vm520_vm4, %v6543_v54, %v6484_v31  ;;  %v2406_v39 = vsel %vm520_vm4, %v6568_v2, %v6435_v60  ;;  %v7708_v12 = vld [vmem:[#allocation201_spill] sm:$0xff] }
 0x7dc   : > { %3101 = vmatpush2.msra.mxu0 %v6252_v27  ;;  %3165 = vmatprep.subr.mxu1 %v2849_v37  ;;  %v2717_v27 = vpop.permute.xlu0 %2716  ;;  %v2405_v32 = vsel %vm520_vm4, %v6624_v0, %v6568_v2  ;;  %v2768_v50 = vsel %vm2756_vm9, %v6433_v11, %v6274_v20  ;;  %v2767_v54 = vsel %vm2756_vm9, %v6302_v18, %v6433_v11  ;;  %v7709_v37 = vld [vmem:[#allocation197_spill] sm:$0xff] }
 0x7dd   : > { %3102 = vmatprep.subr.mxu0 %v2412_v21  ;;  %3166 = vmatpush2.msra.mxu1 %v6062_v26  ;;  %v6763_v26 = vpop.permute.xlu1 %2357  ;;  %v2403_v2 = vsel %vm520_vm4, %v2360_v47, %v6655_v9  ;;  %v2765_v3 = vsel %vm2756_vm9, %v6379_v56, %v6512_v55  ;;  %v2764_v11 = vsel %vm2756_vm9, %v6596_v25, %v6461_v63  ;;  %v6813_v47 = vld [vmem:[%s6983_s5 + $0x18] sm:$0x77] }
 0x7de   : > { %3103 = vmatpush2.msra.mxu0 %v2411_v19  ;;  %3167 = vmatprep.subr.mxu1 %v2847_v33  ;;  %v2402_v0 = vsel %vm520_vm4, %v2356_v13, %v6763_v26  ;;  %v2763_v56 = vsel %vm2756_vm9, %v6548_v5, %v6596_v25  ;;  %v2762_v40 = vsel %vm2756_vm9, %v6680_v28, %v6660_v8  ;;  %v7711_v21 = vld [vmem:[#allocation157_spill] sm:$0xff]  ;;  %v7713_v19 = vld [vmem:[#allocation270_spill] sm:$0xff]  ;;  %v7714_v33 = vld [vmem:[#allocation131_spill] sm:$0xff] }
 0x7df   : > { %3104 = vmatprep.subr.mxu0 %v2410_v35  ;;  %3168 = vmatpush2.msra.mxu1 %v6138_v17  ;;  %v2770_v17 = vsel %vm2756_vm9, %v6336_v7, %v6160_v23  ;;  %v2404_v7 = vsel %vm520_vm4, %v6655_v9, %v6573_v10  ;;  %v2761_v61 = vsel %vm2756_vm9, %v6688_v22, %v6680_v28  ;;  %v7717_v35 = vld [vmem:[#allocation234_spill] sm:$0xff] }
 0x7e0   : > { %3105 = vmatpush2.msra.mxu0 %v2409_v38  ;;  %3169 = vmatprep.subr.mxu1 %v2772_v58  ;;  %v6830_v5 = vcombine.high %v6813_v47, %v6813_v47  ;;  %v7715_v58 = vld [vmem:[#allocation250_spill] sm:$0xff]  ;;  %v7718_v38 = vld [vmem:[#allocation89_spill] sm:$0xff] }
 0x7e1   : > { %3106 = vmatprep.subr.mxu0 %v2408_v43  ;;  %3170 = vmatpush2.msra.mxu1 %v2771_v29  ;;  %v2354_v62 = vpop.permute.xlu0 %2353  ;;  %v7719_v43 = vld [vmem:[#allocation207_spill] sm:$0xff]  ;;  %v7720_v29 = vld [vmem:[#allocation85_spill] sm:$0xff] }
 0x7e2   : > { %3107 = vmatpush2.msra.mxu0 %v2407_v53  ;;  %3171 = vmatprep.subr.mxu1 %v2770_v17  ;;  %v6788_v31 = vpop.permute.xlu1 %2718  ;;  %v2401_v18 = vsel %vm520_vm4, %v2354_v62, %v2356_v13  ;;  %v7707_v13 = vld [vmem:[#allocation266_spill] sm:$0xff]  ;;  %v7721_v53 = vld [vmem:[#allocation204_spill] sm:$0xff]  ;;  %v7722_v17 = vld [vmem:[#allocation59_spill] sm:$0xff]  ;;  %vm3477_vm4 = vcmask 387072  }
 0x7e3   : > { %3108 = vmatprep.subr.mxu0 %v2406_v39  ;;  %3172 = vmatpush2.msra.mxu1 %v6353_v14  ;;  %v2766_v14 = vsel %vm2756_vm9, %v6512_v55, %v6362_v30  ;;  %v2760_v25 = vsel %vm2756_vm9, %v2717_v27, %v6788_v31  ;;  %v7723_v39 = vld [vmem:[#allocation178_spill] sm:$0xff]  ;;  %v7725_v62 = vld [vmem:[#allocation165_spill] sm:$0xff] }
 0x7e4   : > { %3109 = vmatpush2.msra.mxu0 %v2405_v32  ;;  %3173 = vmatprep.subr.mxu1 %v2768_v50  ;;  %v7724_v32 = vld [vmem:[#allocation55_spill] sm:$0xff]  ;;  %v7726_v50 = vld [vmem:[#allocation26_spill] sm:$0xff] }
 0x7e5   : > { %3110 = vmatprep.subr.mxu0 %v2404_v7  ;;  %3174 = vmatpush2.msra.mxu1 %v2767_v54  ;;  %v7727_v7 = vld [vmem:[#allocation137_spill] sm:$0xff]  ;;  %v7728_v54 = vld [vmem:[#allocation22_spill] sm:$0xff] }
 0x7e6   : > { %3111 = vmatpush2.msra.mxu0 %v2403_v2  ;;  %3175 = vmatprep.subr.mxu1 %v2766_v14  ;;  %v2711_v9 = vpop.permute.xlu0 %2710  ;;  %v7729_v2 = vld [vmem:[#allocation134_spill] sm:$0xff]  ;;  %v7730_v14 = vld [vmem:[#allocation268_spill] sm:$0xff] }
 0x7e7   : > { %3112 = vmatprep.subr.mxu0 %v2402_v0  ;;  %3176 = vmatpush2.msra.mxu1 %v2765_v3  ;;  %v2715_v55 = vpop.permute.xlu1 %2714  ;;  %v7731_v0 = vld [vmem:[#allocation97_spill] sm:$0xff]  ;;  %v3863_v3 = vld [vmem:[#allocation4 + $0xb8] sm:$0xff] }
 0x7e8   : > { %3113 = vmatpush2.msra.mxu0 %v2401_v18  ;;  %3177 = vmatprep.subr.mxu1 %v2764_v11  ;;  %v2759_v48 = vsel %vm2756_vm9, %v2715_v55, %v2717_v27  ;;  %v7716_v27 = vld [vmem:[#allocation127_spill] sm:$0xff]  ;;  %v7732_v18 = vld [vmem:[#allocation93_spill] sm:$0xff]  ;;  %v7733_v11 = vld [vmem:[#allocation228_spill] sm:$0xff] }
 0x7e9   : > { %3115 = vmatmul.mubr.f32.vlgmr.msra.gmra.mxu0 %v6313_v16  ;;  %3178 = vmatpush2.msra.mxu1 %v2763_v56  ;;  %v3864_v56 = vld [vmem:[#allocation4 + $0xa0] sm:$0xff]  ;;  %v7735_v55 = vld [vmem:[#allocation62_spill] sm:$0xff] }
 0x7ea   : > { %3590 = vmatprep.subr.mxu0 %v5957_v1  ;;  %3179 = vmatprep.subr.mxu1 %v2762_v40  ;;  %v7736_v40 = vld [vmem:[#allocation199_spill] sm:$0xff] }
 0x7eb   : > { %3591 = vmatpush3.msra.mxu0 %v7707_v13  ;;  %3180 = vmatpush2.msra.mxu1 %v2761_v61  ;;  %v2709_v1 = vpop.permute.xlu0 %2708  ;;  %v7737_v61 = vld [vmem:[#allocation33_spill] sm:$0xff] }
 0x7ec   : > { %3592 = vmatprep.subr.mxu0 %v7460_v57  ;;  %3181 = vmatprep.subr.mxu1 %v2760_v25  ;;  %v2757_v28 = vsel %vm2756_vm9, %v2709_v1, %v2711_v9  ;;  %v6837_v22 = vpop.permute.xlu1 %2712  ;;  %v7710_v57 = vld [vmem:[#allocation161_spill] sm:$0xff]  ;;  %v7739_v25 = vld [vmem:[#allocation159_spill] sm:$0xff]  ;;  %v7740_v1 = vld [vmem:[#allocation54_spill] sm:$0xff] }
 0x7ed   : > { %3593 = vmatpush3.msra.mxu0 %v5728_v15  ;;  %3182 = vmatpush2.msra.mxu1 %v2759_v48  ;;  %v2758_v45 = vsel %vm2756_vm9, %v2711_v9, %v6837_v22  ;;  %v7712_v15 = vld [vmem:[#allocation67_spill] sm:$0xff]  ;;  %v7734_v9 = vld [vmem:[#allocation66_spill] sm:$0xff]  ;;  %v7738_v13 = vld [vmem:[#allocation29_spill] sm:$0xff] }
 0x7ee   : > { %3594 = vmatprep.subr.mxu0 %v7708_v12  ;;  %3185 = vmatprep.mubr.f32.mxu1 %v6830_v5  ;;  %v3865_v48 = vld [vmem:[#allocation4 + $0x88] sm:$0xff]  ;;  %v7741_v12 = vld [vmem:[#allocation269_spill] sm:$0xff] }
 0x7ef   : > { %3595 = vmatpush3.msra.mxu0 %v7709_v37  ;;  %3183 = vmatprep.subr.mxu1 %v2758_v45  ;;  %v7742_v45 = vld [vmem:[#allocation129_spill] sm:$0xff]  ;;  %v7743_v37 = vld [vmem:[#allocation235_spill] sm:$0xff] }
 0x7f0   : > { %3596 = vmatprep.subr.mxu0 %v7710_v57  ;;  %3184 = vmatpush2.msra.mxu1 %v2757_v28  ;;  %v3866_v28 = vld [vmem:[#allocation4 + $0x70] sm:$0xff]  ;;  %v3867_v57 = vld [vmem:[#allocation4 + $0x58] sm:$0xff] }
 0x7f1   : > { %3597 = vmatpush3.msra.mxu0 %v7711_v21  ;;  %3186 = vmatmul.mubr.f32.vlgmr.msra.gmra.mxu1 %v6813_v47  ;;  %v7744_v21 = vld [vmem:[#allocation232_spill] sm:$0xff] }
 0x7f2   : > { %3625 = vmatprep.subr.mxu1 %v7712_v15  ;;  %3598 = vmatprep.subr.mxu0 %v7714_v33  ;;  %v7745_v15 = vld [vmem:[#allocation87_spill] sm:$0xff]  ;;  %v3868_v33 = vld [vmem:[#allocation4 + $0x40] sm:$0xff] }
 0x7f3   : > { %3626 = vmatpush3.msra.mxu1 %v7713_v19  ;;  %3599 = vmatpush3.msra.mxu0 %v7716_v27  ;;  %v7746_v19 = vld [vmem:[#allocation206_spill] sm:$0xff]  ;;  %v7748_v27 = vld [vmem:[#allocation57_spill] sm:$0xff] }
 0x7f4   : > { %3627 = vmatprep.subr.mxu1 %v7715_v58  ;;  %3600 = vmatprep.subr.mxu0 %v7718_v38  ;;  %v7747_v58 = vld [vmem:[#allocation202_spill] sm:$0xff] }
 0x7f5   : > { %3628 = vmatpush3.msra.mxu1 %v7717_v35  ;;  %3601 = vmatpush3.msra.mxu0 %v7720_v29  ;;  %v7749_v35 = vld [vmem:[#allocation166_spill] sm:$0xff]  ;;  %v7751_v29 = vld [vmem:[#allocation24_spill] sm:$0xff] }
 0x7f6   : > { %3629 = vmatprep.subr.mxu1 %v7719_v43  ;;  %3602 = vmatprep.subr.mxu0 %v7722_v17  ;;  %v3869_v38 = vld [vmem:[#allocation4 + $0x28] sm:$0xff]  ;;  %v7750_v43 = vld [vmem:[#allocation163_spill] sm:$0xff] }
 0x7f7   : > { %3630 = vmatpush3.msra.mxu1 %v7721_v53  ;;  %3603 = vmatpush3.msra.mxu0 %v7724_v32  ;;  %v7752_v53 = vld [vmem:[#allocation136_spill] sm:$0xff]  ;;  %v3870_v17 = vld [vmem:[#allocation4 + $0x10] sm:$0xff] }
 0x7f8   : > { %3631 = vmatprep.subr.mxu1 %v7723_v39  ;;  %3604 = vmatprep.subr.mxu0 %v7726_v50  ;;  %v7753_v39 = vld [vmem:[#allocation239_spill] sm:$0xff]  ;;  %v7754_v32 = vld [vmem:[#allocation132_spill] sm:$0xff] }
 0x7f9   : > { %3632 = vmatpush3.msra.mxu1 %v7725_v62  ;;  %3605 = vmatpush3.msra.mxu0 %v7728_v54  ;;  %v3871_v62 = vld [vmem:[%s6983_s5] sm:$0x77]  ;;  %v7755_v50 = vld [vmem:[#allocation95_spill] sm:$0xff] }
 0x7fa   : > { %3633 = vmatprep.subr.mxu1 %v7727_v7  ;;  %3606 = vmatprep.subr.mxu0 %v7730_v14  ;;  %v7756_v7 = vld [vmem:[#allocation240_spill] sm:$0xff]  ;;  %v7757_v54 = vld [vmem:[#allocation91_spill] sm:$0xff] }
 0x7fb   : > { %3634 = vmatpush3.msra.mxu1 %v7729_v2  ;;  %3607 = vmatpush3.msra.mxu0 %v3863_v3  ;;  %v7758_v2 = vld [vmem:[#allocation15_spill] sm:$0xff]  ;;  %v7759_v14 = vld [vmem:[#allocation64_spill] sm:$0xff] }
 0x7fc   : > { %3635 = vmatprep.subr.mxu1 %v7731_v0  ;;  %3608 = vmatprep.subr.mxu0 %v7733_v11  ;;  %v7760_v0 = vld [vmem:[#allocation253_spill] sm:$0xff]  ;;  %v7761_v3 = vld [vmem:[#allocation60_spill] sm:$0xff]  ;;  %v7763_v11 = vld [vmem:[#allocation31_spill] sm:$0xff] }
 0x7fd   : > { %3636 = vmatpush3.msra.mxu1 %v7732_v18  ;;  %3609 = vmatpush3.msra.mxu0 %v3864_v56  ;;  %v7762_v18 = vld [vmem:[#allocation241_spill] sm:$0xff]  ;;  %v7765_v56 = vld [vmem:[#allocation28_spill] sm:$0xff] }
 0x7fe   : > { %3637 = vmatprep.subr.mxu1 %v7734_v9  ;;  %3610 = vmatprep.subr.mxu0 %v7736_v40  ;;  %v7764_v9 = vld [vmem:[#allocation220_spill] sm:$0xff]  ;;  %v7767_v40 = vld [vmem:[#allocation209_spill] sm:$0xff] }
 0x7ff   : > { %3638 = vmatpush3.msra.mxu1 %v7735_v55  ;;  %3611 = vmatpush3.msra.mxu0 %v3865_v48  ;;  %v7766_v55 = vld [vmem:[#allocation247_spill] sm:$0xff] }
 0x800   : > { %3639 = vmatprep.subr.mxu1 %v7737_v61  ;;  %3612 = vmatprep.subr.mxu0 %v7739_v25  ;;  %v3872_v61 = vld [vmem:[%s6983_s5 + $0x8] sm:$0x77]  ;;  %v7770_v25 = vld [vmem:[#allocation168_spill] sm:$0xff] }
 0x801   : > { %3640 = vmatpush3.msra.mxu1 %v7738_v13  ;;  %3613 = vmatpush3.msra.mxu0 %v3866_v28  ;;  %v7768_v48 = vld [vmem:[#allocation179_spill] sm:$0xff]  ;;  %v7769_v13 = vld [vmem:[#allocation242_spill] sm:$0xff] }
 0x802   : > { %3641 = vmatprep.subr.mxu1 %v7740_v1  ;;  %3614 = vmatprep.subr.mxu0 %v7742_v45  ;;  %v7771_v1 = vld [vmem:[#allocation12_spill] sm:$0xff]  ;;  %v7772_v28 = vld [vmem:[#allocation150_spill] sm:$0xff]  ;;  %v7774_v45 = vld [vmem:[#allocation139_spill] sm:$0xff] }
 0x803   : > { %3642 = vmatpush3.msra.mxu1 %v7741_v12  ;;  %3615 = vmatpush3.msra.mxu0 %v3867_v57  ;;  %v7773_v12 = vld [vmem:[#allocation257_spill] sm:$0xff] }
 0x804   : > { %3643 = vmatprep.subr.mxu1 %v7743_v37  ;;  %3616 = vmatprep.subr.mxu0 %v7745_v15  ;;  %v7775_v37 = vld [vmem:[#allocation244_spill] sm:$0xff]  ;;  %v7776_v57 = vld [vmem:[#allocation109_spill] sm:$0xff] }
 0x805   : > { %3644 = vmatpush3.msra.mxu1 %v7744_v21  ;;  %3617 = vmatpush3.msra.mxu0 %v3868_v33  ;;  %v7777_v21 = vld [vmem:[#allocation98_spill] sm:$0xff]  ;;  %v7778_v15 = vld [vmem:[#allocation213_spill] sm:$0xff] }
 0x806   : > { %3645 = vmatprep.subr.mxu1 %v7746_v19  ;;  %3618 = vmatprep.subr.mxu0 %v7748_v27  ;;  %v7779_v19 = vld [vmem:[#allocation83_spill] sm:$0xff]  ;;  %v7780_v33 = vld [vmem:[#allocation73_spill] sm:$0xff] }
 0x807   : > { %3646 = vmatpush3.msra.mxu1 %v7747_v58  ;;  %3619 = vmatpush3.msra.mxu0 %v3869_v38  ;;  %v7781_v58 = vld [vmem:[#allocation172_spill] sm:$0xff]  ;;  %v7782_v27 = vld [vmem:[#allocation35_spill] sm:$0xff]  ;;  %v7785_v38 = vld [vmem:[#allocation102_spill] sm:$0xff] }
 0x808   : > { %3647 = vmatprep.subr.mxu1 %v7749_v35  ;;  %3620 = vmatprep.subr.mxu0 %v7751_v29  ;;  %v7783_v35 = vld [vmem:[#allocation143_spill] sm:$0xff] }
 0x809   : > { %3648 = vmatpush3.msra.mxu1 %v7750_v43  ;;  %3621 = vmatpush3.msra.mxu0 %v3870_v17 }
 0x80a   : > { %3649 = vmatprep.subr.mxu1 %v7752_v53  ;;  %3256 = vmatprep.mubr.f32.mxu0 %v7753_v39 }
 0x80b   : > { %3650 = vmatpush3.msra.mxu1 %v7754_v32  ;;  %3257 = vmatmul.mubr.f32.vlgmr.msra.gmra.mxu0 %v3871_v62 }
 0x80c   : > { %3651 = vmatprep.subr.mxu1 %v7755_v50  ;;  %3660 = vmatprep.subr.mxu0 %v7756_v7 }
 0x80d   : > { %3652 = vmatpush3.msra.mxu1 %v7757_v54  ;;  %3661 = vmatpush3.msra.mxu0 %v7758_v2 }
 0x80e   : > { %3653 = vmatprep.subr.mxu1 %v7759_v14  ;;  %3662 = vmatprep.subr.mxu0 %v7760_v0 }
 0x80f   : > { %3654 = vmatpush3.msra.mxu1 %v7761_v3  ;;  %3663 = vmatpush3.msra.mxu0 %v7762_v18 }
 0x810   : > { %3655 = vmatprep.subr.mxu1 %v7763_v11  ;;  %3664 = vmatprep.subr.mxu0 %v7764_v9 }
 0x811   : > { %3656 = vmatpush3.msra.mxu1 %v7765_v56  ;;  %3326 = vmatprep.mubr.f32.mxu1 %v7766_v55 }
 0x812   : > { %3665 = vmatpush3.msra.mxu0 %v7767_v40  ;;  %3327 = vmatmul.mubr.f32.vlgmr.msra.gmra.mxu1 %v3872_v61 }
 0x813   : > { %3666 = vmatprep.subr.mxu0 %v7768_v48  ;;  %3695 = vmatprep.subr.mxu1 %v7769_v13 }
 0x814   : > { %3667 = vmatpush3.msra.mxu0 %v7770_v25  ;;  %3696 = vmatpush3.msra.mxu1 %v7771_v1 }
 0x815   : > { %3668 = vmatprep.subr.mxu0 %v7772_v28  ;;  %3697 = vmatprep.subr.mxu1 %v7773_v12 }
 0x816   : > { %3669 = vmatpush3.msra.mxu0 %v7774_v45  ;;  %3698 = vmatpush3.msra.mxu1 %v7775_v37 }
 0x817   : > { %3670 = vmatprep.subr.mxu0 %v7776_v57  ;;  %3699 = vmatprep.subr.mxu1 %v7694_v6  ;;  %v7784_v6 = vld [vmem:[#allocation262_spill] sm:$0xff] }
 0x818   : > { %3671 = vmatpush3.msra.mxu0 %v7777_v21  ;;  %3700 = vmatpush3.msra.mxu1 %v7778_v15 }
 0x819   : > { %3672 = vmatprep.subr.mxu0 %v7779_v19  ;;  %3701 = vmatprep.subr.mxu1 %v7699_v44  ;;  %v7786_v44 = vld [vmem:[#allocation246_spill] sm:$0xff] }
 0x81a   : > { %3673 = vmatpush3.msra.mxu0 %v7780_v33  ;;  %3702 = vmatpush3.msra.mxu1 %v7781_v58 }
 0x81b   : > { %3674 = vmatprep.subr.mxu0 %v5982_v46  ;;  %3703 = vmatprep.subr.mxu1 %v7702_v51  ;;  %v7787_v46 = vld [vmem:[#allocation76_spill] sm:$0xff]  ;;  %v7788_v51 = vld [vmem:[#allocation214_spill] sm:$0xff] }
 0x81c   : > { %3675 = vmatpush3.msra.mxu0 %v7782_v27  ;;  %3704 = vmatpush3.msra.mxu1 %v7783_v35 }
 0x81d   : > { %3676 = vmatprep.subr.mxu0 %v6714_v49  ;;  %3705 = vmatprep.subr.mxu1 %v7705_v41  ;;  %v7789_v49 = vld [vmem:[#allocation39_spill] sm:$0xff]  ;;  %v7790_v41 = vld [vmem:[#allocation173_spill] sm:$0xff] }
 0x81e   : > { %3677 = vmatpush3.msra.mxu0 %v7784_v6  ;;  %3706 = vmatpush3.msra.mxu1 %v7785_v38 }
 0x81f   : > { %3678 = vmatprep.subr.mxu0 %v6075_v42  ;;  %3707 = vmatprep.subr.mxu1 %v6002_v52  ;;  %v7791_v42 = vld [vmem:[#allocation264_spill] sm:$0xff] }
 0x820   : > { %3679 = vmatpush3.msra.mxu0 %v7786_v44  ;;  %3708 = vmatpush3.msra.mxu1 %v7787_v46  ;;  %v7792_v52 = vld [vmem:[#allocation144_spill] sm:$0xff] }
 0x821   : > { %3680 = vmatprep.subr.mxu0 %v6128_v4  ;;  %3709 = vmatprep.subr.mxu1 %v6037_v34  ;;  %v7793_v4 = vld [vmem:[#allocation251_spill] sm:$0xff]  ;;  %v7794_v34 = vld [vmem:[#allocation104_spill] sm:$0xff] }
 0x822   : > { %3681 = vmatpush3.msra.mxu0 %v7788_v51  ;;  %3710 = vmatpush3.msra.mxu1 %v7789_v49 }
 0x823   : > { %3682 = vmatprep.subr.mxu0 %v6242_v36  ;;  %3711 = vmatprep.subr.mxu1 %v6738_v24  ;;  %v7795_v36 = vld [vmem:[#allocation218_spill] sm:$0xff] }
 0x824   : > { %3683 = vmatpush3.msra.mxu0 %v7790_v41  ;;  %3712 = vmatpush3.msra.mxu1 %v7791_v42  ;;  %v7796_v24 = vld [vmem:[#allocation78_spill] sm:$0xff] }
 0x825   : > { %3684 = vmatprep.subr.mxu0 %v6338_v59  ;;  %3713 = vmatprep.subr.mxu1 %v6160_v23  ;;  %v7797_v59 = vld [vmem:[#allocation177_spill] sm:$0xff] }
 0x826   : > { %3685 = vmatpush3.msra.mxu0 %v7792_v52  ;;  %3714 = vmatpush3.msra.mxu1 %v7793_v4  ;;  %v7798_v23 = vld [vmem:[#allocation41_spill] sm:$0xff] }
 0x827   : > { %3686 = vmatprep.subr.mxu0 %v6435_v60  ;;  %3715 = vmatprep.subr.mxu1 %v6274_v20  ;;  %v7799_v60 = vld [vmem:[#allocation36_spill] sm:$0xff] }
 0x828   : > { %3687 = vmatpush3.msra.mxu0 %v7794_v34  ;;  %3716 = vmatpush3.msra.mxu1 %v7795_v36  ;;  %v7800_v20 = vld [vmem:[#allocation148_spill] sm:$0xff] }
 0x829   : > { %3688 = vmatprep.subr.mxu0 %v6573_v10  ;;  %3717 = vmatprep.subr.mxu1 %v6362_v30  ;;  %v7801_v10 = vld [vmem:[#allocation107_spill] sm:$0xff]  ;;  %v7802_v30 = vld [vmem:[#allocation81_spill] sm:$0xff] }
 0x82a   : > { %3689 = vmatpush3.msra.mxu0 %v7796_v24  ;;  %3718 = vmatpush3.msra.mxu1 %v7797_v59 }
 0x82b   : > { %3690 = vmatprep.subr.mxu0 %v6763_v26  ;;  %3719 = vmatprep.subr.mxu1 %v6461_v63  ;;  %v7803_v63 = vld [vmem:[#allocation45_spill] sm:$0xff] }
 0x82c   : > { %3691 = vmatpush3.msra.mxu0 %v7798_v23  ;;  %3396 = vmatprep.mubr.f32.mxu0 %v7799_v60 }
 0x82d   : > { %3720 = vmatpush3.msra.mxu1 %v7800_v20  ;;  %3397 = vmatmul.mubr.f32.vlgmr.msra.gmra.mxu0 %v6313_v16 }
 0x82e   : > { %3721 = vmatprep.subr.mxu1 %v6660_v8  ;;  %3466 = vmatprep.mubr.f32.mxu1 %v6830_v5  ;;  %v2894_v8 = vpop.permute.xlu1 %2893 }
 0x82f   : > { %3722 = vmatpush3.msra.mxu1 %v7801_v10 }
 0x830   : > { %3723 = vmatprep.subr.mxu1 %v6788_v31 }
 0x831   : > { %3724 = vmatpush3.msra.mxu1 %v7802_v30 }
 0x832   : > { %3725 = vmatprep.subr.mxu1 %v6837_v22 }
 0x833   : > { %3726 = vmatpush3.msra.mxu1 %v7803_v63 }
 0x834   : > { %3467 = vmatmul.mubr.f32.vlgmr.msra.gmra.mxu1 %v6813_v47 }
 0x860   : > { %v2974_v26 = vpop.f32.mrf.mxu0 }
 0x861   : > { %v2975_v17 = vadd.f32 %v2974_v26, %v2894_v8 }
 0x862   : > { %v2976_v43 = vpop.f32.mrf.mxu0 }
 0x863   : > { %v2977_v39 = vadd.f32 %v2976_v43, %v2894_v8 }
 0x870   : > { %v3045_v16 = vpop.f32.mrf.mxu1 }
 0x871   : > { %v3046_v32 = vadd.f32 %v3045_v16, %v2975_v17 }
 0x872   : > { %v3047_v53 = vpop.f32.mrf.mxu1 }
 0x873   : > { %v3048_v31 = vadd.f32 %v3047_v53, %v2977_v39 }
 0x8a9   : > { %v3116_v29 = vpop.f32.mrf.mxu0 }
 0x8aa   : > { %v3117_v50 = vadd.f32 %v3116_v29, %v3046_v32 }
 0x8ab   : > { %v3118_v5 = vpop.f32.mrf.mxu0 }
 0x8ac   : > { %v3119_v7 = vadd.f32 %v3118_v5, %v3048_v31 }
 0x8b1   : > { %v3187_v62 = vpop.f32.mrf.mxu1 }
 0x8b2   : > { %v3188_v54 = vadd.f32 %v3187_v62, %v3117_v50 }
 0x8b3   : > { %v3189_v22 = vpop.f32.mrf.mxu1 }
 0x8b4   : > { %v3190_v2 = vadd.f32 %v3189_v22, %v3119_v7 }
 0x8b6   : > { %v3474_v47 = vcombine.low %v3188_v54, %v3190_v2 }
 0x8b8   : > { %3476 = vst [vmem:[%s332_s29] sm:$0x77] %v3474_v47 }
 0x8cb   : > { %v3622_v14 = vpop.f32.mrf.mxu0 }
 0x8cd   : > { %v3623_v3 = vpop.f32.mrf.mxu0 }
 0x8ce   : > { %v3624_v9 = vadd.f32 %v3623_v3, %v3622_v14 }
 0x8d0   : > { %v3259_v40 = vadd.f32 %v3624_v9, %v2894_v8 }
 0x8d2   : > { %v3657_v0 = vpop.f32.mrf.mxu1 }
 0x8d4   : > { %v3658_v18 = vpop.f32.mrf.mxu1 }
 0x8d5   : > { %v3659_v55 = vadd.f32 %v3658_v18, %v3657_v0 }
 0x8d7   : > { %v3329_v13 = vadd.f32 %v3659_v55, %v3259_v40 }
 0x8ed   : > { %v3692_v11 = vpop.f32.mrf.mxu0 }
 0x8ef   : > { %v3693_v56 = vpop.f32.mrf.mxu0 }
 0x8f0   : > { %v3694_v61 = vadd.f32 %v3693_v56, %v3692_v11 }
 0x8f2   : > { %v3399_v1 = vadd.f32 %v3694_v61, %v3329_v13 }
 0x8f4   : > { %v3727_v48 = vpop.f32.mrf.mxu1 }
 0x8f6   : > { %v3728_v25 = vpop.f32.mrf.mxu1 }
 0x8f7   : > { %v3729_v28 = vadd.f32 %v3728_v25, %v3727_v48 }
 0x8f9   : > { %v3469_v12 = vadd.f32 %v3729_v28, %v3399_v1 }
 0x8fb   : > { %3478 = vst.msk [vmem:[%s332_s29 + $0x8] sm:$0x7] %vm3477_vm4, %v3469_v12 }
 0x8fc PF: > { %s19_s30 = sadd.s32 1, %s3879_s30  }
 0x8fd   : > { %p16_p4 = scmp.ge.s32.totalorder %s19_s30, 4  }
 0x8ff   :  { %18 = sbr.rel (!%p16_p4) target bundleno = 1 (0x1), region = 86 }

</bundles_post_ra>
